<compile_context>
chip_gen: v5e
topology: v5e:2x2
jax: 0.10.0
libtpu: 0.0.40
codegen_flags: <defaults>
</compile_context>

<pallas_src>
import numpy as np
import jax
import jax.numpy as jnp
from jax.experimental import pallas as pl
from jax.experimental.pallas import tpu as pltpu


# Tap order matches the conv weight layout: t = kh*3 + kw, (dh, dw) = (kh-1, kw-1)
_OFFSETS = [(dh, dw) for dh in (-1, 0, 1) for dw in (-1, 0, 1)]


# --------------------------------------------------------------------------- #
# Host-side constant builders.
# --------------------------------------------------------------------------- #
def _interp_matrix_1d(in_size, out_size, align_corners=True):
    out_i = np.arange(out_size, dtype=np.float64)
    if align_corners and out_size > 1:
        src = out_i * (in_size - 1) / (out_size - 1)
    else:
        src = np.clip((out_i + 0.5) * in_size / out_size - 0.5, 0, in_size - 1)
    i0 = np.clip(np.floor(src).astype(np.int64), 0, in_size - 1)
    i1 = np.minimum(i0 + 1, in_size - 1)
    frac = src - i0
    M = np.zeros((out_size, in_size), dtype=np.float64)
    M[np.arange(out_size), i0] += 1.0 - frac
    M[np.arange(out_size), i1] += frac
    return M.astype(np.float32)


def _upsample_matrix(H, W):
    """(H*W, 4*H*W) bilinear x2 matrix (align_corners=True); apply as X_flat @ U."""
    Mh = _interp_matrix_1d(H, 2 * H, align_corners=True)    # (2H, H)
    Mw = _interp_matrix_1d(W, 2 * W, align_corners=True)    # (2W, W)
    return np.ascontiguousarray(np.kron(Mh, Mw).T.astype(np.float32))  # (HW, 4HW)


def _tap_masks(H, W):
    """(9, H*W) float masks: 1 where the (dh,dw)-shifted neighbour is in-bounds."""
    masks = np.zeros((9, H * W), np.float32)
    hh = np.arange(H)[:, None]
    ww = np.arange(W)[None, :]
    for t, (dh, dw) in enumerate(_OFFSETS):
        m = (hh + dh >= 0) & (hh + dh < H) & (ww + dw >= 0) & (ww + dw < W)
        masks[t] = m.astype(np.float32).reshape(-1)
    return masks


def _tree_sum(terms):
    """Balanced-tree sum of a list of same-shaped arrays (good VALU ILP)."""
    while len(terms) > 1:
        nxt = [terms[i] + terms[i + 1] for i in range(0, len(terms) - 1, 2)]
        if len(terms) % 2:
            nxt.append(terms[-1])
        terms = nxt
    return terms[0]


# --------------------------------------------------------------------------- #
# Pallas kernel + host glue.
# --------------------------------------------------------------------------- #
def feature_fusion_block(x0_nchw, x1_nchw, params):
    N, C, H, W = x0_nchw.shape
    HW = H * W
    Cout = params["wout"].shape[1]
    OUT_L = 4 * HW

    # TODO(synk): this fully unrolled VPU broadcast-FMA conv only makes sense
    # for small feature counts; for realistic DPT widths (C >= 16) conv3x3
    # should switch to an MXU formulation (per-tap (Cout,Cin)@(Cin,HW) matmuls).
    assert C <= 8 and Cout <= 8, "VPU conv path hard-codes the small-C regime"

    # Batch coarsening: 2 images per serial grid step on single-TC v5e/v6e,
    # but never collapse below 2 grid steps (keeps both v7x TCs busy at N=2).
    P = 2 if (N % 2 == 0 and N >= 4) else 1

    # Lane-dense layout: flatten spatial, channels on the sublane axis.
    x0 = x0_nchw.reshape(N, C, HW).astype(jnp.float32)
    x1 = x1_nchw.reshape(N, C, HW).astype(jnp.float32)

    masks = jnp.asarray(_tap_masks(H, W))                    # (9, HW)
    ups = jnp.asarray(_upsample_matrix(H, W))                # (HW, 4HW)

    # Conv weights packed with Cout on the sublane axis: row (k*9+t)*C+ci holds
    # the (Cout, 1) column used by one broadcast-FMA.
    cw = jnp.stack([params["w1a"], params["w1b"],
                    params["w2a"], params["w2b"]])           # (4, 9, Cin, Cout)
    cw = cw.reshape(4 * 9 * C, Cout)[..., None]              # (36*C, Cout, 1)
    cb = jnp.stack([params["b1a"], params["b1b"],
                    params["b2a"], params["b2b"]])[..., None]  # (4, C, 1)
    wo = params["wout"][..., None]                           # (Cin, Cout, 1)
    bo = params["bout"][:, None]                             # (Cout, 1)

    def kernel(x0_ref, x1_ref, mask_ref, up_ref, cw_ref, cb_ref, wo_ref, bo_ref,
               o_ref):
        masks_v = mask_ref[...]                              # (9, HW)
        up_v = up_ref[...]                                   # (HW, 4HW)

        def conv3x3(x, k):
            # 3x3 "same" conv on the VPU, vectorized over output channels:
            # 9*Cin broadcast-FMAs of (Cout,1)x(1,HW) into (Cout,HW) partials.
            parts = [None, None, None, None]
            idx = 0
            for t, (dh, dw) in enumerate(_OFFSETS):
                s = dh * W + dw
                if s == 0:
                    tap = x
                else:
                    # XLU lane roll; mask kills the circular wrap / borders.
                    tap = pltpu.roll(x, (-s) % HW, axis=1) * masks_v[t:t + 1, :]
                base = (k * 9 + t) * C
                for ci in range(C):
                    term = cw_ref[base + ci] * tap[ci:ci + 1, :]   # (Cout, HW)
                    j = idx & 3
                    parts[j] = term if parts[j] is None else parts[j] + term
                    idx += 1
            acc = _tree_sum([p for p in parts if p is not None])
            return acc + cb_ref[k]                            # bias added once

        def rcu(x, k0):
            # ResidualConvUnit_custom (bn=False, groups=1, activation=ReLU)
            h = conv3x3(jnp.maximum(x, 0.0), k0)
            h = conv3x3(jnp.maximum(h, 0.0), k0 + 1)
            return h + x

        for p in range(P):
            out = x0_ref[p] + rcu(x1_ref[p], 0)               # skip_add(xs[0], RCU1(xs[1]))
            out = rcu(out, 2)                                 # RCU2
            # 1x1 out_conv first (its bias commutes through the row-stochastic
            # bilinear upsample), then ONE lane-dense MXU matmul writing the
            # (Cout, 4*HW) output directly -- no per-channel reshapes.
            yc = _tree_sum([wo_ref[ci] * out[ci:ci + 1, :] for ci in range(C)])
            yc = yc + bo_ref[...]                             # (Cout, HW)
            o_ref[p] = jnp.dot(yc, up_v, preferred_element_type=jnp.float32)

    def const_spec(a):
        nd = a.ndim
        return pl.BlockSpec(a.shape, lambda n, _nd=nd: (0,) * _nd)

    in_specs = [
        pl.BlockSpec((P, C, HW), lambda n: (n, 0, 0)),
        pl.BlockSpec((P, C, HW), lambda n: (n, 0, 0)),
        const_spec(masks), const_spec(ups),
        const_spec(cw), const_spec(cb), const_spec(wo), const_spec(bo),
    ]
    out_specs = pl.BlockSpec((P, Cout, OUT_L), lambda n: (n, 0, 0))

    y = pl.pallas_call(
        kernel,
        out_shape=jax.ShapeDtypeStruct((N, Cout, OUT_L), jnp.float32),
        grid_spec=pltpu.PrefetchScalarGridSpec(
            num_scalar_prefetch=0,
            grid=(N // P,),
            in_specs=in_specs,
            out_specs=out_specs,
        ),
        compiler_params=pltpu.CompilerParams(
            dimension_semantics=("parallel",)),
    )(x0, x1, masks, ups, cw, cb, wo, bo)

    return y.reshape(N, Cout, 2 * H, 2 * W)                   # NCHW out


# --------------------------------------------------------------------------- #
# Parameter init + pure-JAX reference (NCHW, correctness check only).
# --------------------------------------------------------------------------- #
def init_params(key, features):
    C = features
    ks = jax.random.split(key, 10)
    w3 = lambda k: 0.1 * jax.random.normal(k, (9, C, C), jnp.float32)
    b = lambda k: 0.1 * jax.random.normal(k, (C,), jnp.float32)
    return dict(
        w1a=w3(ks[0]), b1a=b(ks[1]),
        w1b=w3(ks[2]), b1b=b(ks[3]),
        w2a=w3(ks[4]), b2a=b(ks[5]),
        w2b=w3(ks[6]), b2b=b(ks[7]),
        wout=0.1 * jax.random.normal(ks[8], (C, C), jnp.float32),   # [cin, cout]
        bout=0.1 * jax.random.normal(ks[9], (C,), jnp.float32),
    )


def ffb_reference(x0, x1, params):
    N, C, H, W = x0.shape
    hp = jax.lax.Precision.HIGHEST

    def conv3x3(x, w9, b):
        w = w9.reshape(3, 3, C, C)                                  # HWIO
        y = jax.lax.conv_general_dilated(
            x, w, window_strides=(1, 1), padding=((1, 1), (1, 1)),
            dimension_numbers=("NCHW", "HWIO", "NCHW"), precision=hp)
        return y + b.reshape(1, -1, 1, 1)

    def rcu(x, wa, ba, wb, bb):
        out = jax.nn.relu(x)
        out = conv3x3(out, wa, ba)
        out = jax.nn.relu(out)
        out = conv3x3(out, wb, bb)
        return out + x

    out = x0 + rcu(x1, params["w1a"], params["b1a"], params["w1b"], params["b1b"])
    out = rcu(out, params["w2a"], params["b2a"], params["w2b"], params["b2b"])

    mh = jnp.asarray(_interp_matrix_1d(H, 2 * H, align_corners=True))
    mw = jnp.asarray(_interp_matrix_1d(W, 2 * W, align_corners=True))
    up = jnp.einsum("oh,nchw->ncow", mh, out, precision=hp)
    up = jnp.einsum("pw,ncow->ncop", mw, up, precision=hp)
    y = jnp.einsum("ncop,cd->ndop", up, params["wout"], precision=hp)
    return y + params["bout"].reshape(1, -1, 1, 1)


def _check(tag, y, y_ref):
    y = np.asarray(y)
    y_ref = np.asarray(y_ref)
    if not (np.all(np.isfinite(y))
            and np.allclose(y, y_ref, rtol=2e-2, atol=2e-2)):
        raise AssertionError(
            f"[{tag}] Pallas/reference mismatch, max abs err = "
            f"{np.max(np.abs(y - y_ref))}")


if __name__ == "__main__":
    key = jax.random.PRNGKey(0)
    N, C, H, W = 2, 4, 16, 16          # batch=2, features=4, spatial=16x16
    k0, k1, kp, k2, k3 = jax.random.split(key, 5)
    params = init_params(kp, C)

    # Primary case (N=2): P=1, grid=(2,) -> both v7x TCs get work.
    x0 = jax.random.normal(k0, (N, C, H, W), jnp.float32)   # xs[0]
    x1 = jax.random.normal(k1, (N, C, H, W), jnp.float32)   # xs[1]
    y = jax.block_until_ready(feature_fusion_block(x0, x1, params))
    assert y.shape == (N, C, 2 * H, 2 * W), y.shape
    _check("N=2", y, ffb_reference(x0, x1, params))

    # Batch-paired case (N=4): P=2, two images per grid step.
    x0b = jax.random.normal(k2, (4, C, H, W), jnp.float32)
    x1b = jax.random.normal(k3, (4, C, H, W), jnp.float32)
    yb = jax.block_until_ready(feature_fusion_block(x0b, x1b, params))
    assert yb.shape == (4, C, 2 * H, 2 * W), yb.shape
    _check("N=4", yb, ffb_reference(x0b, x1b, params))

    print("KERNEL_OK")
</pallas_src>

<mosaic_0001>
module attributes {stable_mosaic.version = 11 : i64} {
  func.func @kernel(%arg0: i32, %arg1: memref<1x4x256xf32, #tpu.memory_space<vmem>>, %arg2: memref<1x4x256xf32, #tpu.memory_space<vmem>>, %arg3: memref<9x256xf32, #tpu.memory_space<vmem>>, %arg4: memref<256x1024xf32, #tpu.memory_space<vmem>>, %arg5: memref<144x4x1xf32, #tpu.memory_space<vmem>>, %arg6: memref<4x4x1xf32, #tpu.memory_space<vmem>>, %arg7: memref<4x4x1xf32, #tpu.memory_space<vmem>>, %arg8: memref<4x1xf32, #tpu.memory_space<vmem>>, %arg9: memref<1x4x1024xf32, #tpu.memory_space<vmem>>) attributes {dimension_semantics = [#tpu.dimension_semantics<parallel>], iteration_bounds = array<i64: 2>, scalar_prefetch = 0 : i64, scratch_operands = 0 : i64, tpu.core_type = #tpu.core_type<tc>, window_params = [{transform_indices = @transform_0, window_bounds = array<i64: 1, 4, 256>}, {transform_indices = @transform_1, window_bounds = array<i64: 1, 4, 256>}, {pipeline_mode = #tpu.pipeline_mode<synchronous>, transform_indices = @transform_2, window_bounds = array<i64: 9, 256>}, {pipeline_mode = #tpu.pipeline_mode<synchronous>, transform_indices = @transform_3, window_bounds = array<i64: 256, 1024>}, {pipeline_mode = #tpu.pipeline_mode<synchronous>, transform_indices = @transform_4, window_bounds = array<i64: 144, 4, 1>}, {pipeline_mode = #tpu.pipeline_mode<synchronous>, transform_indices = @transform_5, window_bounds = array<i64: 4, 4, 1>}, {pipeline_mode = #tpu.pipeline_mode<synchronous>, transform_indices = @transform_6, window_bounds = array<i64: 4, 4, 1>}, {pipeline_mode = #tpu.pipeline_mode<synchronous>, transform_indices = @transform_7, window_bounds = array<i64: 4, 1>}, {transform_indices = @transform_8, window_bounds = array<i64: 1, 4, 1024>}]} {
    %c0 = arith.constant 0 : index
    %c0_0 = arith.constant 0 : index
    %0 = vector.load %arg3[%c0, %c0_0] : memref<9x256xf32, #tpu.memory_space<vmem>>, vector<9x256xf32>
    %c0_1 = arith.constant 0 : index
    %c0_2 = arith.constant 0 : index
    %1 = vector.load %arg4[%c0_1, %c0_2] : memref<256x1024xf32, #tpu.memory_space<vmem>>, vector<256x1024xf32>
    %c0_3 = arith.constant 0 : index
    %c0_4 = arith.constant 0 : index
    %c0_5 = arith.constant 0 : index
    %2 = vector.load %arg1[%c0_3, %c0_4, %c0_5] : memref<1x4x256xf32, #tpu.memory_space<vmem>>, vector<1x4x256xf32>
    %3 = vector.shape_cast %2 : vector<1x4x256xf32> to vector<4x256xf32>
    %c0_6 = arith.constant 0 : index
    %c0_7 = arith.constant 0 : index
    %c0_8 = arith.constant 0 : index
    %4 = vector.load %arg2[%c0_6, %c0_7, %c0_8] : memref<1x4x256xf32, #tpu.memory_space<vmem>>, vector<1x4x256xf32>
    %5 = vector.shape_cast %4 : vector<1x4x256xf32> to vector<4x256xf32>
    %cst = arith.constant 0.000000e+00 : f32
    %6 = vector.broadcast %cst : f32 to vector<4x256xf32>
    %7 = arith.maximumf %5, %6 : vector<4x256xf32>
    %c17_i32 = arith.constant 17 : i32
    %8 = tpu.dynamic_rotate %7 by %c17_i32 dim 1 : vector<4x256xf32>, i32 -> vector<4x256xf32>
    %9 = vector.extract_strided_slice %0 {offsets = [0, 0], sizes = [1, 256], strides = [1, 1]} : vector<9x256xf32> to vector<1x256xf32>
    %10 = vector.broadcast %9 : vector<1x256xf32> to vector<4x256xf32>
    %11 = arith.mulf %8, %10 : vector<4x256xf32>
    %c0_9 = arith.constant 0 : index
    %c0_10 = arith.constant 0 : index
    %c0_11 = arith.constant 0 : index
    %12 = vector.load %arg5[%c0_9, %c0_10, %c0_11] : memref<144x4x1xf32, #tpu.memory_space<vmem>>, vector<1x4x1xf32>
    %13 = vector.shape_cast %12 : vector<1x4x1xf32> to vector<4x1xf32>
    %14 = vector.extract_strided_slice %11 {offsets = [0, 0], sizes = [1, 256], strides = [1, 1]} : vector<4x256xf32> to vector<1x256xf32>
    %15 = vector.broadcast %13 : vector<4x1xf32> to vector<4x256xf32>
    %16 = vector.broadcast %14 : vector<1x256xf32> to vector<4x256xf32>
    %17 = arith.mulf %15, %16 : vector<4x256xf32>
    %c1 = arith.constant 1 : index
    %c0_12 = arith.constant 0 : index
    %c0_13 = arith.constant 0 : index
    %18 = vector.load %arg5[%c1, %c0_12, %c0_13] : memref<144x4x1xf32, #tpu.memory_space<vmem>>, vector<1x4x1xf32>
    %19 = vector.shape_cast %18 : vector<1x4x1xf32> to vector<4x1xf32>
    %20 = vector.extract_strided_slice %11 {offsets = [1, 0], sizes = [1, 256], strides = [1, 1]} : vector<4x256xf32> to vector<1x256xf32>
    %21 = vector.broadcast %19 : vector<4x1xf32> to vector<4x256xf32>
    %22 = vector.broadcast %20 : vector<1x256xf32> to vector<4x256xf32>
    %23 = arith.mulf %21, %22 : vector<4x256xf32>
    %c2 = arith.constant 2 : index
    %c0_14 = arith.constant 0 : index
    %c0_15 = arith.constant 0 : index
    %24 = vector.load %arg5[%c2, %c0_14, %c0_15] : memref<144x4x1xf32, #tpu.memory_space<vmem>>, vector<1x4x1xf32>
    %25 = vector.shape_cast %24 : vector<1x4x1xf32> to vector<4x1xf32>
    %26 = vector.extract_strided_slice %11 {offsets = [2, 0], sizes = [1, 256], strides = [1, 1]} : vector<4x256xf32> to vector<1x256xf32>
    %27 = vector.broadcast %25 : vector<4x1xf32> to vector<4x256xf32>
    %28 = vector.broadcast %26 : vector<1x256xf32> to vector<4x256xf32>
    %29 = arith.mulf %27, %28 : vector<4x256xf32>
    %c3 = arith.constant 3 : index
    %c0_16 = arith.constant 0 : index
    %c0_17 = arith.constant 0 : index
    %30 = vector.load %arg5[%c3, %c0_16, %c0_17] : memref<144x4x1xf32, #tpu.memory_space<vmem>>, vector<1x4x1xf32>
    %31 = vector.shape_cast %30 : vector<1x4x1xf32> to vector<4x1xf32>
    %32 = vector.extract_strided_slice %11 {offsets = [3, 0], sizes = [1, 256], strides = [1, 1]} : vector<4x256xf32> to vector<1x256xf32>
    %33 = vector.broadcast %31 : vector<4x1xf32> to vector<4x256xf32>
    %34 = vector.broadcast %32 : vector<1x256xf32> to vector<4x256xf32>
    %35 = arith.mulf %33, %34 : vector<4x256xf32>
    %c16_i32 = arith.constant 16 : i32
    %36 = tpu.dynamic_rotate %7 by %c16_i32 dim 1 : vector<4x256xf32>, i32 -> vector<4x256xf32>
    %37 = vector.extract_strided_slice %0 {offsets = [1, 0], sizes = [1, 256], strides = [1, 1]} : vector<9x256xf32> to vector<1x256xf32>
    %38 = vector.broadcast %37 : vector<1x256xf32> to vector<4x256xf32>
    %39 = arith.mulf %36, %38 : vector<4x256xf32>
    %c4 = arith.constant 4 : index
    %c0_18 = arith.constant 0 : index
    %c0_19 = arith.constant 0 : index
    %40 = vector.load %arg5[%c4, %c0_18, %c0_19] : memref<144x4x1xf32, #tpu.memory_space<vmem>>, vector<1x4x1xf32>
    %41 = vector.shape_cast %40 : vector<1x4x1xf32> to vector<4x1xf32>
    %42 = vector.extract_strided_slice %39 {offsets = [0, 0], sizes = [1, 256], strides = [1, 1]} : vector<4x256xf32> to vector<1x256xf32>
    %43 = vector.broadcast %41 : vector<4x1xf32> to vector<4x256xf32>
    %44 = vector.broadcast %42 : vector<1x256xf32> to vector<4x256xf32>
    %45 = arith.mulf %43, %44 : vector<4x256xf32>
    %46 = arith.addf %17, %45 : vector<4x256xf32>
    %c5 = arith.constant 5 : index
    %c0_20 = arith.constant 0 : index
    %c0_21 = arith.constant 0 : index
    %47 = vector.load %arg5[%c5, %c0_20, %c0_21] : memref<144x4x1xf32, #tpu.memory_space<vmem>>, vector<1x4x1xf32>
    %48 = vector.shape_cast %47 : vector<1x4x1xf32> to vector<4x1xf32>
    %49 = vector.extract_strided_slice %39 {offsets = [1, 0], sizes = [1, 256], strides = [1, 1]} : vector<4x256xf32> to vector<1x256xf32>
    %50 = vector.broadcast %48 : vector<4x1xf32> to vector<4x256xf32>
    %51 = vector.broadcast %49 : vector<1x256xf32> to vector<4x256xf32>
    %52 = arith.mulf %50, %51 : vector<4x256xf32>
    %53 = arith.addf %23, %52 : vector<4x256xf32>
    %c6 = arith.constant 6 : index
    %c0_22 = arith.constant 0 : index
    %c0_23 = arith.constant 0 : index
    %54 = vector.load %arg5[%c6, %c0_22, %c0_23] : memref<144x4x1xf32, #tpu.memory_space<vmem>>, vector<1x4x1xf32>
    %55 = vector.shape_cast %54 : vector<1x4x1xf32> to vector<4x1xf32>
    %56 = vector.extract_strided_slice %39 {offsets = [2, 0], sizes = [1, 256], strides = [1, 1]} : vector<4x256xf32> to vector<1x256xf32>
    %57 = vector.broadcast %55 : vector<4x1xf32> to vector<4x256xf32>
    %58 = vector.broadcast %56 : vector<1x256xf32> to vector<4x256xf32>
    %59 = arith.mulf %57, %58 : vector<4x256xf32>
    %60 = arith.addf %29, %59 : vector<4x256xf32>
    %c7 = arith.constant 7 : index
    %c0_24 = arith.constant 0 : index
    %c0_25 = arith.constant 0 : index
    %61 = vector.load %arg5[%c7, %c0_24, %c0_25] : memref<144x4x1xf32, #tpu.memory_space<vmem>>, vector<1x4x1xf32>
    %62 = vector.shape_cast %61 : vector<1x4x1xf32> to vector<4x1xf32>
    %63 = vector.extract_strided_slice %39 {offsets = [3, 0], sizes = [1, 256], strides = [1, 1]} : vector<4x256xf32> to vector<1x256xf32>
    %64 = vector.broadcast %62 : vector<4x1xf32> to vector<4x256xf32>
    %65 = vector.broadcast %63 : vector<1x256xf32> to vector<4x256xf32>
    %66 = arith.mulf %64, %65 : vector<4x256xf32>
    %67 = arith.addf %35, %66 : vector<4x256xf32>
    %c15_i32 = arith.constant 15 : i32
    %68 = tpu.dynamic_rotate %7 by %c15_i32 dim 1 : vector<4x256xf32>, i32 -> vector<4x256xf32>
    %69 = vector.extract_strided_slice %0 {offsets = [2, 0], sizes = [1, 256], strides = [1, 1]} : vector<9x256xf32> to vector<1x256xf32>
    %70 = vector.broadcast %69 : vector<1x256xf32> to vector<4x256xf32>
    %71 = arith.mulf %68, %70 : vector<4x256xf32>
    %c8 = arith.constant 8 : index
    %c0_26 = arith.constant 0 : index
    %c0_27 = arith.constant 0 : index
    %72 = vector.load %arg5[%c8, %c0_26, %c0_27] : memref<144x4x1xf32, #tpu.memory_space<vmem>>, vector<1x4x1xf32>
    %73 = vector.shape_cast %72 : vector<1x4x1xf32> to vector<4x1xf32>
    %74 = vector.extract_strided_slice %71 {offsets = [0, 0], sizes = [1, 256], strides = [1, 1]} : vector<4x256xf32> to vector<1x256xf32>
    %75 = vector.broadcast %73 : vector<4x1xf32> to vector<4x256xf32>
    %76 = vector.broadcast %74 : vector<1x256xf32> to vector<4x256xf32>
    %77 = arith.mulf %75, %76 : vector<4x256xf32>
    %78 = arith.addf %46, %77 : vector<4x256xf32>
    %c9 = arith.constant 9 : index
    %c0_28 = arith.constant 0 : index
    %c0_29 = arith.constant 0 : index
    %79 = vector.load %arg5[%c9, %c0_28, %c0_29] : memref<144x4x1xf32, #tpu.memory_space<vmem>>, vector<1x4x1xf32>
    %80 = vector.shape_cast %79 : vector<1x4x1xf32> to vector<4x1xf32>
    %81 = vector.extract_strided_slice %71 {offsets = [1, 0], sizes = [1, 256], strides = [1, 1]} : vector<4x256xf32> to vector<1x256xf32>
    %82 = vector.broadcast %80 : vector<4x1xf32> to vector<4x256xf32>
    %83 = vector.broadcast %81 : vector<1x256xf32> to vector<4x256xf32>
    %84 = arith.mulf %82, %83 : vector<4x256xf32>
    %85 = arith.addf %53, %84 : vector<4x256xf32>
    %c10 = arith.constant 10 : index
    %c0_30 = arith.constant 0 : index
    %c0_31 = arith.constant 0 : index
    %86 = vector.load %arg5[%c10, %c0_30, %c0_31] : memref<144x4x1xf32, #tpu.memory_space<vmem>>, vector<1x4x1xf32>
    %87 = vector.shape_cast %86 : vector<1x4x1xf32> to vector<4x1xf32>
    %88 = vector.extract_strided_slice %71 {offsets = [2, 0], sizes = [1, 256], strides = [1, 1]} : vector<4x256xf32> to vector<1x256xf32>
    %89 = vector.broadcast %87 : vector<4x1xf32> to vector<4x256xf32>
    %90 = vector.broadcast %88 : vector<1x256xf32> to vector<4x256xf32>
    %91 = arith.mulf %89, %90 : vector<4x256xf32>
    %92 = arith.addf %60, %91 : vector<4x256xf32>
    %c11 = arith.constant 11 : index
    %c0_32 = arith.constant 0 : index
    %c0_33 = arith.constant 0 : index
    %93 = vector.load %arg5[%c11, %c0_32, %c0_33] : memref<144x4x1xf32, #tpu.memory_space<vmem>>, vector<1x4x1xf32>
    %94 = vector.shape_cast %93 : vector<1x4x1xf32> to vector<4x1xf32>
    %95 = vector.extract_strided_slice %71 {offsets = [3, 0], sizes = [1, 256], strides = [1, 1]} : vector<4x256xf32> to vector<1x256xf32>
    %96 = vector.broadcast %94 : vector<4x1xf32> to vector<4x256xf32>
    %97 = vector.broadcast %95 : vector<1x256xf32> to vector<4x256xf32>
    %98 = arith.mulf %96, %97 : vector<4x256xf32>
    %99 = arith.addf %67, %98 : vector<4x256xf32>
    %c1_i32 = arith.constant 1 : i32
    %100 = tpu.dynamic_rotate %7 by %c1_i32 dim 1 : vector<4x256xf32>, i32 -> vector<4x256xf32>
    %101 = vector.extract_strided_slice %0 {offsets = [3, 0], sizes = [1, 256], strides = [1, 1]} : vector<9x256xf32> to vector<1x256xf32>
    %102 = vector.broadcast %101 : vector<1x256xf32> to vector<4x256xf32>
    %103 = arith.mulf %100, %102 : vector<4x256xf32>
    %c12 = arith.constant 12 : index
    %c0_34 = arith.constant 0 : index
    %c0_35 = arith.constant 0 : index
    %104 = vector.load %arg5[%c12, %c0_34, %c0_35] : memref<144x4x1xf32, #tpu.memory_space<vmem>>, vector<1x4x1xf32>
    %105 = vector.shape_cast %104 : vector<1x4x1xf32> to vector<4x1xf32>
    %106 = vector.extract_strided_slice %103 {offsets = [0, 0], sizes = [1, 256], strides = [1, 1]} : vector<4x256xf32> to vector<1x256xf32>
    %107 = vector.broadcast %105 : vector<4x1xf32> to vector<4x256xf32>
    %108 = vector.broadcast %106 : vector<1x256xf32> to vector<4x256xf32>
    %109 = arith.mulf %107, %108 : vector<4x256xf32>
    %110 = arith.addf %78, %109 : vector<4x256xf32>
    %c13 = arith.constant 13 : index
    %c0_36 = arith.constant 0 : index
    %c0_37 = arith.constant 0 : index
    %111 = vector.load %arg5[%c13, %c0_36, %c0_37] : memref<144x4x1xf32, #tpu.memory_space<vmem>>, vector<1x4x1xf32>
    %112 = vector.shape_cast %111 : vector<1x4x1xf32> to vector<4x1xf32>
    %113 = vector.extract_strided_slice %103 {offsets = [1, 0], sizes = [1, 256], strides = [1, 1]} : vector<4x256xf32> to vector<1x256xf32>
    %114 = vector.broadcast %112 : vector<4x1xf32> to vector<4x256xf32>
    %115 = vector.broadcast %113 : vector<1x256xf32> to vector<4x256xf32>
    %116 = arith.mulf %114, %115 : vector<4x256xf32>
    %117 = arith.addf %85, %116 : vector<4x256xf32>
    %c14 = arith.constant 14 : index
    %c0_38 = arith.constant 0 : index
    %c0_39 = arith.constant 0 : index
    %118 = vector.load %arg5[%c14, %c0_38, %c0_39] : memref<144x4x1xf32, #tpu.memory_space<vmem>>, vector<1x4x1xf32>
    %119 = vector.shape_cast %118 : vector<1x4x1xf32> to vector<4x1xf32>
    %120 = vector.extract_strided_slice %103 {offsets = [2, 0], sizes = [1, 256], strides = [1, 1]} : vector<4x256xf32> to vector<1x256xf32>
    %121 = vector.broadcast %119 : vector<4x1xf32> to vector<4x256xf32>
    %122 = vector.broadcast %120 : vector<1x256xf32> to vector<4x256xf32>
    %123 = arith.mulf %121, %122 : vector<4x256xf32>
    %124 = arith.addf %92, %123 : vector<4x256xf32>
    %c15 = arith.constant 15 : index
    %c0_40 = arith.constant 0 : index
    %c0_41 = arith.constant 0 : index
    %125 = vector.load %arg5[%c15, %c0_40, %c0_41] : memref<144x4x1xf32, #tpu.memory_space<vmem>>, vector<1x4x1xf32>
    %126 = vector.shape_cast %125 : vector<1x4x1xf32> to vector<4x1xf32>
    %127 = vector.extract_strided_slice %103 {offsets = [3, 0], sizes = [1, 256], strides = [1, 1]} : vector<4x256xf32> to vector<1x256xf32>
    %128 = vector.broadcast %126 : vector<4x1xf32> to vector<4x256xf32>
    %129 = vector.broadcast %127 : vector<1x256xf32> to vector<4x256xf32>
    %130 = arith.mulf %128, %129 : vector<4x256xf32>
    %131 = arith.addf %99, %130 : vector<4x256xf32>
    %c16 = arith.constant 16 : index
    %c0_42 = arith.constant 0 : index
    %c0_43 = arith.constant 0 : index
    %132 = vector.load %arg5[%c16, %c0_42, %c0_43] : memref<144x4x1xf32, #tpu.memory_space<vmem>>, vector<1x4x1xf32>
    %133 = vector.shape_cast %132 : vector<1x4x1xf32> to vector<4x1xf32>
    %134 = vector.extract_strided_slice %7 {offsets = [0, 0], sizes = [1, 256], strides = [1, 1]} : vector<4x256xf32> to vector<1x256xf32>
    %135 = vector.broadcast %133 : vector<4x1xf32> to vector<4x256xf32>
    %136 = vector.broadcast %134 : vector<1x256xf32> to vector<4x256xf32>
    %137 = arith.mulf %135, %136 : vector<4x256xf32>
    %138 = arith.addf %110, %137 : vector<4x256xf32>
    %c17 = arith.constant 17 : index
    %c0_44 = arith.constant 0 : index
    %c0_45 = arith.constant 0 : index
    %139 = vector.load %arg5[%c17, %c0_44, %c0_45] : memref<144x4x1xf32, #tpu.memory_space<vmem>>, vector<1x4x1xf32>
    %140 = vector.shape_cast %139 : vector<1x4x1xf32> to vector<4x1xf32>
    %141 = vector.extract_strided_slice %7 {offsets = [1, 0], sizes = [1, 256], strides = [1, 1]} : vector<4x256xf32> to vector<1x256xf32>
    %142 = vector.broadcast %140 : vector<4x1xf32> to vector<4x256xf32>
    %143 = vector.broadcast %141 : vector<1x256xf32> to vector<4x256xf32>
    %144 = arith.mulf %142, %143 : vector<4x256xf32>
    %145 = arith.addf %117, %144 : vector<4x256xf32>
    %c18 = arith.constant 18 : index
    %c0_46 = arith.constant 0 : index
    %c0_47 = arith.constant 0 : index
    %146 = vector.load %arg5[%c18, %c0_46, %c0_47] : memref<144x4x1xf32, #tpu.memory_space<vmem>>, vector<1x4x1xf32>
    %147 = vector.shape_cast %146 : vector<1x4x1xf32> to vector<4x1xf32>
    %148 = vector.extract_strided_slice %7 {offsets = [2, 0], sizes = [1, 256], strides = [1, 1]} : vector<4x256xf32> to vector<1x256xf32>
    %149 = vector.broadcast %147 : vector<4x1xf32> to vector<4x256xf32>
    %150 = vector.broadcast %148 : vector<1x256xf32> to vector<4x256xf32>
    %151 = arith.mulf %149, %150 : vector<4x256xf32>
    %152 = arith.addf %124, %151 : vector<4x256xf32>
    %c19 = arith.constant 19 : index
    %c0_48 = arith.constant 0 : index
    %c0_49 = arith.constant 0 : index
    %153 = vector.load %arg5[%c19, %c0_48, %c0_49] : memref<144x4x1xf32, #tpu.memory_space<vmem>>, vector<1x4x1xf32>
    %154 = vector.shape_cast %153 : vector<1x4x1xf32> to vector<4x1xf32>
    %155 = vector.extract_strided_slice %7 {offsets = [3, 0], sizes = [1, 256], strides = [1, 1]} : vector<4x256xf32> to vector<1x256xf32>
    %156 = vector.broadcast %154 : vector<4x1xf32> to vector<4x256xf32>
    %157 = vector.broadcast %155 : vector<1x256xf32> to vector<4x256xf32>
    %158 = arith.mulf %156, %157 : vector<4x256xf32>
    %159 = arith.addf %131, %158 : vector<4x256xf32>
    %c255_i32 = arith.constant 255 : i32
    %160 = tpu.dynamic_rotate %7 by %c255_i32 dim 1 : vector<4x256xf32>, i32 -> vector<4x256xf32>
    %161 = vector.extract_strided_slice %0 {offsets = [5, 0], sizes = [1, 256], strides = [1, 1]} : vector<9x256xf32> to vector<1x256xf32>
    %162 = vector.broadcast %161 : vector<1x256xf32> to vector<4x256xf32>
    %163 = arith.mulf %160, %162 : vector<4x256xf32>
    %c20 = arith.constant 20 : index
    %c0_50 = arith.constant 0 : index
    %c0_51 = arith.constant 0 : index
    %164 = vector.load %arg5[%c20, %c0_50, %c0_51] : memref<144x4x1xf32, #tpu.memory_space<vmem>>, vector<1x4x1xf32>
    %165 = vector.shape_cast %164 : vector<1x4x1xf32> to vector<4x1xf32>
    %166 = vector.extract_strided_slice %163 {offsets = [0, 0], sizes = [1, 256], strides = [1, 1]} : vector<4x256xf32> to vector<1x256xf32>
    %167 = vector.broadcast %165 : vector<4x1xf32> to vector<4x256xf32>
    %168 = vector.broadcast %166 : vector<1x256xf32> to vector<4x256xf32>
    %169 = arith.mulf %167, %168 : vector<4x256xf32>
    %170 = arith.addf %138, %169 : vector<4x256xf32>
    %c21 = arith.constant 21 : index
    %c0_52 = arith.constant 0 : index
    %c0_53 = arith.constant 0 : index
    %171 = vector.load %arg5[%c21, %c0_52, %c0_53] : memref<144x4x1xf32, #tpu.memory_space<vmem>>, vector<1x4x1xf32>
    %172 = vector.shape_cast %171 : vector<1x4x1xf32> to vector<4x1xf32>
    %173 = vector.extract_strided_slice %163 {offsets = [1, 0], sizes = [1, 256], strides = [1, 1]} : vector<4x256xf32> to vector<1x256xf32>
    %174 = vector.broadcast %172 : vector<4x1xf32> to vector<4x256xf32>
    %175 = vector.broadcast %173 : vector<1x256xf32> to vector<4x256xf32>
    %176 = arith.mulf %174, %175 : vector<4x256xf32>
    %177 = arith.addf %145, %176 : vector<4x256xf32>
    %c22 = arith.constant 22 : index
    %c0_54 = arith.constant 0 : index
    %c0_55 = arith.constant 0 : index
    %178 = vector.load %arg5[%c22, %c0_54, %c0_55] : memref<144x4x1xf32, #tpu.memory_space<vmem>>, vector<1x4x1xf32>
    %179 = vector.shape_cast %178 : vector<1x4x1xf32> to vector<4x1xf32>
    %180 = vector.extract_strided_slice %163 {offsets = [2, 0], sizes = [1, 256], strides = [1, 1]} : vector<4x256xf32> to vector<1x256xf32>
    %181 = vector.broadcast %179 : vector<4x1xf32> to vector<4x256xf32>
    %182 = vector.broadcast %180 : vector<1x256xf32> to vector<4x256xf32>
    %183 = arith.mulf %181, %182 : vector<4x256xf32>
    %184 = arith.addf %152, %183 : vector<4x256xf32>
    %c23 = arith.constant 23 : index
    %c0_56 = arith.constant 0 : index
    %c0_57 = arith.constant 0 : index
    %185 = vector.load %arg5[%c23, %c0_56, %c0_57] : memref<144x4x1xf32, #tpu.memory_space<vmem>>, vector<1x4x1xf32>
    %186 = vector.shape_cast %185 : vector<1x4x1xf32> to vector<4x1xf32>
    %187 = vector.extract_strided_slice %163 {offsets = [3, 0], sizes = [1, 256], strides = [1, 1]} : vector<4x256xf32> to vector<1x256xf32>
    %188 = vector.broadcast %186 : vector<4x1xf32> to vector<4x256xf32>
    %189 = vector.broadcast %187 : vector<1x256xf32> to vector<4x256xf32>
    %190 = arith.mulf %188, %189 : vector<4x256xf32>
    %191 = arith.addf %159, %190 : vector<4x256xf32>
    %c241_i32 = arith.constant 241 : i32
    %192 = tpu.dynamic_rotate %7 by %c241_i32 dim 1 : vector<4x256xf32>, i32 -> vector<4x256xf32>
    %193 = vector.extract_strided_slice %0 {offsets = [6, 0], sizes = [1, 256], strides = [1, 1]} : vector<9x256xf32> to vector<1x256xf32>
    %194 = vector.broadcast %193 : vector<1x256xf32> to vector<4x256xf32>
    %195 = arith.mulf %192, %194 : vector<4x256xf32>
    %c24 = arith.constant 24 : index
    %c0_58 = arith.constant 0 : index
    %c0_59 = arith.constant 0 : index
    %196 = vector.load %arg5[%c24, %c0_58, %c0_59] : memref<144x4x1xf32, #tpu.memory_space<vmem>>, vector<1x4x1xf32>
    %197 = vector.shape_cast %196 : vector<1x4x1xf32> to vector<4x1xf32>
    %198 = vector.extract_strided_slice %195 {offsets = [0, 0], sizes = [1, 256], strides = [1, 1]} : vector<4x256xf32> to vector<1x256xf32>
    %199 = vector.broadcast %197 : vector<4x1xf32> to vector<4x256xf32>
    %200 = vector.broadcast %198 : vector<1x256xf32> to vector<4x256xf32>
    %201 = arith.mulf %199, %200 : vector<4x256xf32>
    %202 = arith.addf %170, %201 : vector<4x256xf32>
    %c25 = arith.constant 25 : index
    %c0_60 = arith.constant 0 : index
    %c0_61 = arith.constant 0 : index
    %203 = vector.load %arg5[%c25, %c0_60, %c0_61] : memref<144x4x1xf32, #tpu.memory_space<vmem>>, vector<1x4x1xf32>
    %204 = vector.shape_cast %203 : vector<1x4x1xf32> to vector<4x1xf32>
    %205 = vector.extract_strided_slice %195 {offsets = [1, 0], sizes = [1, 256], strides = [1, 1]} : vector<4x256xf32> to vector<1x256xf32>
    %206 = vector.broadcast %204 : vector<4x1xf32> to vector<4x256xf32>
    %207 = vector.broadcast %205 : vector<1x256xf32> to vector<4x256xf32>
    %208 = arith.mulf %206, %207 : vector<4x256xf32>
    %209 = arith.addf %177, %208 : vector<4x256xf32>
    %c26 = arith.constant 26 : index
    %c0_62 = arith.constant 0 : index
    %c0_63 = arith.constant 0 : index
    %210 = vector.load %arg5[%c26, %c0_62, %c0_63] : memref<144x4x1xf32, #tpu.memory_space<vmem>>, vector<1x4x1xf32>
    %211 = vector.shape_cast %210 : vector<1x4x1xf32> to vector<4x1xf32>
    %212 = vector.extract_strided_slice %195 {offsets = [2, 0], sizes = [1, 256], strides = [1, 1]} : vector<4x256xf32> to vector<1x256xf32>
    %213 = vector.broadcast %211 : vector<4x1xf32> to vector<4x256xf32>
    %214 = vector.broadcast %212 : vector<1x256xf32> to vector<4x256xf32>
    %215 = arith.mulf %213, %214 : vector<4x256xf32>
    %216 = arith.addf %184, %215 : vector<4x256xf32>
    %c27 = arith.constant 27 : index
    %c0_64 = arith.constant 0 : index
    %c0_65 = arith.constant 0 : index
    %217 = vector.load %arg5[%c27, %c0_64, %c0_65] : memref<144x4x1xf32, #tpu.memory_space<vmem>>, vector<1x4x1xf32>
    %218 = vector.shape_cast %217 : vector<1x4x1xf32> to vector<4x1xf32>
    %219 = vector.extract_strided_slice %195 {offsets = [3, 0], sizes = [1, 256], strides = [1, 1]} : vector<4x256xf32> to vector<1x256xf32>
    %220 = vector.broadcast %218 : vector<4x1xf32> to vector<4x256xf32>
    %221 = vector.broadcast %219 : vector<1x256xf32> to vector<4x256xf32>
    %222 = arith.mulf %220, %221 : vector<4x256xf32>
    %223 = arith.addf %191, %222 : vector<4x256xf32>
    %c240_i32 = arith.constant 240 : i32
    %224 = tpu.dynamic_rotate %7 by %c240_i32 dim 1 : vector<4x256xf32>, i32 -> vector<4x256xf32>
    %225 = vector.extract_strided_slice %0 {offsets = [7, 0], sizes = [1, 256], strides = [1, 1]} : vector<9x256xf32> to vector<1x256xf32>
    %226 = vector.broadcast %225 : vector<1x256xf32> to vector<4x256xf32>
    %227 = arith.mulf %224, %226 : vector<4x256xf32>
    %c28 = arith.constant 28 : index
    %c0_66 = arith.constant 0 : index
    %c0_67 = arith.constant 0 : index
    %228 = vector.load %arg5[%c28, %c0_66, %c0_67] : memref<144x4x1xf32, #tpu.memory_space<vmem>>, vector<1x4x1xf32>
    %229 = vector.shape_cast %228 : vector<1x4x1xf32> to vector<4x1xf32>
    %230 = vector.extract_strided_slice %227 {offsets = [0, 0], sizes = [1, 256], strides = [1, 1]} : vector<4x256xf32> to vector<1x256xf32>
    %231 = vector.broadcast %229 : vector<4x1xf32> to vector<4x256xf32>
    %232 = vector.broadcast %230 : vector<1x256xf32> to vector<4x256xf32>
    %233 = arith.mulf %231, %232 : vector<4x256xf32>
    %234 = arith.addf %202, %233 : vector<4x256xf32>
    %c29 = arith.constant 29 : index
    %c0_68 = arith.constant 0 : index
    %c0_69 = arith.constant 0 : index
    %235 = vector.load %arg5[%c29, %c0_68, %c0_69] : memref<144x4x1xf32, #tpu.memory_space<vmem>>, vector<1x4x1xf32>
    %236 = vector.shape_cast %235 : vector<1x4x1xf32> to vector<4x1xf32>
    %237 = vector.extract_strided_slice %227 {offsets = [1, 0], sizes = [1, 256], strides = [1, 1]} : vector<4x256xf32> to vector<1x256xf32>
    %238 = vector.broadcast %236 : vector<4x1xf32> to vector<4x256xf32>
    %239 = vector.broadcast %237 : vector<1x256xf32> to vector<4x256xf32>
    %240 = arith.mulf %238, %239 : vector<4x256xf32>
    %241 = arith.addf %209, %240 : vector<4x256xf32>
    %c30 = arith.constant 30 : index
    %c0_70 = arith.constant 0 : index
    %c0_71 = arith.constant 0 : index
    %242 = vector.load %arg5[%c30, %c0_70, %c0_71] : memref<144x4x1xf32, #tpu.memory_space<vmem>>, vector<1x4x1xf32>
    %243 = vector.shape_cast %242 : vector<1x4x1xf32> to vector<4x1xf32>
    %244 = vector.extract_strided_slice %227 {offsets = [2, 0], sizes = [1, 256], strides = [1, 1]} : vector<4x256xf32> to vector<1x256xf32>
    %245 = vector.broadcast %243 : vector<4x1xf32> to vector<4x256xf32>
    %246 = vector.broadcast %244 : vector<1x256xf32> to vector<4x256xf32>
    %247 = arith.mulf %245, %246 : vector<4x256xf32>
    %248 = arith.addf %216, %247 : vector<4x256xf32>
    %c31 = arith.constant 31 : index
    %c0_72 = arith.constant 0 : index
    %c0_73 = arith.constant 0 : index
    %249 = vector.load %arg5[%c31, %c0_72, %c0_73] : memref<144x4x1xf32, #tpu.memory_space<vmem>>, vector<1x4x1xf32>
    %250 = vector.shape_cast %249 : vector<1x4x1xf32> to vector<4x1xf32>
    %251 = vector.extract_strided_slice %227 {offsets = [3, 0], sizes = [1, 256], strides = [1, 1]} : vector<4x256xf32> to vector<1x256xf32>
    %252 = vector.broadcast %250 : vector<4x1xf32> to vector<4x256xf32>
    %253 = vector.broadcast %251 : vector<1x256xf32> to vector<4x256xf32>
    %254 = arith.mulf %252, %253 : vector<4x256xf32>
    %255 = arith.addf %223, %254 : vector<4x256xf32>
    %c239_i32 = arith.constant 239 : i32
    %256 = tpu.dynamic_rotate %7 by %c239_i32 dim 1 : vector<4x256xf32>, i32 -> vector<4x256xf32>
    %257 = vector.extract_strided_slice %0 {offsets = [8, 0], sizes = [1, 256], strides = [1, 1]} : vector<9x256xf32> to vector<1x256xf32>
    %258 = vector.broadcast %257 : vector<1x256xf32> to vector<4x256xf32>
    %259 = arith.mulf %256, %258 : vector<4x256xf32>
    %c32 = arith.constant 32 : index
    %c0_74 = arith.constant 0 : index
    %c0_75 = arith.constant 0 : index
    %260 = vector.load %arg5[%c32, %c0_74, %c0_75] : memref<144x4x1xf32, #tpu.memory_space<vmem>>, vector<1x4x1xf32>
    %261 = vector.shape_cast %260 : vector<1x4x1xf32> to vector<4x1xf32>
    %262 = vector.extract_strided_slice %259 {offsets = [0, 0], sizes = [1, 256], strides = [1, 1]} : vector<4x256xf32> to vector<1x256xf32>
    %263 = vector.broadcast %261 : vector<4x1xf32> to vector<4x256xf32>
    %264 = vector.broadcast %262 : vector<1x256xf32> to vector<4x256xf32>
    %265 = arith.mulf %263, %264 : vector<4x256xf32>
    %266 = arith.addf %234, %265 : vector<4x256xf32>
    %c33 = arith.constant 33 : index
    %c0_76 = arith.constant 0 : index
    %c0_77 = arith.constant 0 : index
    %267 = vector.load %arg5[%c33, %c0_76, %c0_77] : memref<144x4x1xf32, #tpu.memory_space<vmem>>, vector<1x4x1xf32>
    %268 = vector.shape_cast %267 : vector<1x4x1xf32> to vector<4x1xf32>
    %269 = vector.extract_strided_slice %259 {offsets = [1, 0], sizes = [1, 256], strides = [1, 1]} : vector<4x256xf32> to vector<1x256xf32>
    %270 = vector.broadcast %268 : vector<4x1xf32> to vector<4x256xf32>
    %271 = vector.broadcast %269 : vector<1x256xf32> to vector<4x256xf32>
    %272 = arith.mulf %270, %271 : vector<4x256xf32>
    %273 = arith.addf %241, %272 : vector<4x256xf32>
    %c34 = arith.constant 34 : index
    %c0_78 = arith.constant 0 : index
    %c0_79 = arith.constant 0 : index
    %274 = vector.load %arg5[%c34, %c0_78, %c0_79] : memref<144x4x1xf32, #tpu.memory_space<vmem>>, vector<1x4x1xf32>
    %275 = vector.shape_cast %274 : vector<1x4x1xf32> to vector<4x1xf32>
    %276 = vector.extract_strided_slice %259 {offsets = [2, 0], sizes = [1, 256], strides = [1, 1]} : vector<4x256xf32> to vector<1x256xf32>
    %277 = vector.broadcast %275 : vector<4x1xf32> to vector<4x256xf32>
    %278 = vector.broadcast %276 : vector<1x256xf32> to vector<4x256xf32>
    %279 = arith.mulf %277, %278 : vector<4x256xf32>
    %280 = arith.addf %248, %279 : vector<4x256xf32>
    %c35 = arith.constant 35 : index
    %c0_80 = arith.constant 0 : index
    %c0_81 = arith.constant 0 : index
    %281 = vector.load %arg5[%c35, %c0_80, %c0_81] : memref<144x4x1xf32, #tpu.memory_space<vmem>>, vector<1x4x1xf32>
    %282 = vector.shape_cast %281 : vector<1x4x1xf32> to vector<4x1xf32>
    %283 = vector.extract_strided_slice %259 {offsets = [3, 0], sizes = [1, 256], strides = [1, 1]} : vector<4x256xf32> to vector<1x256xf32>
    %284 = vector.broadcast %282 : vector<4x1xf32> to vector<4x256xf32>
    %285 = vector.broadcast %283 : vector<1x256xf32> to vector<4x256xf32>
    %286 = arith.mulf %284, %285 : vector<4x256xf32>
    %287 = arith.addf %255, %286 : vector<4x256xf32>
    %288 = arith.addf %266, %273 : vector<4x256xf32>
    %289 = arith.addf %280, %287 : vector<4x256xf32>
    %290 = arith.addf %288, %289 : vector<4x256xf32>
    %c0_82 = arith.constant 0 : index
    %c0_83 = arith.constant 0 : index
    %c0_84 = arith.constant 0 : index
    %291 = vector.load %arg6[%c0_82, %c0_83, %c0_84] : memref<4x4x1xf32, #tpu.memory_space<vmem>>, vector<1x4x1xf32>
    %292 = vector.shape_cast %291 : vector<1x4x1xf32> to vector<4x1xf32>
    %293 = vector.broadcast %292 : vector<4x1xf32> to vector<4x256xf32>
    %294 = arith.addf %290, %293 : vector<4x256xf32>
    %cst_85 = arith.constant 0.000000e+00 : f32
    %295 = vector.broadcast %cst_85 : f32 to vector<4x256xf32>
    %296 = arith.maximumf %294, %295 : vector<4x256xf32>
    %c17_i32_86 = arith.constant 17 : i32
    %297 = tpu.dynamic_rotate %296 by %c17_i32_86 dim 1 : vector<4x256xf32>, i32 -> vector<4x256xf32>
    %298 = vector.extract_strided_slice %0 {offsets = [0, 0], sizes = [1, 256], strides = [1, 1]} : vector<9x256xf32> to vector<1x256xf32>
    %299 = vector.broadcast %298 : vector<1x256xf32> to vector<4x256xf32>
    %300 = arith.mulf %297, %299 : vector<4x256xf32>
    %c36 = arith.constant 36 : index
    %c0_87 = arith.constant 0 : index
    %c0_88 = arith.constant 0 : index
    %301 = vector.load %arg5[%c36, %c0_87, %c0_88] : memref<144x4x1xf32, #tpu.memory_space<vmem>>, vector<1x4x1xf32>
    %302 = vector.shape_cast %301 : vector<1x4x1xf32> to vector<4x1xf32>
    %303 = vector.extract_strided_slice %300 {offsets = [0, 0], sizes = [1, 256], strides = [1, 1]} : vector<4x256xf32> to vector<1x256xf32>
    %304 = vector.broadcast %302 : vector<4x1xf32> to vector<4x256xf32>
    %305 = vector.broadcast %303 : vector<1x256xf32> to vector<4x256xf32>
    %306 = arith.mulf %304, %305 : vector<4x256xf32>
    %c37 = arith.constant 37 : index
    %c0_89 = arith.constant 0 : index
    %c0_90 = arith.constant 0 : index
    %307 = vector.load %arg5[%c37, %c0_89, %c0_90] : memref<144x4x1xf32, #tpu.memory_space<vmem>>, vector<1x4x1xf32>
    %308 = vector.shape_cast %307 : vector<1x4x1xf32> to vector<4x1xf32>
    %309 = vector.extract_strided_slice %300 {offsets = [1, 0], sizes = [1, 256], strides = [1, 1]} : vector<4x256xf32> to vector<1x256xf32>
    %310 = vector.broadcast %308 : vector<4x1xf32> to vector<4x256xf32>
    %311 = vector.broadcast %309 : vector<1x256xf32> to vector<4x256xf32>
    %312 = arith.mulf %310, %311 : vector<4x256xf32>
    %c38 = arith.constant 38 : index
    %c0_91 = arith.constant 0 : index
    %c0_92 = arith.constant 0 : index
    %313 = vector.load %arg5[%c38, %c0_91, %c0_92] : memref<144x4x1xf32, #tpu.memory_space<vmem>>, vector<1x4x1xf32>
    %314 = vector.shape_cast %313 : vector<1x4x1xf32> to vector<4x1xf32>
    %315 = vector.extract_strided_slice %300 {offsets = [2, 0], sizes = [1, 256], strides = [1, 1]} : vector<4x256xf32> to vector<1x256xf32>
    %316 = vector.broadcast %314 : vector<4x1xf32> to vector<4x256xf32>
    %317 = vector.broadcast %315 : vector<1x256xf32> to vector<4x256xf32>
    %318 = arith.mulf %316, %317 : vector<4x256xf32>
    %c39 = arith.constant 39 : index
    %c0_93 = arith.constant 0 : index
    %c0_94 = arith.constant 0 : index
    %319 = vector.load %arg5[%c39, %c0_93, %c0_94] : memref<144x4x1xf32, #tpu.memory_space<vmem>>, vector<1x4x1xf32>
    %320 = vector.shape_cast %319 : vector<1x4x1xf32> to vector<4x1xf32>
    %321 = vector.extract_strided_slice %300 {offsets = [3, 0], sizes = [1, 256], strides = [1, 1]} : vector<4x256xf32> to vector<1x256xf32>
    %322 = vector.broadcast %320 : vector<4x1xf32> to vector<4x256xf32>
    %323 = vector.broadcast %321 : vector<1x256xf32> to vector<4x256xf32>
    %324 = arith.mulf %322, %323 : vector<4x256xf32>
    %c16_i32_95 = arith.constant 16 : i32
    %325 = tpu.dynamic_rotate %296 by %c16_i32_95 dim 1 : vector<4x256xf32>, i32 -> vector<4x256xf32>
    %326 = vector.extract_strided_slice %0 {offsets = [1, 0], sizes = [1, 256], strides = [1, 1]} : vector<9x256xf32> to vector<1x256xf32>
    %327 = vector.broadcast %326 : vector<1x256xf32> to vector<4x256xf32>
    %328 = arith.mulf %325, %327 : vector<4x256xf32>
    %c40 = arith.constant 40 : index
    %c0_96 = arith.constant 0 : index
    %c0_97 = arith.constant 0 : index
    %329 = vector.load %arg5[%c40, %c0_96, %c0_97] : memref<144x4x1xf32, #tpu.memory_space<vmem>>, vector<1x4x1xf32>
    %330 = vector.shape_cast %329 : vector<1x4x1xf32> to vector<4x1xf32>
    %331 = vector.extract_strided_slice %328 {offsets = [0, 0], sizes = [1, 256], strides = [1, 1]} : vector<4x256xf32> to vector<1x256xf32>
    %332 = vector.broadcast %330 : vector<4x1xf32> to vector<4x256xf32>
    %333 = vector.broadcast %331 : vector<1x256xf32> to vector<4x256xf32>
    %334 = arith.mulf %332, %333 : vector<4x256xf32>
    %335 = arith.addf %306, %334 : vector<4x256xf32>
    %c41 = arith.constant 41 : index
    %c0_98 = arith.constant 0 : index
    %c0_99 = arith.constant 0 : index
    %336 = vector.load %arg5[%c41, %c0_98, %c0_99] : memref<144x4x1xf32, #tpu.memory_space<vmem>>, vector<1x4x1xf32>
    %337 = vector.shape_cast %336 : vector<1x4x1xf32> to vector<4x1xf32>
    %338 = vector.extract_strided_slice %328 {offsets = [1, 0], sizes = [1, 256], strides = [1, 1]} : vector<4x256xf32> to vector<1x256xf32>
    %339 = vector.broadcast %337 : vector<4x1xf32> to vector<4x256xf32>
    %340 = vector.broadcast %338 : vector<1x256xf32> to vector<4x256xf32>
    %341 = arith.mulf %339, %340 : vector<4x256xf32>
    %342 = arith.addf %312, %341 : vector<4x256xf32>
    %c42 = arith.constant 42 : index
    %c0_100 = arith.constant 0 : index
    %c0_101 = arith.constant 0 : index
    %343 = vector.load %arg5[%c42, %c0_100, %c0_101] : memref<144x4x1xf32, #tpu.memory_space<vmem>>, vector<1x4x1xf32>
    %344 = vector.shape_cast %343 : vector<1x4x1xf32> to vector<4x1xf32>
    %345 = vector.extract_strided_slice %328 {offsets = [2, 0], sizes = [1, 256], strides = [1, 1]} : vector<4x256xf32> to vector<1x256xf32>
    %346 = vector.broadcast %344 : vector<4x1xf32> to vector<4x256xf32>
    %347 = vector.broadcast %345 : vector<1x256xf32> to vector<4x256xf32>
    %348 = arith.mulf %346, %347 : vector<4x256xf32>
    %349 = arith.addf %318, %348 : vector<4x256xf32>
    %c43 = arith.constant 43 : index
    %c0_102 = arith.constant 0 : index
    %c0_103 = arith.constant 0 : index
    %350 = vector.load %arg5[%c43, %c0_102, %c0_103] : memref<144x4x1xf32, #tpu.memory_space<vmem>>, vector<1x4x1xf32>
    %351 = vector.shape_cast %350 : vector<1x4x1xf32> to vector<4x1xf32>
    %352 = vector.extract_strided_slice %328 {offsets = [3, 0], sizes = [1, 256], strides = [1, 1]} : vector<4x256xf32> to vector<1x256xf32>
    %353 = vector.broadcast %351 : vector<4x1xf32> to vector<4x256xf32>
    %354 = vector.broadcast %352 : vector<1x256xf32> to vector<4x256xf32>
    %355 = arith.mulf %353, %354 : vector<4x256xf32>
    %356 = arith.addf %324, %355 : vector<4x256xf32>
    %c15_i32_104 = arith.constant 15 : i32
    %357 = tpu.dynamic_rotate %296 by %c15_i32_104 dim 1 : vector<4x256xf32>, i32 -> vector<4x256xf32>
    %358 = vector.extract_strided_slice %0 {offsets = [2, 0], sizes = [1, 256], strides = [1, 1]} : vector<9x256xf32> to vector<1x256xf32>
    %359 = vector.broadcast %358 : vector<1x256xf32> to vector<4x256xf32>
    %360 = arith.mulf %357, %359 : vector<4x256xf32>
    %c44 = arith.constant 44 : index
    %c0_105 = arith.constant 0 : index
    %c0_106 = arith.constant 0 : index
    %361 = vector.load %arg5[%c44, %c0_105, %c0_106] : memref<144x4x1xf32, #tpu.memory_space<vmem>>, vector<1x4x1xf32>
    %362 = vector.shape_cast %361 : vector<1x4x1xf32> to vector<4x1xf32>
    %363 = vector.extract_strided_slice %360 {offsets = [0, 0], sizes = [1, 256], strides = [1, 1]} : vector<4x256xf32> to vector<1x256xf32>
    %364 = vector.broadcast %362 : vector<4x1xf32> to vector<4x256xf32>
    %365 = vector.broadcast %363 : vector<1x256xf32> to vector<4x256xf32>
    %366 = arith.mulf %364, %365 : vector<4x256xf32>
    %367 = arith.addf %335, %366 : vector<4x256xf32>
    %c45 = arith.constant 45 : index
    %c0_107 = arith.constant 0 : index
    %c0_108 = arith.constant 0 : index
    %368 = vector.load %arg5[%c45, %c0_107, %c0_108] : memref<144x4x1xf32, #tpu.memory_space<vmem>>, vector<1x4x1xf32>
    %369 = vector.shape_cast %368 : vector<1x4x1xf32> to vector<4x1xf32>
    %370 = vector.extract_strided_slice %360 {offsets = [1, 0], sizes = [1, 256], strides = [1, 1]} : vector<4x256xf32> to vector<1x256xf32>
    %371 = vector.broadcast %369 : vector<4x1xf32> to vector<4x256xf32>
    %372 = vector.broadcast %370 : vector<1x256xf32> to vector<4x256xf32>
    %373 = arith.mulf %371, %372 : vector<4x256xf32>
    %374 = arith.addf %342, %373 : vector<4x256xf32>
    %c46 = arith.constant 46 : index
    %c0_109 = arith.constant 0 : index
    %c0_110 = arith.constant 0 : index
    %375 = vector.load %arg5[%c46, %c0_109, %c0_110] : memref<144x4x1xf32, #tpu.memory_space<vmem>>, vector<1x4x1xf32>
    %376 = vector.shape_cast %375 : vector<1x4x1xf32> to vector<4x1xf32>
    %377 = vector.extract_strided_slice %360 {offsets = [2, 0], sizes = [1, 256], strides = [1, 1]} : vector<4x256xf32> to vector<1x256xf32>
    %378 = vector.broadcast %376 : vector<4x1xf32> to vector<4x256xf32>
    %379 = vector.broadcast %377 : vector<1x256xf32> to vector<4x256xf32>
    %380 = arith.mulf %378, %379 : vector<4x256xf32>
    %381 = arith.addf %349, %380 : vector<4x256xf32>
    %c47 = arith.constant 47 : index
    %c0_111 = arith.constant 0 : index
    %c0_112 = arith.constant 0 : index
    %382 = vector.load %arg5[%c47, %c0_111, %c0_112] : memref<144x4x1xf32, #tpu.memory_space<vmem>>, vector<1x4x1xf32>
    %383 = vector.shape_cast %382 : vector<1x4x1xf32> to vector<4x1xf32>
    %384 = vector.extract_strided_slice %360 {offsets = [3, 0], sizes = [1, 256], strides = [1, 1]} : vector<4x256xf32> to vector<1x256xf32>
    %385 = vector.broadcast %383 : vector<4x1xf32> to vector<4x256xf32>
    %386 = vector.broadcast %384 : vector<1x256xf32> to vector<4x256xf32>
    %387 = arith.mulf %385, %386 : vector<4x256xf32>
    %388 = arith.addf %356, %387 : vector<4x256xf32>
    %c1_i32_113 = arith.constant 1 : i32
    %389 = tpu.dynamic_rotate %296 by %c1_i32_113 dim 1 : vector<4x256xf32>, i32 -> vector<4x256xf32>
    %390 = vector.extract_strided_slice %0 {offsets = [3, 0], sizes = [1, 256], strides = [1, 1]} : vector<9x256xf32> to vector<1x256xf32>
    %391 = vector.broadcast %390 : vector<1x256xf32> to vector<4x256xf32>
    %392 = arith.mulf %389, %391 : vector<4x256xf32>
    %c48 = arith.constant 48 : index
    %c0_114 = arith.constant 0 : index
    %c0_115 = arith.constant 0 : index
    %393 = vector.load %arg5[%c48, %c0_114, %c0_115] : memref<144x4x1xf32, #tpu.memory_space<vmem>>, vector<1x4x1xf32>
    %394 = vector.shape_cast %393 : vector<1x4x1xf32> to vector<4x1xf32>
    %395 = vector.extract_strided_slice %392 {offsets = [0, 0], sizes = [1, 256], strides = [1, 1]} : vector<4x256xf32> to vector<1x256xf32>
    %396 = vector.broadcast %394 : vector<4x1xf32> to vector<4x256xf32>
    %397 = vector.broadcast %395 : vector<1x256xf32> to vector<4x256xf32>
    %398 = arith.mulf %396, %397 : vector<4x256xf32>
    %399 = arith.addf %367, %398 : vector<4x256xf32>
    %c49 = arith.constant 49 : index
    %c0_116 = arith.constant 0 : index
    %c0_117 = arith.constant 0 : index
    %400 = vector.load %arg5[%c49, %c0_116, %c0_117] : memref<144x4x1xf32, #tpu.memory_space<vmem>>, vector<1x4x1xf32>
    %401 = vector.shape_cast %400 : vector<1x4x1xf32> to vector<4x1xf32>
    %402 = vector.extract_strided_slice %392 {offsets = [1, 0], sizes = [1, 256], strides = [1, 1]} : vector<4x256xf32> to vector<1x256xf32>
    %403 = vector.broadcast %401 : vector<4x1xf32> to vector<4x256xf32>
    %404 = vector.broadcast %402 : vector<1x256xf32> to vector<4x256xf32>
    %405 = arith.mulf %403, %404 : vector<4x256xf32>
    %406 = arith.addf %374, %405 : vector<4x256xf32>
    %c50 = arith.constant 50 : index
    %c0_118 = arith.constant 0 : index
    %c0_119 = arith.constant 0 : index
    %407 = vector.load %arg5[%c50, %c0_118, %c0_119] : memref<144x4x1xf32, #tpu.memory_space<vmem>>, vector<1x4x1xf32>
    %408 = vector.shape_cast %407 : vector<1x4x1xf32> to vector<4x1xf32>
    %409 = vector.extract_strided_slice %392 {offsets = [2, 0], sizes = [1, 256], strides = [1, 1]} : vector<4x256xf32> to vector<1x256xf32>
    %410 = vector.broadcast %408 : vector<4x1xf32> to vector<4x256xf32>
    %411 = vector.broadcast %409 : vector<1x256xf32> to vector<4x256xf32>
    %412 = arith.mulf %410, %411 : vector<4x256xf32>
    %413 = arith.addf %381, %412 : vector<4x256xf32>
    %c51 = arith.constant 51 : index
    %c0_120 = arith.constant 0 : index
    %c0_121 = arith.constant 0 : index
    %414 = vector.load %arg5[%c51, %c0_120, %c0_121] : memref<144x4x1xf32, #tpu.memory_space<vmem>>, vector<1x4x1xf32>
    %415 = vector.shape_cast %414 : vector<1x4x1xf32> to vector<4x1xf32>
    %416 = vector.extract_strided_slice %392 {offsets = [3, 0], sizes = [1, 256], strides = [1, 1]} : vector<4x256xf32> to vector<1x256xf32>
    %417 = vector.broadcast %415 : vector<4x1xf32> to vector<4x256xf32>
    %418 = vector.broadcast %416 : vector<1x256xf32> to vector<4x256xf32>
    %419 = arith.mulf %417, %418 : vector<4x256xf32>
    %420 = arith.addf %388, %419 : vector<4x256xf32>
    %c52 = arith.constant 52 : index
    %c0_122 = arith.constant 0 : index
    %c0_123 = arith.constant 0 : index
    %421 = vector.load %arg5[%c52, %c0_122, %c0_123] : memref<144x4x1xf32, #tpu.memory_space<vmem>>, vector<1x4x1xf32>
    %422 = vector.shape_cast %421 : vector<1x4x1xf32> to vector<4x1xf32>
    %423 = vector.extract_strided_slice %296 {offsets = [0, 0], sizes = [1, 256], strides = [1, 1]} : vector<4x256xf32> to vector<1x256xf32>
    %424 = vector.broadcast %422 : vector<4x1xf32> to vector<4x256xf32>
    %425 = vector.broadcast %423 : vector<1x256xf32> to vector<4x256xf32>
    %426 = arith.mulf %424, %425 : vector<4x256xf32>
    %427 = arith.addf %399, %426 : vector<4x256xf32>
    %c53 = arith.constant 53 : index
    %c0_124 = arith.constant 0 : index
    %c0_125 = arith.constant 0 : index
    %428 = vector.load %arg5[%c53, %c0_124, %c0_125] : memref<144x4x1xf32, #tpu.memory_space<vmem>>, vector<1x4x1xf32>
    %429 = vector.shape_cast %428 : vector<1x4x1xf32> to vector<4x1xf32>
    %430 = vector.extract_strided_slice %296 {offsets = [1, 0], sizes = [1, 256], strides = [1, 1]} : vector<4x256xf32> to vector<1x256xf32>
    %431 = vector.broadcast %429 : vector<4x1xf32> to vector<4x256xf32>
    %432 = vector.broadcast %430 : vector<1x256xf32> to vector<4x256xf32>
    %433 = arith.mulf %431, %432 : vector<4x256xf32>
    %434 = arith.addf %406, %433 : vector<4x256xf32>
    %c54 = arith.constant 54 : index
    %c0_126 = arith.constant 0 : index
    %c0_127 = arith.constant 0 : index
    %435 = vector.load %arg5[%c54, %c0_126, %c0_127] : memref<144x4x1xf32, #tpu.memory_space<vmem>>, vector<1x4x1xf32>
    %436 = vector.shape_cast %435 : vector<1x4x1xf32> to vector<4x1xf32>
    %437 = vector.extract_strided_slice %296 {offsets = [2, 0], sizes = [1, 256], strides = [1, 1]} : vector<4x256xf32> to vector<1x256xf32>
    %438 = vector.broadcast %436 : vector<4x1xf32> to vector<4x256xf32>
    %439 = vector.broadcast %437 : vector<1x256xf32> to vector<4x256xf32>
    %440 = arith.mulf %438, %439 : vector<4x256xf32>
    %441 = arith.addf %413, %440 : vector<4x256xf32>
    %c55 = arith.constant 55 : index
    %c0_128 = arith.constant 0 : index
    %c0_129 = arith.constant 0 : index
    %442 = vector.load %arg5[%c55, %c0_128, %c0_129] : memref<144x4x1xf32, #tpu.memory_space<vmem>>, vector<1x4x1xf32>
    %443 = vector.shape_cast %442 : vector<1x4x1xf32> to vector<4x1xf32>
    %444 = vector.extract_strided_slice %296 {offsets = [3, 0], sizes = [1, 256], strides = [1, 1]} : vector<4x256xf32> to vector<1x256xf32>
    %445 = vector.broadcast %443 : vector<4x1xf32> to vector<4x256xf32>
    %446 = vector.broadcast %444 : vector<1x256xf32> to vector<4x256xf32>
    %447 = arith.mulf %445, %446 : vector<4x256xf32>
    %448 = arith.addf %420, %447 : vector<4x256xf32>
    %c255_i32_130 = arith.constant 255 : i32
    %449 = tpu.dynamic_rotate %296 by %c255_i32_130 dim 1 : vector<4x256xf32>, i32 -> vector<4x256xf32>
    %450 = vector.extract_strided_slice %0 {offsets = [5, 0], sizes = [1, 256], strides = [1, 1]} : vector<9x256xf32> to vector<1x256xf32>
    %451 = vector.broadcast %450 : vector<1x256xf32> to vector<4x256xf32>
    %452 = arith.mulf %449, %451 : vector<4x256xf32>
    %c56 = arith.constant 56 : index
    %c0_131 = arith.constant 0 : index
    %c0_132 = arith.constant 0 : index
    %453 = vector.load %arg5[%c56, %c0_131, %c0_132] : memref<144x4x1xf32, #tpu.memory_space<vmem>>, vector<1x4x1xf32>
    %454 = vector.shape_cast %453 : vector<1x4x1xf32> to vector<4x1xf32>
    %455 = vector.extract_strided_slice %452 {offsets = [0, 0], sizes = [1, 256], strides = [1, 1]} : vector<4x256xf32> to vector<1x256xf32>
    %456 = vector.broadcast %454 : vector<4x1xf32> to vector<4x256xf32>
    %457 = vector.broadcast %455 : vector<1x256xf32> to vector<4x256xf32>
    %458 = arith.mulf %456, %457 : vector<4x256xf32>
    %459 = arith.addf %427, %458 : vector<4x256xf32>
    %c57 = arith.constant 57 : index
    %c0_133 = arith.constant 0 : index
    %c0_134 = arith.constant 0 : index
    %460 = vector.load %arg5[%c57, %c0_133, %c0_134] : memref<144x4x1xf32, #tpu.memory_space<vmem>>, vector<1x4x1xf32>
    %461 = vector.shape_cast %460 : vector<1x4x1xf32> to vector<4x1xf32>
    %462 = vector.extract_strided_slice %452 {offsets = [1, 0], sizes = [1, 256], strides = [1, 1]} : vector<4x256xf32> to vector<1x256xf32>
    %463 = vector.broadcast %461 : vector<4x1xf32> to vector<4x256xf32>
    %464 = vector.broadcast %462 : vector<1x256xf32> to vector<4x256xf32>
    %465 = arith.mulf %463, %464 : vector<4x256xf32>
    %466 = arith.addf %434, %465 : vector<4x256xf32>
    %c58 = arith.constant 58 : index
    %c0_135 = arith.constant 0 : index
    %c0_136 = arith.constant 0 : index
    %467 = vector.load %arg5[%c58, %c0_135, %c0_136] : memref<144x4x1xf32, #tpu.memory_space<vmem>>, vector<1x4x1xf32>
    %468 = vector.shape_cast %467 : vector<1x4x1xf32> to vector<4x1xf32>
    %469 = vector.extract_strided_slice %452 {offsets = [2, 0], sizes = [1, 256], strides = [1, 1]} : vector<4x256xf32> to vector<1x256xf32>
    %470 = vector.broadcast %468 : vector<4x1xf32> to vector<4x256xf32>
    %471 = vector.broadcast %469 : vector<1x256xf32> to vector<4x256xf32>
    %472 = arith.mulf %470, %471 : vector<4x256xf32>
    %473 = arith.addf %441, %472 : vector<4x256xf32>
    %c59 = arith.constant 59 : index
    %c0_137 = arith.constant 0 : index
    %c0_138 = arith.constant 0 : index
    %474 = vector.load %arg5[%c59, %c0_137, %c0_138] : memref<144x4x1xf32, #tpu.memory_space<vmem>>, vector<1x4x1xf32>
    %475 = vector.shape_cast %474 : vector<1x4x1xf32> to vector<4x1xf32>
    %476 = vector.extract_strided_slice %452 {offsets = [3, 0], sizes = [1, 256], strides = [1, 1]} : vector<4x256xf32> to vector<1x256xf32>
    %477 = vector.broadcast %475 : vector<4x1xf32> to vector<4x256xf32>
    %478 = vector.broadcast %476 : vector<1x256xf32> to vector<4x256xf32>
    %479 = arith.mulf %477, %478 : vector<4x256xf32>
    %480 = arith.addf %448, %479 : vector<4x256xf32>
    %c241_i32_139 = arith.constant 241 : i32
    %481 = tpu.dynamic_rotate %296 by %c241_i32_139 dim 1 : vector<4x256xf32>, i32 -> vector<4x256xf32>
    %482 = vector.extract_strided_slice %0 {offsets = [6, 0], sizes = [1, 256], strides = [1, 1]} : vector<9x256xf32> to vector<1x256xf32>
    %483 = vector.broadcast %482 : vector<1x256xf32> to vector<4x256xf32>
    %484 = arith.mulf %481, %483 : vector<4x256xf32>
    %c60 = arith.constant 60 : index
    %c0_140 = arith.constant 0 : index
    %c0_141 = arith.constant 0 : index
    %485 = vector.load %arg5[%c60, %c0_140, %c0_141] : memref<144x4x1xf32, #tpu.memory_space<vmem>>, vector<1x4x1xf32>
    %486 = vector.shape_cast %485 : vector<1x4x1xf32> to vector<4x1xf32>
    %487 = vector.extract_strided_slice %484 {offsets = [0, 0], sizes = [1, 256], strides = [1, 1]} : vector<4x256xf32> to vector<1x256xf32>
    %488 = vector.broadcast %486 : vector<4x1xf32> to vector<4x256xf32>
    %489 = vector.broadcast %487 : vector<1x256xf32> to vector<4x256xf32>
    %490 = arith.mulf %488, %489 : vector<4x256xf32>
    %491 = arith.addf %459, %490 : vector<4x256xf32>
    %c61 = arith.constant 61 : index
    %c0_142 = arith.constant 0 : index
    %c0_143 = arith.constant 0 : index
    %492 = vector.load %arg5[%c61, %c0_142, %c0_143] : memref<144x4x1xf32, #tpu.memory_space<vmem>>, vector<1x4x1xf32>
    %493 = vector.shape_cast %492 : vector<1x4x1xf32> to vector<4x1xf32>
    %494 = vector.extract_strided_slice %484 {offsets = [1, 0], sizes = [1, 256], strides = [1, 1]} : vector<4x256xf32> to vector<1x256xf32>
    %495 = vector.broadcast %493 : vector<4x1xf32> to vector<4x256xf32>
    %496 = vector.broadcast %494 : vector<1x256xf32> to vector<4x256xf32>
    %497 = arith.mulf %495, %496 : vector<4x256xf32>
    %498 = arith.addf %466, %497 : vector<4x256xf32>
    %c62 = arith.constant 62 : index
    %c0_144 = arith.constant 0 : index
    %c0_145 = arith.constant 0 : index
    %499 = vector.load %arg5[%c62, %c0_144, %c0_145] : memref<144x4x1xf32, #tpu.memory_space<vmem>>, vector<1x4x1xf32>
    %500 = vector.shape_cast %499 : vector<1x4x1xf32> to vector<4x1xf32>
    %501 = vector.extract_strided_slice %484 {offsets = [2, 0], sizes = [1, 256], strides = [1, 1]} : vector<4x256xf32> to vector<1x256xf32>
    %502 = vector.broadcast %500 : vector<4x1xf32> to vector<4x256xf32>
    %503 = vector.broadcast %501 : vector<1x256xf32> to vector<4x256xf32>
    %504 = arith.mulf %502, %503 : vector<4x256xf32>
    %505 = arith.addf %473, %504 : vector<4x256xf32>
    %c63 = arith.constant 63 : index
    %c0_146 = arith.constant 0 : index
    %c0_147 = arith.constant 0 : index
    %506 = vector.load %arg5[%c63, %c0_146, %c0_147] : memref<144x4x1xf32, #tpu.memory_space<vmem>>, vector<1x4x1xf32>
    %507 = vector.shape_cast %506 : vector<1x4x1xf32> to vector<4x1xf32>
    %508 = vector.extract_strided_slice %484 {offsets = [3, 0], sizes = [1, 256], strides = [1, 1]} : vector<4x256xf32> to vector<1x256xf32>
    %509 = vector.broadcast %507 : vector<4x1xf32> to vector<4x256xf32>
    %510 = vector.broadcast %508 : vector<1x256xf32> to vector<4x256xf32>
    %511 = arith.mulf %509, %510 : vector<4x256xf32>
    %512 = arith.addf %480, %511 : vector<4x256xf32>
    %c240_i32_148 = arith.constant 240 : i32
    %513 = tpu.dynamic_rotate %296 by %c240_i32_148 dim 1 : vector<4x256xf32>, i32 -> vector<4x256xf32>
    %514 = vector.extract_strided_slice %0 {offsets = [7, 0], sizes = [1, 256], strides = [1, 1]} : vector<9x256xf32> to vector<1x256xf32>
    %515 = vector.broadcast %514 : vector<1x256xf32> to vector<4x256xf32>
    %516 = arith.mulf %513, %515 : vector<4x256xf32>
    %c64 = arith.constant 64 : index
    %c0_149 = arith.constant 0 : index
    %c0_150 = arith.constant 0 : index
    %517 = vector.load %arg5[%c64, %c0_149, %c0_150] : memref<144x4x1xf32, #tpu.memory_space<vmem>>, vector<1x4x1xf32>
    %518 = vector.shape_cast %517 : vector<1x4x1xf32> to vector<4x1xf32>
    %519 = vector.extract_strided_slice %516 {offsets = [0, 0], sizes = [1, 256], strides = [1, 1]} : vector<4x256xf32> to vector<1x256xf32>
    %520 = vector.broadcast %518 : vector<4x1xf32> to vector<4x256xf32>
    %521 = vector.broadcast %519 : vector<1x256xf32> to vector<4x256xf32>
    %522 = arith.mulf %520, %521 : vector<4x256xf32>
    %523 = arith.addf %491, %522 : vector<4x256xf32>
    %c65 = arith.constant 65 : index
    %c0_151 = arith.constant 0 : index
    %c0_152 = arith.constant 0 : index
    %524 = vector.load %arg5[%c65, %c0_151, %c0_152] : memref<144x4x1xf32, #tpu.memory_space<vmem>>, vector<1x4x1xf32>
    %525 = vector.shape_cast %524 : vector<1x4x1xf32> to vector<4x1xf32>
    %526 = vector.extract_strided_slice %516 {offsets = [1, 0], sizes = [1, 256], strides = [1, 1]} : vector<4x256xf32> to vector<1x256xf32>
    %527 = vector.broadcast %525 : vector<4x1xf32> to vector<4x256xf32>
    %528 = vector.broadcast %526 : vector<1x256xf32> to vector<4x256xf32>
    %529 = arith.mulf %527, %528 : vector<4x256xf32>
    %530 = arith.addf %498, %529 : vector<4x256xf32>
    %c66 = arith.constant 66 : index
    %c0_153 = arith.constant 0 : index
    %c0_154 = arith.constant 0 : index
    %531 = vector.load %arg5[%c66, %c0_153, %c0_154] : memref<144x4x1xf32, #tpu.memory_space<vmem>>, vector<1x4x1xf32>
    %532 = vector.shape_cast %531 : vector<1x4x1xf32> to vector<4x1xf32>
    %533 = vector.extract_strided_slice %516 {offsets = [2, 0], sizes = [1, 256], strides = [1, 1]} : vector<4x256xf32> to vector<1x256xf32>
    %534 = vector.broadcast %532 : vector<4x1xf32> to vector<4x256xf32>
    %535 = vector.broadcast %533 : vector<1x256xf32> to vector<4x256xf32>
    %536 = arith.mulf %534, %535 : vector<4x256xf32>
    %537 = arith.addf %505, %536 : vector<4x256xf32>
    %c67 = arith.constant 67 : index
    %c0_155 = arith.constant 0 : index
    %c0_156 = arith.constant 0 : index
    %538 = vector.load %arg5[%c67, %c0_155, %c0_156] : memref<144x4x1xf32, #tpu.memory_space<vmem>>, vector<1x4x1xf32>
    %539 = vector.shape_cast %538 : vector<1x4x1xf32> to vector<4x1xf32>
    %540 = vector.extract_strided_slice %516 {offsets = [3, 0], sizes = [1, 256], strides = [1, 1]} : vector<4x256xf32> to vector<1x256xf32>
    %541 = vector.broadcast %539 : vector<4x1xf32> to vector<4x256xf32>
    %542 = vector.broadcast %540 : vector<1x256xf32> to vector<4x256xf32>
    %543 = arith.mulf %541, %542 : vector<4x256xf32>
    %544 = arith.addf %512, %543 : vector<4x256xf32>
    %c239_i32_157 = arith.constant 239 : i32
    %545 = tpu.dynamic_rotate %296 by %c239_i32_157 dim 1 : vector<4x256xf32>, i32 -> vector<4x256xf32>
    %546 = vector.extract_strided_slice %0 {offsets = [8, 0], sizes = [1, 256], strides = [1, 1]} : vector<9x256xf32> to vector<1x256xf32>
    %547 = vector.broadcast %546 : vector<1x256xf32> to vector<4x256xf32>
    %548 = arith.mulf %545, %547 : vector<4x256xf32>
    %c68 = arith.constant 68 : index
    %c0_158 = arith.constant 0 : index
    %c0_159 = arith.constant 0 : index
    %549 = vector.load %arg5[%c68, %c0_158, %c0_159] : memref<144x4x1xf32, #tpu.memory_space<vmem>>, vector<1x4x1xf32>
    %550 = vector.shape_cast %549 : vector<1x4x1xf32> to vector<4x1xf32>
    %551 = vector.extract_strided_slice %548 {offsets = [0, 0], sizes = [1, 256], strides = [1, 1]} : vector<4x256xf32> to vector<1x256xf32>
    %552 = vector.broadcast %550 : vector<4x1xf32> to vector<4x256xf32>
    %553 = vector.broadcast %551 : vector<1x256xf32> to vector<4x256xf32>
    %554 = arith.mulf %552, %553 : vector<4x256xf32>
    %555 = arith.addf %523, %554 : vector<4x256xf32>
    %c69 = arith.constant 69 : index
    %c0_160 = arith.constant 0 : index
    %c0_161 = arith.constant 0 : index
    %556 = vector.load %arg5[%c69, %c0_160, %c0_161] : memref<144x4x1xf32, #tpu.memory_space<vmem>>, vector<1x4x1xf32>
    %557 = vector.shape_cast %556 : vector<1x4x1xf32> to vector<4x1xf32>
    %558 = vector.extract_strided_slice %548 {offsets = [1, 0], sizes = [1, 256], strides = [1, 1]} : vector<4x256xf32> to vector<1x256xf32>
    %559 = vector.broadcast %557 : vector<4x1xf32> to vector<4x256xf32>
    %560 = vector.broadcast %558 : vector<1x256xf32> to vector<4x256xf32>
    %561 = arith.mulf %559, %560 : vector<4x256xf32>
    %562 = arith.addf %530, %561 : vector<4x256xf32>
    %c70 = arith.constant 70 : index
    %c0_162 = arith.constant 0 : index
    %c0_163 = arith.constant 0 : index
    %563 = vector.load %arg5[%c70, %c0_162, %c0_163] : memref<144x4x1xf32, #tpu.memory_space<vmem>>, vector<1x4x1xf32>
    %564 = vector.shape_cast %563 : vector<1x4x1xf32> to vector<4x1xf32>
    %565 = vector.extract_strided_slice %548 {offsets = [2, 0], sizes = [1, 256], strides = [1, 1]} : vector<4x256xf32> to vector<1x256xf32>
    %566 = vector.broadcast %564 : vector<4x1xf32> to vector<4x256xf32>
    %567 = vector.broadcast %565 : vector<1x256xf32> to vector<4x256xf32>
    %568 = arith.mulf %566, %567 : vector<4x256xf32>
    %569 = arith.addf %537, %568 : vector<4x256xf32>
    %c71 = arith.constant 71 : index
    %c0_164 = arith.constant 0 : index
    %c0_165 = arith.constant 0 : index
    %570 = vector.load %arg5[%c71, %c0_164, %c0_165] : memref<144x4x1xf32, #tpu.memory_space<vmem>>, vector<1x4x1xf32>
    %571 = vector.shape_cast %570 : vector<1x4x1xf32> to vector<4x1xf32>
    %572 = vector.extract_strided_slice %548 {offsets = [3, 0], sizes = [1, 256], strides = [1, 1]} : vector<4x256xf32> to vector<1x256xf32>
    %573 = vector.broadcast %571 : vector<4x1xf32> to vector<4x256xf32>
    %574 = vector.broadcast %572 : vector<1x256xf32> to vector<4x256xf32>
    %575 = arith.mulf %573, %574 : vector<4x256xf32>
    %576 = arith.addf %544, %575 : vector<4x256xf32>
    %577 = arith.addf %555, %562 : vector<4x256xf32>
    %578 = arith.addf %569, %576 : vector<4x256xf32>
    %579 = arith.addf %577, %578 : vector<4x256xf32>
    %c1_166 = arith.constant 1 : index
    %c0_167 = arith.constant 0 : index
    %c0_168 = arith.constant 0 : index
    %580 = vector.load %arg6[%c1_166, %c0_167, %c0_168] : memref<4x4x1xf32, #tpu.memory_space<vmem>>, vector<1x4x1xf32>
    %581 = vector.shape_cast %580 : vector<1x4x1xf32> to vector<4x1xf32>
    %582 = vector.broadcast %581 : vector<4x1xf32> to vector<4x256xf32>
    %583 = arith.addf %579, %582 : vector<4x256xf32>
    %584 = arith.addf %583, %5 : vector<4x256xf32>
    %585 = arith.addf %3, %584 : vector<4x256xf32>
    %cst_169 = arith.constant 0.000000e+00 : f32
    %586 = vector.broadcast %cst_169 : f32 to vector<4x256xf32>
    %587 = arith.maximumf %585, %586 : vector<4x256xf32>
    %c17_i32_170 = arith.constant 17 : i32
    %588 = tpu.dynamic_rotate %587 by %c17_i32_170 dim 1 : vector<4x256xf32>, i32 -> vector<4x256xf32>
    %589 = vector.extract_strided_slice %0 {offsets = [0, 0], sizes = [1, 256], strides = [1, 1]} : vector<9x256xf32> to vector<1x256xf32>
    %590 = vector.broadcast %589 : vector<1x256xf32> to vector<4x256xf32>
    %591 = arith.mulf %588, %590 : vector<4x256xf32>
    %c72 = arith.constant 72 : index
    %c0_171 = arith.constant 0 : index
    %c0_172 = arith.constant 0 : index
    %592 = vector.load %arg5[%c72, %c0_171, %c0_172] : memref<144x4x1xf32, #tpu.memory_space<vmem>>, vector<1x4x1xf32>
    %593 = vector.shape_cast %592 : vector<1x4x1xf32> to vector<4x1xf32>
    %594 = vector.extract_strided_slice %591 {offsets = [0, 0], sizes = [1, 256], strides = [1, 1]} : vector<4x256xf32> to vector<1x256xf32>
    %595 = vector.broadcast %593 : vector<4x1xf32> to vector<4x256xf32>
    %596 = vector.broadcast %594 : vector<1x256xf32> to vector<4x256xf32>
    %597 = arith.mulf %595, %596 : vector<4x256xf32>
    %c73 = arith.constant 73 : index
    %c0_173 = arith.constant 0 : index
    %c0_174 = arith.constant 0 : index
    %598 = vector.load %arg5[%c73, %c0_173, %c0_174] : memref<144x4x1xf32, #tpu.memory_space<vmem>>, vector<1x4x1xf32>
    %599 = vector.shape_cast %598 : vector<1x4x1xf32> to vector<4x1xf32>
    %600 = vector.extract_strided_slice %591 {offsets = [1, 0], sizes = [1, 256], strides = [1, 1]} : vector<4x256xf32> to vector<1x256xf32>
    %601 = vector.broadcast %599 : vector<4x1xf32> to vector<4x256xf32>
    %602 = vector.broadcast %600 : vector<1x256xf32> to vector<4x256xf32>
    %603 = arith.mulf %601, %602 : vector<4x256xf32>
    %c74 = arith.constant 74 : index
    %c0_175 = arith.constant 0 : index
    %c0_176 = arith.constant 0 : index
    %604 = vector.load %arg5[%c74, %c0_175, %c0_176] : memref<144x4x1xf32, #tpu.memory_space<vmem>>, vector<1x4x1xf32>
    %605 = vector.shape_cast %604 : vector<1x4x1xf32> to vector<4x1xf32>
    %606 = vector.extract_strided_slice %591 {offsets = [2, 0], sizes = [1, 256], strides = [1, 1]} : vector<4x256xf32> to vector<1x256xf32>
    %607 = vector.broadcast %605 : vector<4x1xf32> to vector<4x256xf32>
    %608 = vector.broadcast %606 : vector<1x256xf32> to vector<4x256xf32>
    %609 = arith.mulf %607, %608 : vector<4x256xf32>
    %c75 = arith.constant 75 : index
    %c0_177 = arith.constant 0 : index
    %c0_178 = arith.constant 0 : index
    %610 = vector.load %arg5[%c75, %c0_177, %c0_178] : memref<144x4x1xf32, #tpu.memory_space<vmem>>, vector<1x4x1xf32>
    %611 = vector.shape_cast %610 : vector<1x4x1xf32> to vector<4x1xf32>
    %612 = vector.extract_strided_slice %591 {offsets = [3, 0], sizes = [1, 256], strides = [1, 1]} : vector<4x256xf32> to vector<1x256xf32>
    %613 = vector.broadcast %611 : vector<4x1xf32> to vector<4x256xf32>
    %614 = vector.broadcast %612 : vector<1x256xf32> to vector<4x256xf32>
    %615 = arith.mulf %613, %614 : vector<4x256xf32>
    %c16_i32_179 = arith.constant 16 : i32
    %616 = tpu.dynamic_rotate %587 by %c16_i32_179 dim 1 : vector<4x256xf32>, i32 -> vector<4x256xf32>
    %617 = vector.extract_strided_slice %0 {offsets = [1, 0], sizes = [1, 256], strides = [1, 1]} : vector<9x256xf32> to vector<1x256xf32>
    %618 = vector.broadcast %617 : vector<1x256xf32> to vector<4x256xf32>
    %619 = arith.mulf %616, %618 : vector<4x256xf32>
    %c76 = arith.constant 76 : index
    %c0_180 = arith.constant 0 : index
    %c0_181 = arith.constant 0 : index
    %620 = vector.load %arg5[%c76, %c0_180, %c0_181] : memref<144x4x1xf32, #tpu.memory_space<vmem>>, vector<1x4x1xf32>
    %621 = vector.shape_cast %620 : vector<1x4x1xf32> to vector<4x1xf32>
    %622 = vector.extract_strided_slice %619 {offsets = [0, 0], sizes = [1, 256], strides = [1, 1]} : vector<4x256xf32> to vector<1x256xf32>
    %623 = vector.broadcast %621 : vector<4x1xf32> to vector<4x256xf32>
    %624 = vector.broadcast %622 : vector<1x256xf32> to vector<4x256xf32>
    %625 = arith.mulf %623, %624 : vector<4x256xf32>
    %626 = arith.addf %597, %625 : vector<4x256xf32>
    %c77 = arith.constant 77 : index
    %c0_182 = arith.constant 0 : index
    %c0_183 = arith.constant 0 : index
    %627 = vector.load %arg5[%c77, %c0_182, %c0_183] : memref<144x4x1xf32, #tpu.memory_space<vmem>>, vector<1x4x1xf32>
    %628 = vector.shape_cast %627 : vector<1x4x1xf32> to vector<4x1xf32>
    %629 = vector.extract_strided_slice %619 {offsets = [1, 0], sizes = [1, 256], strides = [1, 1]} : vector<4x256xf32> to vector<1x256xf32>
    %630 = vector.broadcast %628 : vector<4x1xf32> to vector<4x256xf32>
    %631 = vector.broadcast %629 : vector<1x256xf32> to vector<4x256xf32>
    %632 = arith.mulf %630, %631 : vector<4x256xf32>
    %633 = arith.addf %603, %632 : vector<4x256xf32>
    %c78 = arith.constant 78 : index
    %c0_184 = arith.constant 0 : index
    %c0_185 = arith.constant 0 : index
    %634 = vector.load %arg5[%c78, %c0_184, %c0_185] : memref<144x4x1xf32, #tpu.memory_space<vmem>>, vector<1x4x1xf32>
    %635 = vector.shape_cast %634 : vector<1x4x1xf32> to vector<4x1xf32>
    %636 = vector.extract_strided_slice %619 {offsets = [2, 0], sizes = [1, 256], strides = [1, 1]} : vector<4x256xf32> to vector<1x256xf32>
    %637 = vector.broadcast %635 : vector<4x1xf32> to vector<4x256xf32>
    %638 = vector.broadcast %636 : vector<1x256xf32> to vector<4x256xf32>
    %639 = arith.mulf %637, %638 : vector<4x256xf32>
    %640 = arith.addf %609, %639 : vector<4x256xf32>
    %c79 = arith.constant 79 : index
    %c0_186 = arith.constant 0 : index
    %c0_187 = arith.constant 0 : index
    %641 = vector.load %arg5[%c79, %c0_186, %c0_187] : memref<144x4x1xf32, #tpu.memory_space<vmem>>, vector<1x4x1xf32>
    %642 = vector.shape_cast %641 : vector<1x4x1xf32> to vector<4x1xf32>
    %643 = vector.extract_strided_slice %619 {offsets = [3, 0], sizes = [1, 256], strides = [1, 1]} : vector<4x256xf32> to vector<1x256xf32>
    %644 = vector.broadcast %642 : vector<4x1xf32> to vector<4x256xf32>
    %645 = vector.broadcast %643 : vector<1x256xf32> to vector<4x256xf32>
    %646 = arith.mulf %644, %645 : vector<4x256xf32>
    %647 = arith.addf %615, %646 : vector<4x256xf32>
    %c15_i32_188 = arith.constant 15 : i32
    %648 = tpu.dynamic_rotate %587 by %c15_i32_188 dim 1 : vector<4x256xf32>, i32 -> vector<4x256xf32>
    %649 = vector.extract_strided_slice %0 {offsets = [2, 0], sizes = [1, 256], strides = [1, 1]} : vector<9x256xf32> to vector<1x256xf32>
    %650 = vector.broadcast %649 : vector<1x256xf32> to vector<4x256xf32>
    %651 = arith.mulf %648, %650 : vector<4x256xf32>
    %c80 = arith.constant 80 : index
    %c0_189 = arith.constant 0 : index
    %c0_190 = arith.constant 0 : index
    %652 = vector.load %arg5[%c80, %c0_189, %c0_190] : memref<144x4x1xf32, #tpu.memory_space<vmem>>, vector<1x4x1xf32>
    %653 = vector.shape_cast %652 : vector<1x4x1xf32> to vector<4x1xf32>
    %654 = vector.extract_strided_slice %651 {offsets = [0, 0], sizes = [1, 256], strides = [1, 1]} : vector<4x256xf32> to vector<1x256xf32>
    %655 = vector.broadcast %653 : vector<4x1xf32> to vector<4x256xf32>
    %656 = vector.broadcast %654 : vector<1x256xf32> to vector<4x256xf32>
    %657 = arith.mulf %655, %656 : vector<4x256xf32>
    %658 = arith.addf %626, %657 : vector<4x256xf32>
    %c81 = arith.constant 81 : index
    %c0_191 = arith.constant 0 : index
    %c0_192 = arith.constant 0 : index
    %659 = vector.load %arg5[%c81, %c0_191, %c0_192] : memref<144x4x1xf32, #tpu.memory_space<vmem>>, vector<1x4x1xf32>
    %660 = vector.shape_cast %659 : vector<1x4x1xf32> to vector<4x1xf32>
    %661 = vector.extract_strided_slice %651 {offsets = [1, 0], sizes = [1, 256], strides = [1, 1]} : vector<4x256xf32> to vector<1x256xf32>
    %662 = vector.broadcast %660 : vector<4x1xf32> to vector<4x256xf32>
    %663 = vector.broadcast %661 : vector<1x256xf32> to vector<4x256xf32>
    %664 = arith.mulf %662, %663 : vector<4x256xf32>
    %665 = arith.addf %633, %664 : vector<4x256xf32>
    %c82 = arith.constant 82 : index
    %c0_193 = arith.constant 0 : index
    %c0_194 = arith.constant 0 : index
    %666 = vector.load %arg5[%c82, %c0_193, %c0_194] : memref<144x4x1xf32, #tpu.memory_space<vmem>>, vector<1x4x1xf32>
    %667 = vector.shape_cast %666 : vector<1x4x1xf32> to vector<4x1xf32>
    %668 = vector.extract_strided_slice %651 {offsets = [2, 0], sizes = [1, 256], strides = [1, 1]} : vector<4x256xf32> to vector<1x256xf32>
    %669 = vector.broadcast %667 : vector<4x1xf32> to vector<4x256xf32>
    %670 = vector.broadcast %668 : vector<1x256xf32> to vector<4x256xf32>
    %671 = arith.mulf %669, %670 : vector<4x256xf32>
    %672 = arith.addf %640, %671 : vector<4x256xf32>
    %c83 = arith.constant 83 : index
    %c0_195 = arith.constant 0 : index
    %c0_196 = arith.constant 0 : index
    %673 = vector.load %arg5[%c83, %c0_195, %c0_196] : memref<144x4x1xf32, #tpu.memory_space<vmem>>, vector<1x4x1xf32>
    %674 = vector.shape_cast %673 : vector<1x4x1xf32> to vector<4x1xf32>
    %675 = vector.extract_strided_slice %651 {offsets = [3, 0], sizes = [1, 256], strides = [1, 1]} : vector<4x256xf32> to vector<1x256xf32>
    %676 = vector.broadcast %674 : vector<4x1xf32> to vector<4x256xf32>
    %677 = vector.broadcast %675 : vector<1x256xf32> to vector<4x256xf32>
    %678 = arith.mulf %676, %677 : vector<4x256xf32>
    %679 = arith.addf %647, %678 : vector<4x256xf32>
    %c1_i32_197 = arith.constant 1 : i32
    %680 = tpu.dynamic_rotate %587 by %c1_i32_197 dim 1 : vector<4x256xf32>, i32 -> vector<4x256xf32>
    %681 = vector.extract_strided_slice %0 {offsets = [3, 0], sizes = [1, 256], strides = [1, 1]} : vector<9x256xf32> to vector<1x256xf32>
    %682 = vector.broadcast %681 : vector<1x256xf32> to vector<4x256xf32>
    %683 = arith.mulf %680, %682 : vector<4x256xf32>
    %c84 = arith.constant 84 : index
    %c0_198 = arith.constant 0 : index
    %c0_199 = arith.constant 0 : index
    %684 = vector.load %arg5[%c84, %c0_198, %c0_199] : memref<144x4x1xf32, #tpu.memory_space<vmem>>, vector<1x4x1xf32>
    %685 = vector.shape_cast %684 : vector<1x4x1xf32> to vector<4x1xf32>
    %686 = vector.extract_strided_slice %683 {offsets = [0, 0], sizes = [1, 256], strides = [1, 1]} : vector<4x256xf32> to vector<1x256xf32>
    %687 = vector.broadcast %685 : vector<4x1xf32> to vector<4x256xf32>
    %688 = vector.broadcast %686 : vector<1x256xf32> to vector<4x256xf32>
    %689 = arith.mulf %687, %688 : vector<4x256xf32>
    %690 = arith.addf %658, %689 : vector<4x256xf32>
    %c85 = arith.constant 85 : index
    %c0_200 = arith.constant 0 : index
    %c0_201 = arith.constant 0 : index
    %691 = vector.load %arg5[%c85, %c0_200, %c0_201] : memref<144x4x1xf32, #tpu.memory_space<vmem>>, vector<1x4x1xf32>
    %692 = vector.shape_cast %691 : vector<1x4x1xf32> to vector<4x1xf32>
    %693 = vector.extract_strided_slice %683 {offsets = [1, 0], sizes = [1, 256], strides = [1, 1]} : vector<4x256xf32> to vector<1x256xf32>
    %694 = vector.broadcast %692 : vector<4x1xf32> to vector<4x256xf32>
    %695 = vector.broadcast %693 : vector<1x256xf32> to vector<4x256xf32>
    %696 = arith.mulf %694, %695 : vector<4x256xf32>
    %697 = arith.addf %665, %696 : vector<4x256xf32>
    %c86 = arith.constant 86 : index
    %c0_202 = arith.constant 0 : index
    %c0_203 = arith.constant 0 : index
    %698 = vector.load %arg5[%c86, %c0_202, %c0_203] : memref<144x4x1xf32, #tpu.memory_space<vmem>>, vector<1x4x1xf32>
    %699 = vector.shape_cast %698 : vector<1x4x1xf32> to vector<4x1xf32>
    %700 = vector.extract_strided_slice %683 {offsets = [2, 0], sizes = [1, 256], strides = [1, 1]} : vector<4x256xf32> to vector<1x256xf32>
    %701 = vector.broadcast %699 : vector<4x1xf32> to vector<4x256xf32>
    %702 = vector.broadcast %700 : vector<1x256xf32> to vector<4x256xf32>
    %703 = arith.mulf %701, %702 : vector<4x256xf32>
    %704 = arith.addf %672, %703 : vector<4x256xf32>
    %c87 = arith.constant 87 : index
    %c0_204 = arith.constant 0 : index
    %c0_205 = arith.constant 0 : index
    %705 = vector.load %arg5[%c87, %c0_204, %c0_205] : memref<144x4x1xf32, #tpu.memory_space<vmem>>, vector<1x4x1xf32>
    %706 = vector.shape_cast %705 : vector<1x4x1xf32> to vector<4x1xf32>
    %707 = vector.extract_strided_slice %683 {offsets = [3, 0], sizes = [1, 256], strides = [1, 1]} : vector<4x256xf32> to vector<1x256xf32>
    %708 = vector.broadcast %706 : vector<4x1xf32> to vector<4x256xf32>
    %709 = vector.broadcast %707 : vector<1x256xf32> to vector<4x256xf32>
    %710 = arith.mulf %708, %709 : vector<4x256xf32>
    %711 = arith.addf %679, %710 : vector<4x256xf32>
    %c88 = arith.constant 88 : index
    %c0_206 = arith.constant 0 : index
    %c0_207 = arith.constant 0 : index
    %712 = vector.load %arg5[%c88, %c0_206, %c0_207] : memref<144x4x1xf32, #tpu.memory_space<vmem>>, vector<1x4x1xf32>
    %713 = vector.shape_cast %712 : vector<1x4x1xf32> to vector<4x1xf32>
    %714 = vector.extract_strided_slice %587 {offsets = [0, 0], sizes = [1, 256], strides = [1, 1]} : vector<4x256xf32> to vector<1x256xf32>
    %715 = vector.broadcast %713 : vector<4x1xf32> to vector<4x256xf32>
    %716 = vector.broadcast %714 : vector<1x256xf32> to vector<4x256xf32>
    %717 = arith.mulf %715, %716 : vector<4x256xf32>
    %718 = arith.addf %690, %717 : vector<4x256xf32>
    %c89 = arith.constant 89 : index
    %c0_208 = arith.constant 0 : index
    %c0_209 = arith.constant 0 : index
    %719 = vector.load %arg5[%c89, %c0_208, %c0_209] : memref<144x4x1xf32, #tpu.memory_space<vmem>>, vector<1x4x1xf32>
    %720 = vector.shape_cast %719 : vector<1x4x1xf32> to vector<4x1xf32>
    %721 = vector.extract_strided_slice %587 {offsets = [1, 0], sizes = [1, 256], strides = [1, 1]} : vector<4x256xf32> to vector<1x256xf32>
    %722 = vector.broadcast %720 : vector<4x1xf32> to vector<4x256xf32>
    %723 = vector.broadcast %721 : vector<1x256xf32> to vector<4x256xf32>
    %724 = arith.mulf %722, %723 : vector<4x256xf32>
    %725 = arith.addf %697, %724 : vector<4x256xf32>
    %c90 = arith.constant 90 : index
    %c0_210 = arith.constant 0 : index
    %c0_211 = arith.constant 0 : index
    %726 = vector.load %arg5[%c90, %c0_210, %c0_211] : memref<144x4x1xf32, #tpu.memory_space<vmem>>, vector<1x4x1xf32>
    %727 = vector.shape_cast %726 : vector<1x4x1xf32> to vector<4x1xf32>
    %728 = vector.extract_strided_slice %587 {offsets = [2, 0], sizes = [1, 256], strides = [1, 1]} : vector<4x256xf32> to vector<1x256xf32>
    %729 = vector.broadcast %727 : vector<4x1xf32> to vector<4x256xf32>
    %730 = vector.broadcast %728 : vector<1x256xf32> to vector<4x256xf32>
    %731 = arith.mulf %729, %730 : vector<4x256xf32>
    %732 = arith.addf %704, %731 : vector<4x256xf32>
    %c91 = arith.constant 91 : index
    %c0_212 = arith.constant 0 : index
    %c0_213 = arith.constant 0 : index
    %733 = vector.load %arg5[%c91, %c0_212, %c0_213] : memref<144x4x1xf32, #tpu.memory_space<vmem>>, vector<1x4x1xf32>
    %734 = vector.shape_cast %733 : vector<1x4x1xf32> to vector<4x1xf32>
    %735 = vector.extract_strided_slice %587 {offsets = [3, 0], sizes = [1, 256], strides = [1, 1]} : vector<4x256xf32> to vector<1x256xf32>
    %736 = vector.broadcast %734 : vector<4x1xf32> to vector<4x256xf32>
    %737 = vector.broadcast %735 : vector<1x256xf32> to vector<4x256xf32>
    %738 = arith.mulf %736, %737 : vector<4x256xf32>
    %739 = arith.addf %711, %738 : vector<4x256xf32>
    %c255_i32_214 = arith.constant 255 : i32
    %740 = tpu.dynamic_rotate %587 by %c255_i32_214 dim 1 : vector<4x256xf32>, i32 -> vector<4x256xf32>
    %741 = vector.extract_strided_slice %0 {offsets = [5, 0], sizes = [1, 256], strides = [1, 1]} : vector<9x256xf32> to vector<1x256xf32>
    %742 = vector.broadcast %741 : vector<1x256xf32> to vector<4x256xf32>
    %743 = arith.mulf %740, %742 : vector<4x256xf32>
    %c92 = arith.constant 92 : index
    %c0_215 = arith.constant 0 : index
    %c0_216 = arith.constant 0 : index
    %744 = vector.load %arg5[%c92, %c0_215, %c0_216] : memref<144x4x1xf32, #tpu.memory_space<vmem>>, vector<1x4x1xf32>
    %745 = vector.shape_cast %744 : vector<1x4x1xf32> to vector<4x1xf32>
    %746 = vector.extract_strided_slice %743 {offsets = [0, 0], sizes = [1, 256], strides = [1, 1]} : vector<4x256xf32> to vector<1x256xf32>
    %747 = vector.broadcast %745 : vector<4x1xf32> to vector<4x256xf32>
    %748 = vector.broadcast %746 : vector<1x256xf32> to vector<4x256xf32>
    %749 = arith.mulf %747, %748 : vector<4x256xf32>
    %750 = arith.addf %718, %749 : vector<4x256xf32>
    %c93 = arith.constant 93 : index
    %c0_217 = arith.constant 0 : index
    %c0_218 = arith.constant 0 : index
    %751 = vector.load %arg5[%c93, %c0_217, %c0_218] : memref<144x4x1xf32, #tpu.memory_space<vmem>>, vector<1x4x1xf32>
    %752 = vector.shape_cast %751 : vector<1x4x1xf32> to vector<4x1xf32>
    %753 = vector.extract_strided_slice %743 {offsets = [1, 0], sizes = [1, 256], strides = [1, 1]} : vector<4x256xf32> to vector<1x256xf32>
    %754 = vector.broadcast %752 : vector<4x1xf32> to vector<4x256xf32>
    %755 = vector.broadcast %753 : vector<1x256xf32> to vector<4x256xf32>
    %756 = arith.mulf %754, %755 : vector<4x256xf32>
    %757 = arith.addf %725, %756 : vector<4x256xf32>
    %c94 = arith.constant 94 : index
    %c0_219 = arith.constant 0 : index
    %c0_220 = arith.constant 0 : index
    %758 = vector.load %arg5[%c94, %c0_219, %c0_220] : memref<144x4x1xf32, #tpu.memory_space<vmem>>, vector<1x4x1xf32>
    %759 = vector.shape_cast %758 : vector<1x4x1xf32> to vector<4x1xf32>
    %760 = vector.extract_strided_slice %743 {offsets = [2, 0], sizes = [1, 256], strides = [1, 1]} : vector<4x256xf32> to vector<1x256xf32>
    %761 = vector.broadcast %759 : vector<4x1xf32> to vector<4x256xf32>
    %762 = vector.broadcast %760 : vector<1x256xf32> to vector<4x256xf32>
    %763 = arith.mulf %761, %762 : vector<4x256xf32>
    %764 = arith.addf %732, %763 : vector<4x256xf32>
    %c95 = arith.constant 95 : index
    %c0_221 = arith.constant 0 : index
    %c0_222 = arith.constant 0 : index
    %765 = vector.load %arg5[%c95, %c0_221, %c0_222] : memref<144x4x1xf32, #tpu.memory_space<vmem>>, vector<1x4x1xf32>
    %766 = vector.shape_cast %765 : vector<1x4x1xf32> to vector<4x1xf32>
    %767 = vector.extract_strided_slice %743 {offsets = [3, 0], sizes = [1, 256], strides = [1, 1]} : vector<4x256xf32> to vector<1x256xf32>
    %768 = vector.broadcast %766 : vector<4x1xf32> to vector<4x256xf32>
    %769 = vector.broadcast %767 : vector<1x256xf32> to vector<4x256xf32>
    %770 = arith.mulf %768, %769 : vector<4x256xf32>
    %771 = arith.addf %739, %770 : vector<4x256xf32>
    %c241_i32_223 = arith.constant 241 : i32
    %772 = tpu.dynamic_rotate %587 by %c241_i32_223 dim 1 : vector<4x256xf32>, i32 -> vector<4x256xf32>
    %773 = vector.extract_strided_slice %0 {offsets = [6, 0], sizes = [1, 256], strides = [1, 1]} : vector<9x256xf32> to vector<1x256xf32>
    %774 = vector.broadcast %773 : vector<1x256xf32> to vector<4x256xf32>
    %775 = arith.mulf %772, %774 : vector<4x256xf32>
    %c96 = arith.constant 96 : index
    %c0_224 = arith.constant 0 : index
    %c0_225 = arith.constant 0 : index
    %776 = vector.load %arg5[%c96, %c0_224, %c0_225] : memref<144x4x1xf32, #tpu.memory_space<vmem>>, vector<1x4x1xf32>
    %777 = vector.shape_cast %776 : vector<1x4x1xf32> to vector<4x1xf32>
    %778 = vector.extract_strided_slice %775 {offsets = [0, 0], sizes = [1, 256], strides = [1, 1]} : vector<4x256xf32> to vector<1x256xf32>
    %779 = vector.broadcast %777 : vector<4x1xf32> to vector<4x256xf32>
    %780 = vector.broadcast %778 : vector<1x256xf32> to vector<4x256xf32>
    %781 = arith.mulf %779, %780 : vector<4x256xf32>
    %782 = arith.addf %750, %781 : vector<4x256xf32>
    %c97 = arith.constant 97 : index
    %c0_226 = arith.constant 0 : index
    %c0_227 = arith.constant 0 : index
    %783 = vector.load %arg5[%c97, %c0_226, %c0_227] : memref<144x4x1xf32, #tpu.memory_space<vmem>>, vector<1x4x1xf32>
    %784 = vector.shape_cast %783 : vector<1x4x1xf32> to vector<4x1xf32>
    %785 = vector.extract_strided_slice %775 {offsets = [1, 0], sizes = [1, 256], strides = [1, 1]} : vector<4x256xf32> to vector<1x256xf32>
    %786 = vector.broadcast %784 : vector<4x1xf32> to vector<4x256xf32>
    %787 = vector.broadcast %785 : vector<1x256xf32> to vector<4x256xf32>
    %788 = arith.mulf %786, %787 : vector<4x256xf32>
    %789 = arith.addf %757, %788 : vector<4x256xf32>
    %c98 = arith.constant 98 : index
    %c0_228 = arith.constant 0 : index
    %c0_229 = arith.constant 0 : index
    %790 = vector.load %arg5[%c98, %c0_228, %c0_229] : memref<144x4x1xf32, #tpu.memory_space<vmem>>, vector<1x4x1xf32>
    %791 = vector.shape_cast %790 : vector<1x4x1xf32> to vector<4x1xf32>
    %792 = vector.extract_strided_slice %775 {offsets = [2, 0], sizes = [1, 256], strides = [1, 1]} : vector<4x256xf32> to vector<1x256xf32>
    %793 = vector.broadcast %791 : vector<4x1xf32> to vector<4x256xf32>
    %794 = vector.broadcast %792 : vector<1x256xf32> to vector<4x256xf32>
    %795 = arith.mulf %793, %794 : vector<4x256xf32>
    %796 = arith.addf %764, %795 : vector<4x256xf32>
    %c99 = arith.constant 99 : index
    %c0_230 = arith.constant 0 : index
    %c0_231 = arith.constant 0 : index
    %797 = vector.load %arg5[%c99, %c0_230, %c0_231] : memref<144x4x1xf32, #tpu.memory_space<vmem>>, vector<1x4x1xf32>
    %798 = vector.shape_cast %797 : vector<1x4x1xf32> to vector<4x1xf32>
    %799 = vector.extract_strided_slice %775 {offsets = [3, 0], sizes = [1, 256], strides = [1, 1]} : vector<4x256xf32> to vector<1x256xf32>
    %800 = vector.broadcast %798 : vector<4x1xf32> to vector<4x256xf32>
    %801 = vector.broadcast %799 : vector<1x256xf32> to vector<4x256xf32>
    %802 = arith.mulf %800, %801 : vector<4x256xf32>
    %803 = arith.addf %771, %802 : vector<4x256xf32>
    %c240_i32_232 = arith.constant 240 : i32
    %804 = tpu.dynamic_rotate %587 by %c240_i32_232 dim 1 : vector<4x256xf32>, i32 -> vector<4x256xf32>
    %805 = vector.extract_strided_slice %0 {offsets = [7, 0], sizes = [1, 256], strides = [1, 1]} : vector<9x256xf32> to vector<1x256xf32>
    %806 = vector.broadcast %805 : vector<1x256xf32> to vector<4x256xf32>
    %807 = arith.mulf %804, %806 : vector<4x256xf32>
    %c100 = arith.constant 100 : index
    %c0_233 = arith.constant 0 : index
    %c0_234 = arith.constant 0 : index
    %808 = vector.load %arg5[%c100, %c0_233, %c0_234] : memref<144x4x1xf32, #tpu.memory_space<vmem>>, vector<1x4x1xf32>
    %809 = vector.shape_cast %808 : vector<1x4x1xf32> to vector<4x1xf32>
    %810 = vector.extract_strided_slice %807 {offsets = [0, 0], sizes = [1, 256], strides = [1, 1]} : vector<4x256xf32> to vector<1x256xf32>
    %811 = vector.broadcast %809 : vector<4x1xf32> to vector<4x256xf32>
    %812 = vector.broadcast %810 : vector<1x256xf32> to vector<4x256xf32>
    %813 = arith.mulf %811, %812 : vector<4x256xf32>
    %814 = arith.addf %782, %813 : vector<4x256xf32>
    %c101 = arith.constant 101 : index
    %c0_235 = arith.constant 0 : index
    %c0_236 = arith.constant 0 : index
    %815 = vector.load %arg5[%c101, %c0_235, %c0_236] : memref<144x4x1xf32, #tpu.memory_space<vmem>>, vector<1x4x1xf32>
    %816 = vector.shape_cast %815 : vector<1x4x1xf32> to vector<4x1xf32>
    %817 = vector.extract_strided_slice %807 {offsets = [1, 0], sizes = [1, 256], strides = [1, 1]} : vector<4x256xf32> to vector<1x256xf32>
    %818 = vector.broadcast %816 : vector<4x1xf32> to vector<4x256xf32>
    %819 = vector.broadcast %817 : vector<1x256xf32> to vector<4x256xf32>
    %820 = arith.mulf %818, %819 : vector<4x256xf32>
    %821 = arith.addf %789, %820 : vector<4x256xf32>
    %c102 = arith.constant 102 : index
    %c0_237 = arith.constant 0 : index
    %c0_238 = arith.constant 0 : index
    %822 = vector.load %arg5[%c102, %c0_237, %c0_238] : memref<144x4x1xf32, #tpu.memory_space<vmem>>, vector<1x4x1xf32>
    %823 = vector.shape_cast %822 : vector<1x4x1xf32> to vector<4x1xf32>
    %824 = vector.extract_strided_slice %807 {offsets = [2, 0], sizes = [1, 256], strides = [1, 1]} : vector<4x256xf32> to vector<1x256xf32>
    %825 = vector.broadcast %823 : vector<4x1xf32> to vector<4x256xf32>
    %826 = vector.broadcast %824 : vector<1x256xf32> to vector<4x256xf32>
    %827 = arith.mulf %825, %826 : vector<4x256xf32>
    %828 = arith.addf %796, %827 : vector<4x256xf32>
    %c103 = arith.constant 103 : index
    %c0_239 = arith.constant 0 : index
    %c0_240 = arith.constant 0 : index
    %829 = vector.load %arg5[%c103, %c0_239, %c0_240] : memref<144x4x1xf32, #tpu.memory_space<vmem>>, vector<1x4x1xf32>
    %830 = vector.shape_cast %829 : vector<1x4x1xf32> to vector<4x1xf32>
    %831 = vector.extract_strided_slice %807 {offsets = [3, 0], sizes = [1, 256], strides = [1, 1]} : vector<4x256xf32> to vector<1x256xf32>
    %832 = vector.broadcast %830 : vector<4x1xf32> to vector<4x256xf32>
    %833 = vector.broadcast %831 : vector<1x256xf32> to vector<4x256xf32>
    %834 = arith.mulf %832, %833 : vector<4x256xf32>
    %835 = arith.addf %803, %834 : vector<4x256xf32>
    %c239_i32_241 = arith.constant 239 : i32
    %836 = tpu.dynamic_rotate %587 by %c239_i32_241 dim 1 : vector<4x256xf32>, i32 -> vector<4x256xf32>
    %837 = vector.extract_strided_slice %0 {offsets = [8, 0], sizes = [1, 256], strides = [1, 1]} : vector<9x256xf32> to vector<1x256xf32>
    %838 = vector.broadcast %837 : vector<1x256xf32> to vector<4x256xf32>
    %839 = arith.mulf %836, %838 : vector<4x256xf32>
    %c104 = arith.constant 104 : index
    %c0_242 = arith.constant 0 : index
    %c0_243 = arith.constant 0 : index
    %840 = vector.load %arg5[%c104, %c0_242, %c0_243] : memref<144x4x1xf32, #tpu.memory_space<vmem>>, vector<1x4x1xf32>
    %841 = vector.shape_cast %840 : vector<1x4x1xf32> to vector<4x1xf32>
    %842 = vector.extract_strided_slice %839 {offsets = [0, 0], sizes = [1, 256], strides = [1, 1]} : vector<4x256xf32> to vector<1x256xf32>
    %843 = vector.broadcast %841 : vector<4x1xf32> to vector<4x256xf32>
    %844 = vector.broadcast %842 : vector<1x256xf32> to vector<4x256xf32>
    %845 = arith.mulf %843, %844 : vector<4x256xf32>
    %846 = arith.addf %814, %845 : vector<4x256xf32>
    %c105 = arith.constant 105 : index
    %c0_244 = arith.constant 0 : index
    %c0_245 = arith.constant 0 : index
    %847 = vector.load %arg5[%c105, %c0_244, %c0_245] : memref<144x4x1xf32, #tpu.memory_space<vmem>>, vector<1x4x1xf32>
    %848 = vector.shape_cast %847 : vector<1x4x1xf32> to vector<4x1xf32>
    %849 = vector.extract_strided_slice %839 {offsets = [1, 0], sizes = [1, 256], strides = [1, 1]} : vector<4x256xf32> to vector<1x256xf32>
    %850 = vector.broadcast %848 : vector<4x1xf32> to vector<4x256xf32>
    %851 = vector.broadcast %849 : vector<1x256xf32> to vector<4x256xf32>
    %852 = arith.mulf %850, %851 : vector<4x256xf32>
    %853 = arith.addf %821, %852 : vector<4x256xf32>
    %c106 = arith.constant 106 : index
    %c0_246 = arith.constant 0 : index
    %c0_247 = arith.constant 0 : index
    %854 = vector.load %arg5[%c106, %c0_246, %c0_247] : memref<144x4x1xf32, #tpu.memory_space<vmem>>, vector<1x4x1xf32>
    %855 = vector.shape_cast %854 : vector<1x4x1xf32> to vector<4x1xf32>
    %856 = vector.extract_strided_slice %839 {offsets = [2, 0], sizes = [1, 256], strides = [1, 1]} : vector<4x256xf32> to vector<1x256xf32>
    %857 = vector.broadcast %855 : vector<4x1xf32> to vector<4x256xf32>
    %858 = vector.broadcast %856 : vector<1x256xf32> to vector<4x256xf32>
    %859 = arith.mulf %857, %858 : vector<4x256xf32>
    %860 = arith.addf %828, %859 : vector<4x256xf32>
    %c107 = arith.constant 107 : index
    %c0_248 = arith.constant 0 : index
    %c0_249 = arith.constant 0 : index
    %861 = vector.load %arg5[%c107, %c0_248, %c0_249] : memref<144x4x1xf32, #tpu.memory_space<vmem>>, vector<1x4x1xf32>
    %862 = vector.shape_cast %861 : vector<1x4x1xf32> to vector<4x1xf32>
    %863 = vector.extract_strided_slice %839 {offsets = [3, 0], sizes = [1, 256], strides = [1, 1]} : vector<4x256xf32> to vector<1x256xf32>
    %864 = vector.broadcast %862 : vector<4x1xf32> to vector<4x256xf32>
    %865 = vector.broadcast %863 : vector<1x256xf32> to vector<4x256xf32>
    %866 = arith.mulf %864, %865 : vector<4x256xf32>
    %867 = arith.addf %835, %866 : vector<4x256xf32>
    %868 = arith.addf %846, %853 : vector<4x256xf32>
    %869 = arith.addf %860, %867 : vector<4x256xf32>
    %870 = arith.addf %868, %869 : vector<4x256xf32>
    %c2_250 = arith.constant 2 : index
    %c0_251 = arith.constant 0 : index
    %c0_252 = arith.constant 0 : index
    %871 = vector.load %arg6[%c2_250, %c0_251, %c0_252] : memref<4x4x1xf32, #tpu.memory_space<vmem>>, vector<1x4x1xf32>
    %872 = vector.shape_cast %871 : vector<1x4x1xf32> to vector<4x1xf32>
    %873 = vector.broadcast %872 : vector<4x1xf32> to vector<4x256xf32>
    %874 = arith.addf %870, %873 : vector<4x256xf32>
    %cst_253 = arith.constant 0.000000e+00 : f32
    %875 = vector.broadcast %cst_253 : f32 to vector<4x256xf32>
    %876 = arith.maximumf %874, %875 : vector<4x256xf32>
    %c17_i32_254 = arith.constant 17 : i32
    %877 = tpu.dynamic_rotate %876 by %c17_i32_254 dim 1 : vector<4x256xf32>, i32 -> vector<4x256xf32>
    %878 = vector.extract_strided_slice %0 {offsets = [0, 0], sizes = [1, 256], strides = [1, 1]} : vector<9x256xf32> to vector<1x256xf32>
    %879 = vector.broadcast %878 : vector<1x256xf32> to vector<4x256xf32>
    %880 = arith.mulf %877, %879 : vector<4x256xf32>
    %c108 = arith.constant 108 : index
    %c0_255 = arith.constant 0 : index
    %c0_256 = arith.constant 0 : index
    %881 = vector.load %arg5[%c108, %c0_255, %c0_256] : memref<144x4x1xf32, #tpu.memory_space<vmem>>, vector<1x4x1xf32>
    %882 = vector.shape_cast %881 : vector<1x4x1xf32> to vector<4x1xf32>
    %883 = vector.extract_strided_slice %880 {offsets = [0, 0], sizes = [1, 256], strides = [1, 1]} : vector<4x256xf32> to vector<1x256xf32>
    %884 = vector.broadcast %882 : vector<4x1xf32> to vector<4x256xf32>
    %885 = vector.broadcast %883 : vector<1x256xf32> to vector<4x256xf32>
    %886 = arith.mulf %884, %885 : vector<4x256xf32>
    %c109 = arith.constant 109 : index
    %c0_257 = arith.constant 0 : index
    %c0_258 = arith.constant 0 : index
    %887 = vector.load %arg5[%c109, %c0_257, %c0_258] : memref<144x4x1xf32, #tpu.memory_space<vmem>>, vector<1x4x1xf32>
    %888 = vector.shape_cast %887 : vector<1x4x1xf32> to vector<4x1xf32>
    %889 = vector.extract_strided_slice %880 {offsets = [1, 0], sizes = [1, 256], strides = [1, 1]} : vector<4x256xf32> to vector<1x256xf32>
    %890 = vector.broadcast %888 : vector<4x1xf32> to vector<4x256xf32>
    %891 = vector.broadcast %889 : vector<1x256xf32> to vector<4x256xf32>
    %892 = arith.mulf %890, %891 : vector<4x256xf32>
    %c110 = arith.constant 110 : index
    %c0_259 = arith.constant 0 : index
    %c0_260 = arith.constant 0 : index
    %893 = vector.load %arg5[%c110, %c0_259, %c0_260] : memref<144x4x1xf32, #tpu.memory_space<vmem>>, vector<1x4x1xf32>
    %894 = vector.shape_cast %893 : vector<1x4x1xf32> to vector<4x1xf32>
    %895 = vector.extract_strided_slice %880 {offsets = [2, 0], sizes = [1, 256], strides = [1, 1]} : vector<4x256xf32> to vector<1x256xf32>
    %896 = vector.broadcast %894 : vector<4x1xf32> to vector<4x256xf32>
    %897 = vector.broadcast %895 : vector<1x256xf32> to vector<4x256xf32>
    %898 = arith.mulf %896, %897 : vector<4x256xf32>
    %c111 = arith.constant 111 : index
    %c0_261 = arith.constant 0 : index
    %c0_262 = arith.constant 0 : index
    %899 = vector.load %arg5[%c111, %c0_261, %c0_262] : memref<144x4x1xf32, #tpu.memory_space<vmem>>, vector<1x4x1xf32>
    %900 = vector.shape_cast %899 : vector<1x4x1xf32> to vector<4x1xf32>
    %901 = vector.extract_strided_slice %880 {offsets = [3, 0], sizes = [1, 256], strides = [1, 1]} : vector<4x256xf32> to vector<1x256xf32>
    %902 = vector.broadcast %900 : vector<4x1xf32> to vector<4x256xf32>
    %903 = vector.broadcast %901 : vector<1x256xf32> to vector<4x256xf32>
    %904 = arith.mulf %902, %903 : vector<4x256xf32>
    %c16_i32_263 = arith.constant 16 : i32
    %905 = tpu.dynamic_rotate %876 by %c16_i32_263 dim 1 : vector<4x256xf32>, i32 -> vector<4x256xf32>
    %906 = vector.extract_strided_slice %0 {offsets = [1, 0], sizes = [1, 256], strides = [1, 1]} : vector<9x256xf32> to vector<1x256xf32>
    %907 = vector.broadcast %906 : vector<1x256xf32> to vector<4x256xf32>
    %908 = arith.mulf %905, %907 : vector<4x256xf32>
    %c112 = arith.constant 112 : index
    %c0_264 = arith.constant 0 : index
    %c0_265 = arith.constant 0 : index
    %909 = vector.load %arg5[%c112, %c0_264, %c0_265] : memref<144x4x1xf32, #tpu.memory_space<vmem>>, vector<1x4x1xf32>
    %910 = vector.shape_cast %909 : vector<1x4x1xf32> to vector<4x1xf32>
    %911 = vector.extract_strided_slice %908 {offsets = [0, 0], sizes = [1, 256], strides = [1, 1]} : vector<4x256xf32> to vector<1x256xf32>
    %912 = vector.broadcast %910 : vector<4x1xf32> to vector<4x256xf32>
    %913 = vector.broadcast %911 : vector<1x256xf32> to vector<4x256xf32>
    %914 = arith.mulf %912, %913 : vector<4x256xf32>
    %915 = arith.addf %886, %914 : vector<4x256xf32>
    %c113 = arith.constant 113 : index
    %c0_266 = arith.constant 0 : index
    %c0_267 = arith.constant 0 : index
    %916 = vector.load %arg5[%c113, %c0_266, %c0_267] : memref<144x4x1xf32, #tpu.memory_space<vmem>>, vector<1x4x1xf32>
    %917 = vector.shape_cast %916 : vector<1x4x1xf32> to vector<4x1xf32>
    %918 = vector.extract_strided_slice %908 {offsets = [1, 0], sizes = [1, 256], strides = [1, 1]} : vector<4x256xf32> to vector<1x256xf32>
    %919 = vector.broadcast %917 : vector<4x1xf32> to vector<4x256xf32>
    %920 = vector.broadcast %918 : vector<1x256xf32> to vector<4x256xf32>
    %921 = arith.mulf %919, %920 : vector<4x256xf32>
    %922 = arith.addf %892, %921 : vector<4x256xf32>
    %c114 = arith.constant 114 : index
    %c0_268 = arith.constant 0 : index
    %c0_269 = arith.constant 0 : index
    %923 = vector.load %arg5[%c114, %c0_268, %c0_269] : memref<144x4x1xf32, #tpu.memory_space<vmem>>, vector<1x4x1xf32>
    %924 = vector.shape_cast %923 : vector<1x4x1xf32> to vector<4x1xf32>
    %925 = vector.extract_strided_slice %908 {offsets = [2, 0], sizes = [1, 256], strides = [1, 1]} : vector<4x256xf32> to vector<1x256xf32>
    %926 = vector.broadcast %924 : vector<4x1xf32> to vector<4x256xf32>
    %927 = vector.broadcast %925 : vector<1x256xf32> to vector<4x256xf32>
    %928 = arith.mulf %926, %927 : vector<4x256xf32>
    %929 = arith.addf %898, %928 : vector<4x256xf32>
    %c115 = arith.constant 115 : index
    %c0_270 = arith.constant 0 : index
    %c0_271 = arith.constant 0 : index
    %930 = vector.load %arg5[%c115, %c0_270, %c0_271] : memref<144x4x1xf32, #tpu.memory_space<vmem>>, vector<1x4x1xf32>
    %931 = vector.shape_cast %930 : vector<1x4x1xf32> to vector<4x1xf32>
    %932 = vector.extract_strided_slice %908 {offsets = [3, 0], sizes = [1, 256], strides = [1, 1]} : vector<4x256xf32> to vector<1x256xf32>
    %933 = vector.broadcast %931 : vector<4x1xf32> to vector<4x256xf32>
    %934 = vector.broadcast %932 : vector<1x256xf32> to vector<4x256xf32>
    %935 = arith.mulf %933, %934 : vector<4x256xf32>
    %936 = arith.addf %904, %935 : vector<4x256xf32>
    %c15_i32_272 = arith.constant 15 : i32
    %937 = tpu.dynamic_rotate %876 by %c15_i32_272 dim 1 : vector<4x256xf32>, i32 -> vector<4x256xf32>
    %938 = vector.extract_strided_slice %0 {offsets = [2, 0], sizes = [1, 256], strides = [1, 1]} : vector<9x256xf32> to vector<1x256xf32>
    %939 = vector.broadcast %938 : vector<1x256xf32> to vector<4x256xf32>
    %940 = arith.mulf %937, %939 : vector<4x256xf32>
    %c116 = arith.constant 116 : index
    %c0_273 = arith.constant 0 : index
    %c0_274 = arith.constant 0 : index
    %941 = vector.load %arg5[%c116, %c0_273, %c0_274] : memref<144x4x1xf32, #tpu.memory_space<vmem>>, vector<1x4x1xf32>
    %942 = vector.shape_cast %941 : vector<1x4x1xf32> to vector<4x1xf32>
    %943 = vector.extract_strided_slice %940 {offsets = [0, 0], sizes = [1, 256], strides = [1, 1]} : vector<4x256xf32> to vector<1x256xf32>
    %944 = vector.broadcast %942 : vector<4x1xf32> to vector<4x256xf32>
    %945 = vector.broadcast %943 : vector<1x256xf32> to vector<4x256xf32>
    %946 = arith.mulf %944, %945 : vector<4x256xf32>
    %947 = arith.addf %915, %946 : vector<4x256xf32>
    %c117 = arith.constant 117 : index
    %c0_275 = arith.constant 0 : index
    %c0_276 = arith.constant 0 : index
    %948 = vector.load %arg5[%c117, %c0_275, %c0_276] : memref<144x4x1xf32, #tpu.memory_space<vmem>>, vector<1x4x1xf32>
    %949 = vector.shape_cast %948 : vector<1x4x1xf32> to vector<4x1xf32>
    %950 = vector.extract_strided_slice %940 {offsets = [1, 0], sizes = [1, 256], strides = [1, 1]} : vector<4x256xf32> to vector<1x256xf32>
    %951 = vector.broadcast %949 : vector<4x1xf32> to vector<4x256xf32>
    %952 = vector.broadcast %950 : vector<1x256xf32> to vector<4x256xf32>
    %953 = arith.mulf %951, %952 : vector<4x256xf32>
    %954 = arith.addf %922, %953 : vector<4x256xf32>
    %c118 = arith.constant 118 : index
    %c0_277 = arith.constant 0 : index
    %c0_278 = arith.constant 0 : index
    %955 = vector.load %arg5[%c118, %c0_277, %c0_278] : memref<144x4x1xf32, #tpu.memory_space<vmem>>, vector<1x4x1xf32>
    %956 = vector.shape_cast %955 : vector<1x4x1xf32> to vector<4x1xf32>
    %957 = vector.extract_strided_slice %940 {offsets = [2, 0], sizes = [1, 256], strides = [1, 1]} : vector<4x256xf32> to vector<1x256xf32>
    %958 = vector.broadcast %956 : vector<4x1xf32> to vector<4x256xf32>
    %959 = vector.broadcast %957 : vector<1x256xf32> to vector<4x256xf32>
    %960 = arith.mulf %958, %959 : vector<4x256xf32>
    %961 = arith.addf %929, %960 : vector<4x256xf32>
    %c119 = arith.constant 119 : index
    %c0_279 = arith.constant 0 : index
    %c0_280 = arith.constant 0 : index
    %962 = vector.load %arg5[%c119, %c0_279, %c0_280] : memref<144x4x1xf32, #tpu.memory_space<vmem>>, vector<1x4x1xf32>
    %963 = vector.shape_cast %962 : vector<1x4x1xf32> to vector<4x1xf32>
    %964 = vector.extract_strided_slice %940 {offsets = [3, 0], sizes = [1, 256], strides = [1, 1]} : vector<4x256xf32> to vector<1x256xf32>
    %965 = vector.broadcast %963 : vector<4x1xf32> to vector<4x256xf32>
    %966 = vector.broadcast %964 : vector<1x256xf32> to vector<4x256xf32>
    %967 = arith.mulf %965, %966 : vector<4x256xf32>
    %968 = arith.addf %936, %967 : vector<4x256xf32>
    %c1_i32_281 = arith.constant 1 : i32
    %969 = tpu.dynamic_rotate %876 by %c1_i32_281 dim 1 : vector<4x256xf32>, i32 -> vector<4x256xf32>
    %970 = vector.extract_strided_slice %0 {offsets = [3, 0], sizes = [1, 256], strides = [1, 1]} : vector<9x256xf32> to vector<1x256xf32>
    %971 = vector.broadcast %970 : vector<1x256xf32> to vector<4x256xf32>
    %972 = arith.mulf %969, %971 : vector<4x256xf32>
    %c120 = arith.constant 120 : index
    %c0_282 = arith.constant 0 : index
    %c0_283 = arith.constant 0 : index
    %973 = vector.load %arg5[%c120, %c0_282, %c0_283] : memref<144x4x1xf32, #tpu.memory_space<vmem>>, vector<1x4x1xf32>
    %974 = vector.shape_cast %973 : vector<1x4x1xf32> to vector<4x1xf32>
    %975 = vector.extract_strided_slice %972 {offsets = [0, 0], sizes = [1, 256], strides = [1, 1]} : vector<4x256xf32> to vector<1x256xf32>
    %976 = vector.broadcast %974 : vector<4x1xf32> to vector<4x256xf32>
    %977 = vector.broadcast %975 : vector<1x256xf32> to vector<4x256xf32>
    %978 = arith.mulf %976, %977 : vector<4x256xf32>
    %979 = arith.addf %947, %978 : vector<4x256xf32>
    %c121 = arith.constant 121 : index
    %c0_284 = arith.constant 0 : index
    %c0_285 = arith.constant 0 : index
    %980 = vector.load %arg5[%c121, %c0_284, %c0_285] : memref<144x4x1xf32, #tpu.memory_space<vmem>>, vector<1x4x1xf32>
    %981 = vector.shape_cast %980 : vector<1x4x1xf32> to vector<4x1xf32>
    %982 = vector.extract_strided_slice %972 {offsets = [1, 0], sizes = [1, 256], strides = [1, 1]} : vector<4x256xf32> to vector<1x256xf32>
    %983 = vector.broadcast %981 : vector<4x1xf32> to vector<4x256xf32>
    %984 = vector.broadcast %982 : vector<1x256xf32> to vector<4x256xf32>
    %985 = arith.mulf %983, %984 : vector<4x256xf32>
    %986 = arith.addf %954, %985 : vector<4x256xf32>
    %c122 = arith.constant 122 : index
    %c0_286 = arith.constant 0 : index
    %c0_287 = arith.constant 0 : index
    %987 = vector.load %arg5[%c122, %c0_286, %c0_287] : memref<144x4x1xf32, #tpu.memory_space<vmem>>, vector<1x4x1xf32>
    %988 = vector.shape_cast %987 : vector<1x4x1xf32> to vector<4x1xf32>
    %989 = vector.extract_strided_slice %972 {offsets = [2, 0], sizes = [1, 256], strides = [1, 1]} : vector<4x256xf32> to vector<1x256xf32>
    %990 = vector.broadcast %988 : vector<4x1xf32> to vector<4x256xf32>
    %991 = vector.broadcast %989 : vector<1x256xf32> to vector<4x256xf32>
    %992 = arith.mulf %990, %991 : vector<4x256xf32>
    %993 = arith.addf %961, %992 : vector<4x256xf32>
    %c123 = arith.constant 123 : index
    %c0_288 = arith.constant 0 : index
    %c0_289 = arith.constant 0 : index
    %994 = vector.load %arg5[%c123, %c0_288, %c0_289] : memref<144x4x1xf32, #tpu.memory_space<vmem>>, vector<1x4x1xf32>
    %995 = vector.shape_cast %994 : vector<1x4x1xf32> to vector<4x1xf32>
    %996 = vector.extract_strided_slice %972 {offsets = [3, 0], sizes = [1, 256], strides = [1, 1]} : vector<4x256xf32> to vector<1x256xf32>
    %997 = vector.broadcast %995 : vector<4x1xf32> to vector<4x256xf32>
    %998 = vector.broadcast %996 : vector<1x256xf32> to vector<4x256xf32>
    %999 = arith.mulf %997, %998 : vector<4x256xf32>
    %1000 = arith.addf %968, %999 : vector<4x256xf32>
    %c124 = arith.constant 124 : index
    %c0_290 = arith.constant 0 : index
    %c0_291 = arith.constant 0 : index
    %1001 = vector.load %arg5[%c124, %c0_290, %c0_291] : memref<144x4x1xf32, #tpu.memory_space<vmem>>, vector<1x4x1xf32>
    %1002 = vector.shape_cast %1001 : vector<1x4x1xf32> to vector<4x1xf32>
    %1003 = vector.extract_strided_slice %876 {offsets = [0, 0], sizes = [1, 256], strides = [1, 1]} : vector<4x256xf32> to vector<1x256xf32>
    %1004 = vector.broadcast %1002 : vector<4x1xf32> to vector<4x256xf32>
    %1005 = vector.broadcast %1003 : vector<1x256xf32> to vector<4x256xf32>
    %1006 = arith.mulf %1004, %1005 : vector<4x256xf32>
    %1007 = arith.addf %979, %1006 : vector<4x256xf32>
    %c125 = arith.constant 125 : index
    %c0_292 = arith.constant 0 : index
    %c0_293 = arith.constant 0 : index
    %1008 = vector.load %arg5[%c125, %c0_292, %c0_293] : memref<144x4x1xf32, #tpu.memory_space<vmem>>, vector<1x4x1xf32>
    %1009 = vector.shape_cast %1008 : vector<1x4x1xf32> to vector<4x1xf32>
    %1010 = vector.extract_strided_slice %876 {offsets = [1, 0], sizes = [1, 256], strides = [1, 1]} : vector<4x256xf32> to vector<1x256xf32>
    %1011 = vector.broadcast %1009 : vector<4x1xf32> to vector<4x256xf32>
    %1012 = vector.broadcast %1010 : vector<1x256xf32> to vector<4x256xf32>
    %1013 = arith.mulf %1011, %1012 : vector<4x256xf32>
    %1014 = arith.addf %986, %1013 : vector<4x256xf32>
    %c126 = arith.constant 126 : index
    %c0_294 = arith.constant 0 : index
    %c0_295 = arith.constant 0 : index
    %1015 = vector.load %arg5[%c126, %c0_294, %c0_295] : memref<144x4x1xf32, #tpu.memory_space<vmem>>, vector<1x4x1xf32>
    %1016 = vector.shape_cast %1015 : vector<1x4x1xf32> to vector<4x1xf32>
    %1017 = vector.extract_strided_slice %876 {offsets = [2, 0], sizes = [1, 256], strides = [1, 1]} : vector<4x256xf32> to vector<1x256xf32>
    %1018 = vector.broadcast %1016 : vector<4x1xf32> to vector<4x256xf32>
    %1019 = vector.broadcast %1017 : vector<1x256xf32> to vector<4x256xf32>
    %1020 = arith.mulf %1018, %1019 : vector<4x256xf32>
    %1021 = arith.addf %993, %1020 : vector<4x256xf32>
    %c127 = arith.constant 127 : index
    %c0_296 = arith.constant 0 : index
    %c0_297 = arith.constant 0 : index
    %1022 = vector.load %arg5[%c127, %c0_296, %c0_297] : memref<144x4x1xf32, #tpu.memory_space<vmem>>, vector<1x4x1xf32>
    %1023 = vector.shape_cast %1022 : vector<1x4x1xf32> to vector<4x1xf32>
    %1024 = vector.extract_strided_slice %876 {offsets = [3, 0], sizes = [1, 256], strides = [1, 1]} : vector<4x256xf32> to vector<1x256xf32>
    %1025 = vector.broadcast %1023 : vector<4x1xf32> to vector<4x256xf32>
    %1026 = vector.broadcast %1024 : vector<1x256xf32> to vector<4x256xf32>
    %1027 = arith.mulf %1025, %1026 : vector<4x256xf32>
    %1028 = arith.addf %1000, %1027 : vector<4x256xf32>
    %c255_i32_298 = arith.constant 255 : i32
    %1029 = tpu.dynamic_rotate %876 by %c255_i32_298 dim 1 : vector<4x256xf32>, i32 -> vector<4x256xf32>
    %1030 = vector.extract_strided_slice %0 {offsets = [5, 0], sizes = [1, 256], strides = [1, 1]} : vector<9x256xf32> to vector<1x256xf32>
    %1031 = vector.broadcast %1030 : vector<1x256xf32> to vector<4x256xf32>
    %1032 = arith.mulf %1029, %1031 : vector<4x256xf32>
    %c128 = arith.constant 128 : index
    %c0_299 = arith.constant 0 : index
    %c0_300 = arith.constant 0 : index
    %1033 = vector.load %arg5[%c128, %c0_299, %c0_300] : memref<144x4x1xf32, #tpu.memory_space<vmem>>, vector<1x4x1xf32>
    %1034 = vector.shape_cast %1033 : vector<1x4x1xf32> to vector<4x1xf32>
    %1035 = vector.extract_strided_slice %1032 {offsets = [0, 0], sizes = [1, 256], strides = [1, 1]} : vector<4x256xf32> to vector<1x256xf32>
    %1036 = vector.broadcast %1034 : vector<4x1xf32> to vector<4x256xf32>
    %1037 = vector.broadcast %1035 : vector<1x256xf32> to vector<4x256xf32>
    %1038 = arith.mulf %1036, %1037 : vector<4x256xf32>
    %1039 = arith.addf %1007, %1038 : vector<4x256xf32>
    %c129 = arith.constant 129 : index
    %c0_301 = arith.constant 0 : index
    %c0_302 = arith.constant 0 : index
    %1040 = vector.load %arg5[%c129, %c0_301, %c0_302] : memref<144x4x1xf32, #tpu.memory_space<vmem>>, vector<1x4x1xf32>
    %1041 = vector.shape_cast %1040 : vector<1x4x1xf32> to vector<4x1xf32>
    %1042 = vector.extract_strided_slice %1032 {offsets = [1, 0], sizes = [1, 256], strides = [1, 1]} : vector<4x256xf32> to vector<1x256xf32>
    %1043 = vector.broadcast %1041 : vector<4x1xf32> to vector<4x256xf32>
    %1044 = vector.broadcast %1042 : vector<1x256xf32> to vector<4x256xf32>
    %1045 = arith.mulf %1043, %1044 : vector<4x256xf32>
    %1046 = arith.addf %1014, %1045 : vector<4x256xf32>
    %c130 = arith.constant 130 : index
    %c0_303 = arith.constant 0 : index
    %c0_304 = arith.constant 0 : index
    %1047 = vector.load %arg5[%c130, %c0_303, %c0_304] : memref<144x4x1xf32, #tpu.memory_space<vmem>>, vector<1x4x1xf32>
    %1048 = vector.shape_cast %1047 : vector<1x4x1xf32> to vector<4x1xf32>
    %1049 = vector.extract_strided_slice %1032 {offsets = [2, 0], sizes = [1, 256], strides = [1, 1]} : vector<4x256xf32> to vector<1x256xf32>
    %1050 = vector.broadcast %1048 : vector<4x1xf32> to vector<4x256xf32>
    %1051 = vector.broadcast %1049 : vector<1x256xf32> to vector<4x256xf32>
    %1052 = arith.mulf %1050, %1051 : vector<4x256xf32>
    %1053 = arith.addf %1021, %1052 : vector<4x256xf32>
    %c131 = arith.constant 131 : index
    %c0_305 = arith.constant 0 : index
    %c0_306 = arith.constant 0 : index
    %1054 = vector.load %arg5[%c131, %c0_305, %c0_306] : memref<144x4x1xf32, #tpu.memory_space<vmem>>, vector<1x4x1xf32>
    %1055 = vector.shape_cast %1054 : vector<1x4x1xf32> to vector<4x1xf32>
    %1056 = vector.extract_strided_slice %1032 {offsets = [3, 0], sizes = [1, 256], strides = [1, 1]} : vector<4x256xf32> to vector<1x256xf32>
    %1057 = vector.broadcast %1055 : vector<4x1xf32> to vector<4x256xf32>
    %1058 = vector.broadcast %1056 : vector<1x256xf32> to vector<4x256xf32>
    %1059 = arith.mulf %1057, %1058 : vector<4x256xf32>
    %1060 = arith.addf %1028, %1059 : vector<4x256xf32>
    %c241_i32_307 = arith.constant 241 : i32
    %1061 = tpu.dynamic_rotate %876 by %c241_i32_307 dim 1 : vector<4x256xf32>, i32 -> vector<4x256xf32>
    %1062 = vector.extract_strided_slice %0 {offsets = [6, 0], sizes = [1, 256], strides = [1, 1]} : vector<9x256xf32> to vector<1x256xf32>
    %1063 = vector.broadcast %1062 : vector<1x256xf32> to vector<4x256xf32>
    %1064 = arith.mulf %1061, %1063 : vector<4x256xf32>
    %c132 = arith.constant 132 : index
    %c0_308 = arith.constant 0 : index
    %c0_309 = arith.constant 0 : index
    %1065 = vector.load %arg5[%c132, %c0_308, %c0_309] : memref<144x4x1xf32, #tpu.memory_space<vmem>>, vector<1x4x1xf32>
    %1066 = vector.shape_cast %1065 : vector<1x4x1xf32> to vector<4x1xf32>
    %1067 = vector.extract_strided_slice %1064 {offsets = [0, 0], sizes = [1, 256], strides = [1, 1]} : vector<4x256xf32> to vector<1x256xf32>
    %1068 = vector.broadcast %1066 : vector<4x1xf32> to vector<4x256xf32>
    %1069 = vector.broadcast %1067 : vector<1x256xf32> to vector<4x256xf32>
    %1070 = arith.mulf %1068, %1069 : vector<4x256xf32>
    %1071 = arith.addf %1039, %1070 : vector<4x256xf32>
    %c133 = arith.constant 133 : index
    %c0_310 = arith.constant 0 : index
    %c0_311 = arith.constant 0 : index
    %1072 = vector.load %arg5[%c133, %c0_310, %c0_311] : memref<144x4x1xf32, #tpu.memory_space<vmem>>, vector<1x4x1xf32>
    %1073 = vector.shape_cast %1072 : vector<1x4x1xf32> to vector<4x1xf32>
    %1074 = vector.extract_strided_slice %1064 {offsets = [1, 0], sizes = [1, 256], strides = [1, 1]} : vector<4x256xf32> to vector<1x256xf32>
    %1075 = vector.broadcast %1073 : vector<4x1xf32> to vector<4x256xf32>
    %1076 = vector.broadcast %1074 : vector<1x256xf32> to vector<4x256xf32>
    %1077 = arith.mulf %1075, %1076 : vector<4x256xf32>
    %1078 = arith.addf %1046, %1077 : vector<4x256xf32>
    %c134 = arith.constant 134 : index
    %c0_312 = arith.constant 0 : index
    %c0_313 = arith.constant 0 : index
    %1079 = vector.load %arg5[%c134, %c0_312, %c0_313] : memref<144x4x1xf32, #tpu.memory_space<vmem>>, vector<1x4x1xf32>
    %1080 = vector.shape_cast %1079 : vector<1x4x1xf32> to vector<4x1xf32>
    %1081 = vector.extract_strided_slice %1064 {offsets = [2, 0], sizes = [1, 256], strides = [1, 1]} : vector<4x256xf32> to vector<1x256xf32>
    %1082 = vector.broadcast %1080 : vector<4x1xf32> to vector<4x256xf32>
    %1083 = vector.broadcast %1081 : vector<1x256xf32> to vector<4x256xf32>
    %1084 = arith.mulf %1082, %1083 : vector<4x256xf32>
    %1085 = arith.addf %1053, %1084 : vector<4x256xf32>
    %c135 = arith.constant 135 : index
    %c0_314 = arith.constant 0 : index
    %c0_315 = arith.constant 0 : index
    %1086 = vector.load %arg5[%c135, %c0_314, %c0_315] : memref<144x4x1xf32, #tpu.memory_space<vmem>>, vector<1x4x1xf32>
    %1087 = vector.shape_cast %1086 : vector<1x4x1xf32> to vector<4x1xf32>
    %1088 = vector.extract_strided_slice %1064 {offsets = [3, 0], sizes = [1, 256], strides = [1, 1]} : vector<4x256xf32> to vector<1x256xf32>
    %1089 = vector.broadcast %1087 : vector<4x1xf32> to vector<4x256xf32>
    %1090 = vector.broadcast %1088 : vector<1x256xf32> to vector<4x256xf32>
    %1091 = arith.mulf %1089, %1090 : vector<4x256xf32>
    %1092 = arith.addf %1060, %1091 : vector<4x256xf32>
    %c240_i32_316 = arith.constant 240 : i32
    %1093 = tpu.dynamic_rotate %876 by %c240_i32_316 dim 1 : vector<4x256xf32>, i32 -> vector<4x256xf32>
    %1094 = vector.extract_strided_slice %0 {offsets = [7, 0], sizes = [1, 256], strides = [1, 1]} : vector<9x256xf32> to vector<1x256xf32>
    %1095 = vector.broadcast %1094 : vector<1x256xf32> to vector<4x256xf32>
    %1096 = arith.mulf %1093, %1095 : vector<4x256xf32>
    %c136 = arith.constant 136 : index
    %c0_317 = arith.constant 0 : index
    %c0_318 = arith.constant 0 : index
    %1097 = vector.load %arg5[%c136, %c0_317, %c0_318] : memref<144x4x1xf32, #tpu.memory_space<vmem>>, vector<1x4x1xf32>
    %1098 = vector.shape_cast %1097 : vector<1x4x1xf32> to vector<4x1xf32>
    %1099 = vector.extract_strided_slice %1096 {offsets = [0, 0], sizes = [1, 256], strides = [1, 1]} : vector<4x256xf32> to vector<1x256xf32>
    %1100 = vector.broadcast %1098 : vector<4x1xf32> to vector<4x256xf32>
    %1101 = vector.broadcast %1099 : vector<1x256xf32> to vector<4x256xf32>
    %1102 = arith.mulf %1100, %1101 : vector<4x256xf32>
    %1103 = arith.addf %1071, %1102 : vector<4x256xf32>
    %c137 = arith.constant 137 : index
    %c0_319 = arith.constant 0 : index
    %c0_320 = arith.constant 0 : index
    %1104 = vector.load %arg5[%c137, %c0_319, %c0_320] : memref<144x4x1xf32, #tpu.memory_space<vmem>>, vector<1x4x1xf32>
    %1105 = vector.shape_cast %1104 : vector<1x4x1xf32> to vector<4x1xf32>
    %1106 = vector.extract_strided_slice %1096 {offsets = [1, 0], sizes = [1, 256], strides = [1, 1]} : vector<4x256xf32> to vector<1x256xf32>
    %1107 = vector.broadcast %1105 : vector<4x1xf32> to vector<4x256xf32>
    %1108 = vector.broadcast %1106 : vector<1x256xf32> to vector<4x256xf32>
    %1109 = arith.mulf %1107, %1108 : vector<4x256xf32>
    %1110 = arith.addf %1078, %1109 : vector<4x256xf32>
    %c138 = arith.constant 138 : index
    %c0_321 = arith.constant 0 : index
    %c0_322 = arith.constant 0 : index
    %1111 = vector.load %arg5[%c138, %c0_321, %c0_322] : memref<144x4x1xf32, #tpu.memory_space<vmem>>, vector<1x4x1xf32>
    %1112 = vector.shape_cast %1111 : vector<1x4x1xf32> to vector<4x1xf32>
    %1113 = vector.extract_strided_slice %1096 {offsets = [2, 0], sizes = [1, 256], strides = [1, 1]} : vector<4x256xf32> to vector<1x256xf32>
    %1114 = vector.broadcast %1112 : vector<4x1xf32> to vector<4x256xf32>
    %1115 = vector.broadcast %1113 : vector<1x256xf32> to vector<4x256xf32>
    %1116 = arith.mulf %1114, %1115 : vector<4x256xf32>
    %1117 = arith.addf %1085, %1116 : vector<4x256xf32>
    %c139 = arith.constant 139 : index
    %c0_323 = arith.constant 0 : index
    %c0_324 = arith.constant 0 : index
    %1118 = vector.load %arg5[%c139, %c0_323, %c0_324] : memref<144x4x1xf32, #tpu.memory_space<vmem>>, vector<1x4x1xf32>
    %1119 = vector.shape_cast %1118 : vector<1x4x1xf32> to vector<4x1xf32>
    %1120 = vector.extract_strided_slice %1096 {offsets = [3, 0], sizes = [1, 256], strides = [1, 1]} : vector<4x256xf32> to vector<1x256xf32>
    %1121 = vector.broadcast %1119 : vector<4x1xf32> to vector<4x256xf32>
    %1122 = vector.broadcast %1120 : vector<1x256xf32> to vector<4x256xf32>
    %1123 = arith.mulf %1121, %1122 : vector<4x256xf32>
    %1124 = arith.addf %1092, %1123 : vector<4x256xf32>
    %c239_i32_325 = arith.constant 239 : i32
    %1125 = tpu.dynamic_rotate %876 by %c239_i32_325 dim 1 : vector<4x256xf32>, i32 -> vector<4x256xf32>
    %1126 = vector.extract_strided_slice %0 {offsets = [8, 0], sizes = [1, 256], strides = [1, 1]} : vector<9x256xf32> to vector<1x256xf32>
    %1127 = vector.broadcast %1126 : vector<1x256xf32> to vector<4x256xf32>
    %1128 = arith.mulf %1125, %1127 : vector<4x256xf32>
    %c140 = arith.constant 140 : index
    %c0_326 = arith.constant 0 : index
    %c0_327 = arith.constant 0 : index
    %1129 = vector.load %arg5[%c140, %c0_326, %c0_327] : memref<144x4x1xf32, #tpu.memory_space<vmem>>, vector<1x4x1xf32>
    %1130 = vector.shape_cast %1129 : vector<1x4x1xf32> to vector<4x1xf32>
    %1131 = vector.extract_strided_slice %1128 {offsets = [0, 0], sizes = [1, 256], strides = [1, 1]} : vector<4x256xf32> to vector<1x256xf32>
    %1132 = vector.broadcast %1130 : vector<4x1xf32> to vector<4x256xf32>
    %1133 = vector.broadcast %1131 : vector<1x256xf32> to vector<4x256xf32>
    %1134 = arith.mulf %1132, %1133 : vector<4x256xf32>
    %1135 = arith.addf %1103, %1134 : vector<4x256xf32>
    %c141 = arith.constant 141 : index
    %c0_328 = arith.constant 0 : index
    %c0_329 = arith.constant 0 : index
    %1136 = vector.load %arg5[%c141, %c0_328, %c0_329] : memref<144x4x1xf32, #tpu.memory_space<vmem>>, vector<1x4x1xf32>
    %1137 = vector.shape_cast %1136 : vector<1x4x1xf32> to vector<4x1xf32>
    %1138 = vector.extract_strided_slice %1128 {offsets = [1, 0], sizes = [1, 256], strides = [1, 1]} : vector<4x256xf32> to vector<1x256xf32>
    %1139 = vector.broadcast %1137 : vector<4x1xf32> to vector<4x256xf32>
    %1140 = vector.broadcast %1138 : vector<1x256xf32> to vector<4x256xf32>
    %1141 = arith.mulf %1139, %1140 : vector<4x256xf32>
    %1142 = arith.addf %1110, %1141 : vector<4x256xf32>
    %c142 = arith.constant 142 : index
    %c0_330 = arith.constant 0 : index
    %c0_331 = arith.constant 0 : index
    %1143 = vector.load %arg5[%c142, %c0_330, %c0_331] : memref<144x4x1xf32, #tpu.memory_space<vmem>>, vector<1x4x1xf32>
    %1144 = vector.shape_cast %1143 : vector<1x4x1xf32> to vector<4x1xf32>
    %1145 = vector.extract_strided_slice %1128 {offsets = [2, 0], sizes = [1, 256], strides = [1, 1]} : vector<4x256xf32> to vector<1x256xf32>
    %1146 = vector.broadcast %1144 : vector<4x1xf32> to vector<4x256xf32>
    %1147 = vector.broadcast %1145 : vector<1x256xf32> to vector<4x256xf32>
    %1148 = arith.mulf %1146, %1147 : vector<4x256xf32>
    %1149 = arith.addf %1117, %1148 : vector<4x256xf32>
    %c143 = arith.constant 143 : index
    %c0_332 = arith.constant 0 : index
    %c0_333 = arith.constant 0 : index
    %1150 = vector.load %arg5[%c143, %c0_332, %c0_333] : memref<144x4x1xf32, #tpu.memory_space<vmem>>, vector<1x4x1xf32>
    %1151 = vector.shape_cast %1150 : vector<1x4x1xf32> to vector<4x1xf32>
    %1152 = vector.extract_strided_slice %1128 {offsets = [3, 0], sizes = [1, 256], strides = [1, 1]} : vector<4x256xf32> to vector<1x256xf32>
    %1153 = vector.broadcast %1151 : vector<4x1xf32> to vector<4x256xf32>
    %1154 = vector.broadcast %1152 : vector<1x256xf32> to vector<4x256xf32>
    %1155 = arith.mulf %1153, %1154 : vector<4x256xf32>
    %1156 = arith.addf %1124, %1155 : vector<4x256xf32>
    %1157 = arith.addf %1135, %1142 : vector<4x256xf32>
    %1158 = arith.addf %1149, %1156 : vector<4x256xf32>
    %1159 = arith.addf %1157, %1158 : vector<4x256xf32>
    %c3_334 = arith.constant 3 : index
    %c0_335 = arith.constant 0 : index
    %c0_336 = arith.constant 0 : index
    %1160 = vector.load %arg6[%c3_334, %c0_335, %c0_336] : memref<4x4x1xf32, #tpu.memory_space<vmem>>, vector<1x4x1xf32>
    %1161 = vector.shape_cast %1160 : vector<1x4x1xf32> to vector<4x1xf32>
    %1162 = vector.broadcast %1161 : vector<4x1xf32> to vector<4x256xf32>
    %1163 = arith.addf %1159, %1162 : vector<4x256xf32>
    %1164 = arith.addf %1163, %585 : vector<4x256xf32>
    %c0_337 = arith.constant 0 : index
    %c0_338 = arith.constant 0 : index
    %c0_339 = arith.constant 0 : index
    %1165 = vector.load %arg7[%c0_337, %c0_338, %c0_339] : memref<4x4x1xf32, #tpu.memory_space<vmem>>, vector<1x4x1xf32>
    %1166 = vector.shape_cast %1165 : vector<1x4x1xf32> to vector<4x1xf32>
    %1167 = vector.extract_strided_slice %1164 {offsets = [0, 0], sizes = [1, 256], strides = [1, 1]} : vector<4x256xf32> to vector<1x256xf32>
    %1168 = vector.broadcast %1166 : vector<4x1xf32> to vector<4x256xf32>
    %1169 = vector.broadcast %1167 : vector<1x256xf32> to vector<4x256xf32>
    %1170 = arith.mulf %1168, %1169 : vector<4x256xf32>
    %c1_340 = arith.constant 1 : index
    %c0_341 = arith.constant 0 : index
    %c0_342 = arith.constant 0 : index
    %1171 = vector.load %arg7[%c1_340, %c0_341, %c0_342] : memref<4x4x1xf32, #tpu.memory_space<vmem>>, vector<1x4x1xf32>
    %1172 = vector.shape_cast %1171 : vector<1x4x1xf32> to vector<4x1xf32>
    %1173 = vector.extract_strided_slice %1164 {offsets = [1, 0], sizes = [1, 256], strides = [1, 1]} : vector<4x256xf32> to vector<1x256xf32>
    %1174 = vector.broadcast %1172 : vector<4x1xf32> to vector<4x256xf32>
    %1175 = vector.broadcast %1173 : vector<1x256xf32> to vector<4x256xf32>
    %1176 = arith.mulf %1174, %1175 : vector<4x256xf32>
    %c2_343 = arith.constant 2 : index
    %c0_344 = arith.constant 0 : index
    %c0_345 = arith.constant 0 : index
    %1177 = vector.load %arg7[%c2_343, %c0_344, %c0_345] : memref<4x4x1xf32, #tpu.memory_space<vmem>>, vector<1x4x1xf32>
    %1178 = vector.shape_cast %1177 : vector<1x4x1xf32> to vector<4x1xf32>
    %1179 = vector.extract_strided_slice %1164 {offsets = [2, 0], sizes = [1, 256], strides = [1, 1]} : vector<4x256xf32> to vector<1x256xf32>
    %1180 = vector.broadcast %1178 : vector<4x1xf32> to vector<4x256xf32>
    %1181 = vector.broadcast %1179 : vector<1x256xf32> to vector<4x256xf32>
    %1182 = arith.mulf %1180, %1181 : vector<4x256xf32>
    %c3_346 = arith.constant 3 : index
    %c0_347 = arith.constant 0 : index
    %c0_348 = arith.constant 0 : index
    %1183 = vector.load %arg7[%c3_346, %c0_347, %c0_348] : memref<4x4x1xf32, #tpu.memory_space<vmem>>, vector<1x4x1xf32>
    %1184 = vector.shape_cast %1183 : vector<1x4x1xf32> to vector<4x1xf32>
    %1185 = vector.extract_strided_slice %1164 {offsets = [3, 0], sizes = [1, 256], strides = [1, 1]} : vector<4x256xf32> to vector<1x256xf32>
    %1186 = vector.broadcast %1184 : vector<4x1xf32> to vector<4x256xf32>
    %1187 = vector.broadcast %1185 : vector<1x256xf32> to vector<4x256xf32>
    %1188 = arith.mulf %1186, %1187 : vector<4x256xf32>
    %1189 = arith.addf %1170, %1176 : vector<4x256xf32>
    %1190 = arith.addf %1182, %1188 : vector<4x256xf32>
    %1191 = arith.addf %1189, %1190 : vector<4x256xf32>
    %c0_349 = arith.constant 0 : index
    %c0_350 = arith.constant 0 : index
    %1192 = vector.load %arg8[%c0_349, %c0_350] : memref<4x1xf32, #tpu.memory_space<vmem>>, vector<4x1xf32>
    %1193 = vector.broadcast %1192 : vector<4x1xf32> to vector<4x256xf32>
    %1194 = arith.addf %1191, %1193 : vector<4x256xf32>
    %cst_351 = arith.constant dense<0.000000e+00> : vector<4x1024xf32>
    %1195 = tpu.matmul %1194, %1, %cst_351 {dimension_numbers = #tpu.dot_dimension_numbers<[1], [0], [0], [1], [0, 0, 1, 1], [], []>} : vector<4x256xf32>, vector<256x1024xf32>, vector<4x1024xf32> -> vector<4x1024xf32>
    %c0_352 = arith.constant 0 : index
    %c0_353 = arith.constant 0 : index
    %c0_354 = arith.constant 0 : index
    %1196 = vector.load %arg9[%c0_352, %c0_353, %c0_354] : memref<1x4x1024xf32, #tpu.memory_space<vmem>>, vector<1x4x1024xf32>
    %1197 = vector.shape_cast %1196 : vector<1x4x1024xf32> to vector<4x1024xf32>
    %1198 = vector.shape_cast %1195 : vector<4x1024xf32> to vector<1x4x1024xf32>
    tpu.vector_store %arg9[%c0_352, %c0_353, %c0_354], %1198 {strides = array<i32>} : memref<1x4x1024xf32, #tpu.memory_space<vmem>>, vector<1x4x1024xf32>,
    return
  }
  func.func @transform_0(%arg0: i32) -> (i32, i32, i32) {
    %c0_i32 = arith.constant 0 : i32
    %c0_i32_0 = arith.constant 0 : i32
    %c0_i32_1 = arith.constant 0 : i32
    return %arg0, %c0_i32, %c0_i32_0 : i32, i32, i32
  }
  func.func @transform_1(%arg0: i32) -> (i32, i32, i32) {
    %c0_i32 = arith.constant 0 : i32
    %c0_i32_0 = arith.constant 0 : i32
    %c0_i32_1 = arith.constant 0 : i32
    return %arg0, %c0_i32, %c0_i32_0 : i32, i32, i32
  }
  func.func @transform_2(%arg0: i32) -> (i32, i32) {
    %c0_i32 = arith.constant 0 : i32
    %c0_i32_0 = arith.constant 0 : i32
    %c0_i32_1 = arith.constant 0 : i32
    return %c0_i32, %c0_i32_0 : i32, i32
  }
  func.func @transform_3(%arg0: i32) -> (i32, i32) {
    %c0_i32 = arith.constant 0 : i32
    %c0_i32_0 = arith.constant 0 : i32
    %c0_i32_1 = arith.constant 0 : i32
    return %c0_i32, %c0_i32_0 : i32, i32
  }
  func.func @transform_4(%arg0: i32) -> (i32, i32, i32) {
    %c0_i32 = arith.constant 0 : i32
    %c0_i32_0 = arith.constant 0 : i32
    %c0_i32_1 = arith.constant 0 : i32
    %c0_i32_2 = arith.constant 0 : i32
    return %c0_i32, %c0_i32_0, %c0_i32_1 : i32, i32, i32
  }
  func.func @transform_5(%arg0: i32) -> (i32, i32, i32) {
    %c0_i32 = arith.constant 0 : i32
    %c0_i32_0 = arith.constant 0 : i32
    %c0_i32_1 = arith.constant 0 : i32
    %c0_i32_2 = arith.constant 0 : i32
    return %c0_i32, %c0_i32_0, %c0_i32_1 : i32, i32, i32
  }
  func.func @transform_6(%arg0: i32) -> (i32, i32, i32) {
    %c0_i32 = arith.constant 0 : i32
    %c0_i32_0 = arith.constant 0 : i32
    %c0_i32_1 = arith.constant 0 : i32
    %c0_i32_2 = arith.constant 0 : i32
    return %c0_i32, %c0_i32_0, %c0_i32_1 : i32, i32, i32
  }
  func.func @transform_7(%arg0: i32) -> (i32, i32) {
    %c0_i32 = arith.constant 0 : i32
    %c0_i32_0 = arith.constant 0 : i32
    %c0_i32_1 = arith.constant 0 : i32
    return %c0_i32, %c0_i32_0 : i32, i32
  }
  func.func @transform_8(%arg0: i32) -> (i32, i32, i32) {
    %c0_i32 = arith.constant 0 : i32
    %c0_i32_0 = arith.constant 0 : i32
    %c0_i32_1 = arith.constant 0 : i32
    return %arg0, %c0_i32, %c0_i32_0 : i32, i32, i32
  }
}

</mosaic_0001>

<bundles_post_ra>
// kernel: tpu_custom_call.1
= control target key start
LH: loop header
LB: loop body
LE: loop exit
PB: predicated region body
PF: predicated region fallthrough
CT: control target
= control target key end

     0   :  { %s5691_s0 = inlined_call_operand.vmem [shape: f32[2,4,256], index: 0, kind: input, shape index: {}]   ;;  %s5692_s1 = inlined_call_operand.vmem [shape: f32[2,4,256], index: 1, kind: input, shape index: {}]   ;;  %s5693_s2 = inlined_call_operand.vmem [shape: f32[9,256], index: 2, kind: input, shape index: {}]   ;;  %s5694_s3 = inlined_call_operand.hbm [shape: f32[256,1024], index: 3, kind: input, shape index: {}]   ;;  %s5695_s4 = inlined_call_operand.vmem [shape: f32[144,4,1], index: 4, kind: input, shape index: {}]   ;;  %s5696_s5 = inlined_call_operand.vmem [shape: f32[4,4,1], index: 5, kind: input, shape index: {}]   ;;  %s5697_s6 = inlined_call_operand.vmem [shape: f32[4,4,1], index: 6, kind: input, shape index: {}]   ;;  %s5698_s7 = inlined_call_operand.vmem [shape: f32[4,1], index: 7, kind: input, shape index: {}]   ;;  %s5699_s8 = inlined_call_operand.hbm [shape: f32[2,4,1024], index: 8, kind: output, shape index: {}]  }
   0x1   :  { %5765 = sst [smem:[#allocation29_spill]] %s5691_s0 }
   0x2   :  { %5766 = sst [smem:[#allocation30_spill]] %s5692_s1 }
   0x3   :  { %5767 = sst [smem:[#allocation31_spill]] %s5694_s3 }
   0x4   :  { %13 = vsyncpa [#allocation3], 0 }
   0x5   :  { %14 = vsyncpa [#allocation4], 0 }
   0x6   :  { %16 = vsyncpa [#allocation4 + $0x1], 0  ;;  %s3820_s27 = smov 0   ;;  %s3822_s28 = smov 0  }
   0x7   :  { %s3824_s29 = smov 0   ;;  %s3826_s30 = smov 0  }
   0x8 LB: > { %s3841_s9 = sadd.s32 4294967295, %s3761_s30   ;;  %s3427_s10 = sadd.s32 4294967294, %s3761_s30   ;;  %s3761_s30 = sphi %s3826_s30, %s5873_s30   ;;  %s3757_s29 = sphi %s3824_s29, %s5872_s29   ;;  %s3753_s28 = sphi %s3822_s28, %s5871_s28   ;;  %s3749_s27 = sphi %s3820_s27, %s5870_s27  }
   0x9   : > { %s3845_s11 = sadd.s32 1, %s3761_s30   ;;  %s207_s12 = sadd.s32 1, %s3757_s29 }
   0xa   : > { %s204_s13 = ssub.s32 %s3761_s30, %s3845_s11  ;;  %p217_p0 = scmp.ne.s32.totalorder %s3757_s29, %s3753_s28 }
   0xb   : > { %p205_p1 = scmp.eq.s32.totalorder %s204_s13, 0  ;;  %p218_p2 = scmp.eq.s32.totalorder %s3841_s9, 1 }
   0xc   : > { %p223_p3 = scmp.ne.s32.totalorder %s3753_s28, %s3749_s27  ;;  %p224_p4 = scmp.eq.s32.totalorder %s3427_s10, 1 }
   0xd   : > { %s3856_s14 = scalar_select %p205_p1, %s3757_s29, %s207_s12  }
   0xe   : > { %p3858_p5 = por %p218_p2, %p217_p0  ;;  %p3862_p6 = por %p224_p4, %p223_p3 }
   0xf   : > { %p3428_p7 = scmp.ge.s32.totalorder %s3761_s30, 1  ;;  %p231_p8 = scmp.lt.s32.totalorder %s3761_s30, 3 }
  0x10   : > { %p3609_p9 = scmp.eq.s32.totalorder %s3841_s9, 0  ;;  %s5770_s3 = sld [smem:[#allocation31_spill]] }
  0x11   : > { %p232_p10 = pnand %p3428_p7, %p231_p8  ;;  %s3763_s20 = smov [#allocation2]  }
  0x12   : > { %s247_s21 = sshll.u32 %s3763_s20, 4  ;;  %s3764_s22 = smov 1024   ;;  %s248_s21 = int_to_ptr.vmem [resolvable:$true] %s247_s21 }
  0x13   : > { %p3601_p11 = pneg %p232_p10  ;;  %s3765_s23 = smov 64  }
  0x14   : > { %291 = sbr.rel (%p232_p10) target bundleno = 1165 (0x48d), region = 52 }
  0x15   : > { %p3602_p12 = pnand %p3609_p9, %p3601_p11 }
  0x16   : > { %s245_s19 = sshll.u32 %s5770_s3, 4  ;;  %s246_s19 = int_to_ptr.hbm [resolvable:$true] %s245_s19 }
  0x17   : > { %3604 = dma.hbm_to_vmem [thread:$0]  (!%p3602_p12), %s246_s19, 32768, %s248_s21, [#allocation3], %s3764_s22, %s3764_s22, %s3765_s23  }
  0x19   : > { %3740 = dma.done.wait (%p3609_p9), [#allocation3], 32768  }
  0x1a   : > { %3742 = vsyncadd (%p3609_p9), [#allocation3], 4294934528  ;;  %p331_p13 = scmp.lt.s32.totalorder %s3841_s9, 1  ;;  %v3766_v0 = vmov 0   ;;  %s5771_s1 = sld [smem:[#allocation30_spill]]  ;;  %vm1776_vm8 = vcmask 1043456  }
  0x1b   : > { %3657 = vset.pattern.permute.xlu2 %v3766_v0  ;;  %3656 = vset.pattern.permute.xlu1 %v3766_v0  ;;  %v3439_v1 = vld [vmem:[%s5695_s4 + $0x8] sm:$0xf]  ;;  %v623_v2 = vld [vmem:[%s5695_s4] sm:$0xf]  ;;  %v3440_v5 = vld [vmem:[%s5695_s4 + $0xc] sm:$0xf] }
  0x1c   : > { %s3880_s24 = scalar_select %p331_p13, %s3841_s9, 1  ;;  %3658 = vset.pattern.permute.xlu0 %v3766_v0  ;;  %648 = vperm.xlu2 %3657, %v3439_v1   ;;  %v3438_v6 = vld [vmem:[%s5695_s4 + $0x4] sm:$0xf]  ;;  %v3441_v9 = vld [vmem:[%s5695_s4 + $0x10] sm:$0xf] }
  0x1d   : > { %626 = vperm.xlu1 %3656, %v623_v2   ;;  %s5728_s26 = smov 17   ;;  %v3443_v10 = vld [vmem:[%s5695_s4 + $0x18] sm:$0xf]  ;;  %v3444_v13 = vld [vmem:[%s5695_s4 + $0x1c] sm:$0xf]  ;;  %s5726_s20 = smov 16  }
  0x1e   : > { %s5700_s25 = sshll.u32 %s3880_s24, 3  ;;  %s5703_s21 = smov 15   ;;  %v3442_v16 = vld [vmem:[%s5695_s4 + $0x14] sm:$0xf]  ;;  %v3447_v19 = vld [vmem:[%s5695_s4 + $0x28] sm:$0xf] }
  0x1f   : > { %v3446_v20 = vld [vmem:[%s5695_s4 + $0x24] sm:$0xf]  ;;  %v3445_v21 = vld [vmem:[%s5695_s4 + $0x20] sm:$0xf]  ;;  %v3448_v22 = vld [vmem:[%s5695_s4 + $0x2c] sm:$0xf] }
  0x20   : > { %s340_s12 = scalar_lea.vmem %s5771_s1, %s5700_s25  ;;  %s5701_s25 = smov 1   ;;  %v3451_v25 = vld [vmem:[%s5695_s4 + $0x38] sm:$0xf]  ;;  %v3450_v26 = vld [vmem:[%s5695_s4 + $0x34] sm:$0xf] }
  0x21   : > { %v3894_v3 = vld [vmem:[%s340_s12] sm:$0xff]  ;;  %v3449_v27 = vld [vmem:[%s5695_s4 + $0x30] sm:$0xf]  ;;  %v3452_v30 = vld [vmem:[%s5695_s4 + $0x3c] sm:$0xf]  ;;  %s5730_s18 = smov 127  }
  0x22   : > { %v3897_v4 = vmax.f32 %v3894_v3, 0.0  ;;  %v3454_v28 = vld [vmem:[%s5695_s4 + $0x44] sm:$0xf]  ;;  %v3453_v29 = vld [vmem:[%s5695_s4 + $0x40] sm:$0xf]  ;;  %s5705_s17 = smov 113  }
  0x23   : > { %v3456_v33 = vld [vmem:[%s5695_s4 + $0x4c] sm:$0xf]  ;;  %v3455_v34 = vld [vmem:[%s5695_s4 + $0x48] sm:$0xf]  ;;  %v3457_v35 = vld [vmem:[%s5695_s4 + $0x50] sm:$0xf] }
  0x24   : > { %605 = vst [vmem:[#allocation1] ss:$2 sm:$0xff] %v3897_v4  ;;  %659 = vperm.xlu2 %3657, %v3440_v5   ;;  %v3458_v36 = vld [vmem:[%s5695_s4 + $0x54] sm:$0xf]  ;;  %v3460_v39 = vld [vmem:[%s5695_s4 + $0x5c] sm:$0xf] }
  0x25   : > { %637 = vperm.xlu1 %3656, %v3438_v6   ;;  %v3459_v40 = vld [vmem:[%s5695_s4 + $0x58] sm:$0xf]  ;;  %v3461_v42 = vld [vmem:[%s5695_s4 + $0x60] sm:$0xf]  ;;  %v3462_v43 = vld [vmem:[%s5695_s4 + $0x64] sm:$0xf] }
  0x26   : > { %v3464_v47 = vld [vmem:[%s5695_s4 + $0x6c] sm:$0xf]  ;;  %v3463_v48 = vld [vmem:[%s5695_s4 + $0x68] sm:$0xf]  ;;  %v3465_v49 = vld [vmem:[%s5695_s4 + $0x70] sm:$0xf] }
  0x27   : > { %v3466_v50 = vld [vmem:[%s5695_s4 + $0x74] sm:$0xf]  ;;  %v3468_v53 = vld [vmem:[%s5695_s4 + $0x7c] sm:$0xf]  ;;  %v3467_v55 = vld [vmem:[%s5695_s4 + $0x78] sm:$0xf] }
  0x28   : > { %v3469_v58 = vld [vmem:[%s5695_s4 + $0x80] sm:$0xf]  ;;  %v3470_v59 = vld [vmem:[%s5695_s4 + $0x84] sm:$0xf]  ;;  %v3472_v63 = vld [vmem:[%s5695_s4 + $0x8c] sm:$0xf] }
  0x29   : > { %v1216_v0 = vld [vmem:[%s5696_s5] sm:$0xf]  ;;  %v3471_v1 = vld [vmem:[%s5695_s4 + $0x88] sm:$0xf]  ;;  %v3475_v6 = vld [vmem:[%s5695_s4 + $0x98] sm:$0xf] }
  0x2a   : > { %s5785_s22 = smov 113   ;;  %s5787_s12 = smov 1  }
  0x2b   : > { %v606_v7 = vld.sshfl [vmem:[#allocation1] sm:$0xff pattern:$0x75316420]  ;;  %v607_v8 = vld.sshfl [vmem:[#allocation1 + $0x8] sm:$0xff pattern:$0x75316420] }
  0x2c   : > { %610 = vrot.lane.b32.xlu0 %v606_v7, %s5728_s26  ;;  %666 = vst [vmem:[#allocation1] ss:$2 sm:$0xff] %v3897_v4  ;;  %686 = vperm.xlu2 %3657, %v3441_v9   ;;  %v3473_v7 = vld [vmem:[%s5695_s4 + $0x90] sm:$0xf]  ;;  %s5788_s13 = smov 127   ;;  %s5789_s23 = smov 111  }
  0x2d   : > { %712 = vperm.xlu1 %3656, %v3443_v10   ;;  %s5803_s10 = sshll.u32 %s3880_s24, 3  ;;  %s5804_s0 = sld [smem:[#allocation29_spill]] }
  0x2e   : > { %s5805_s24 = smov 17   ;;  %s3594_s3 = sshll.u32 %s3841_s9, 5 }
  0x33   : > { %v668_v11 = vld.sshfl [vmem:[#allocation1 + $0x8] sm:$0xff pattern:$0x75316420]  ;;  %v667_v12 = vld.sshfl [vmem:[#allocation1] sm:$0xff pattern:$0x75316420]  ;;  %s335_s19 = scalar_lea.vmem %s5804_s0, %s5803_s10 }
  0x34   : > { %612 = vrot.lane.b32.xlu0 %v607_v8, %s5728_s26  ;;  %734 = vst [vmem:[#allocation1] ss:$2 sm:$0xff] %v3897_v4  ;;  %725 = vperm.xlu2 %3657, %v3444_v13   ;;  %v3474_v8 = vld [vmem:[%s5695_s4 + $0x94] sm:$0xf] }
  0x35   : > { %673 = vrot.lane.b32.xlu1 %v668_v11, %s5726_s20  ;;  %v3479_v11 = vld [vmem:[%s5695_s4 + $0xa8] sm:$0xf] }
  0x3b   : > { %v736_v14 = vld.sshfl [vmem:[#allocation1 + $0x8] sm:$0xff pattern:$0x75316420]  ;;  %v735_v15 = vld.sshfl [vmem:[#allocation1] sm:$0xff pattern:$0x75316420] }
  0x3c   : > { %671 = vrot.lane.b32.xlu0 %v667_v12, %s5726_s20  ;;  %802 = vst [vmem:[#allocation1] ss:$2 sm:$0xff] %v3897_v4  ;;  %741 = vrot.lane.b32.xlu2 %v736_v14, %s5703_s21  ;;  %v3476_v12 = vld [vmem:[%s5695_s4 + $0x9c] sm:$0xf]  ;;  %v3478_v14 = vld [vmem:[%s5695_s4 + $0xa4] sm:$0xf] }
  0x3d   : > { %739 = vrot.lane.b32.xlu1 %v735_v15, %s5703_s21  ;;  %s5707_s21 = smov 111  }
  0x43   : > { %v804_v17 = vld.sshfl [vmem:[#allocation1 + $0x8] sm:$0xff pattern:$0x75316420]  ;;  %v803_v18 = vld.sshfl [vmem:[#allocation1] sm:$0xff pattern:$0x75316420] }
  0x44   : > { %699 = vperm.xlu0 %3658, %v3442_v16   ;;  %938 = vst [vmem:[#allocation1] ss:$2 sm:$0xff] %v3897_v4  ;;  %780 = vperm.xlu2 %3657, %v3447_v19  }
  0x45   : > { %767 = vperm.xlu1 %3656, %v3446_v20   ;;  %v3482_v20 = vld [vmem:[%s5695_s4 + $0xb4] sm:$0xf] }
  0x4b   : > { %v939_v23 = vld.sshfl [vmem:[#allocation1] sm:$0xff pattern:$0x75316420]  ;;  %v940_v24 = vld.sshfl [vmem:[#allocation1 + $0x8] sm:$0xff pattern:$0x75316420] }
  0x4c   : > { %754 = vperm.xlu0 %3658, %v3445_v21   ;;  %809 = vrot.lane.b32.xlu2 %v804_v17, %s5701_s25  ;;  %1006 = vst [vmem:[#allocation1] ss:$2 sm:$0xff] %v3897_v4  ;;  %v3483_v17 = vld [vmem:[%s5695_s4 + $0xb8] sm:$0xf] }
  0x4d   : > { %807 = vrot.lane.b32.xlu1 %v803_v18, %s5701_s25  ;;  %s5732_s25 = smov 112   ;;  %v3477_v18 = vld [vmem:[%s5695_s4 + $0xa0] sm:$0xf] }
  0x53   : > { %v1007_v31 = vld.sshfl [vmem:[#allocation1] sm:$0xff pattern:$0x75316420]  ;;  %v1008_v32 = vld.sshfl [vmem:[#allocation1 + $0x8] sm:$0xff pattern:$0x75316420] }
  0x54   : > { %793 = vperm.xlu0 %3658, %v3448_v22   ;;  %848 = vperm.xlu2 %3657, %v3451_v25   ;;  %1074 = vst [vmem:[#allocation1] ss:$2 sm:$0xff] %v3897_v4  ;;  %v3486_v25 = vld [vmem:[%s5695_s4 + $0xc4] sm:$0xf] }
  0x55   : > { %835 = vperm.xlu1 %3656, %v3450_v26  }
  0x5b   : > { %v1075_v37 = vld.sshfl [vmem:[#allocation1] sm:$0xff pattern:$0x75316420]  ;;  %v1076_v38 = vld.sshfl [vmem:[#allocation1 + $0x8] sm:$0xff pattern:$0x75316420] }
  0x5c   : > { %822 = vperm.xlu0 %3658, %v3449_v27   ;;  %891 = vperm.xlu2 %3657, %v3454_v28   ;;  %1142 = vst [vmem:[#allocation1] ss:$2 sm:$0xff] %v3897_v4 }
  0x5d   : > { %874 = vperm.xlu1 %3656, %v3453_v29   ;;  %v3481_v29 = vld [vmem:[%s5695_s4 + $0xb0] sm:$0xf] }
  0x63   : > { %v1143_v44 = vld.sshfl [vmem:[#allocation1] sm:$0xff pattern:$0x75316420]  ;;  %v1144_v45 = vld.sshfl [vmem:[#allocation1 + $0x8] sm:$0xff pattern:$0x75316420] }
  0x64   : > { %861 = vperm.xlu0 %3658, %v3452_v30   ;;  %943 = vrot.lane.b32.xlu2 %v939_v23, %s5730_s18  ;;  %1766 = vst [vmem:[#allocation1] ss:$2 sm:$0xff] %v3894_v3  ;;  %v3487_v23 = vld [vmem:[%s5695_s4 + $0xc8] sm:$0xf]  ;;  %v614_v30 = vlaneseq }
  0x65   : > { %925 = vperm.xlu1 %3656, %v3456_v33  }
  0x6c   : > { %908 = vperm.xlu0 %3658, %v3455_v34   ;;  %971 = vperm.xlu2 %3657, %v3458_v36   ;;  %v4123_v34 = vld [vmem:[%s5693_s2] sm:$0xff] }
  0x6d   : > { %958 = vperm.xlu1 %3656, %v3457_v35   ;;  %v4128_v35 = vld [vmem:[%s5693_s2 + $0x8] sm:$0xff] }
  0x74   : > { %945 = vrot.lane.b32.xlu0 %v940_v24, %s5730_s18  ;;  %1011 = vrot.lane.b32.xlu2 %v1007_v31, %s5705_s17  ;;  %v3480_v24 = vld [vmem:[%s5695_s4 + $0xac] sm:$0xf]  ;;  %v4114_v31 = vand.u32 127, %v614_v30 }
  0x75   : > { %997 = vperm.xlu1 %3656, %v3460_v39   ;;  %v4140_v39 = vperm.slane %v4128_v35, 0 }
  0x76   : > { %v3984_v41 = vpop.permute.xlu2 %648  ;;  %vm616_vm0 = vcmp.lt.s32.totalorder %v4114_v31, 17  ;;  %vm675_vm1 = vcmp.lt.s32.totalorder %v4114_v31, 16  ;;  %vm743_vm2 = vcmp.lt.s32.totalorder %v4114_v31, 15  ;;  %vm811_vm3 = vcmp.lt.s32.totalorder %v4114_v31, 1 }
  0x77   : > { %5773 = vst [vmem:[#allocation9_spill] sm:$0xff] %v4140_v39  ;;  %vm947_vm4 = vcmp.lt.s32.totalorder %v4114_v31, 127  ;;  %vm1015_vm5 = vcmp.lt.s32.totalorder %v4114_v31, 113  ;;  %vm1083_vm6 = vcmp.lt.s32.totalorder %v4114_v31, 112  ;;  %vm1151_vm7 = vcmp.lt.s32.totalorder %v4114_v31, 111 }
  0x7c   : > { %984 = vperm.xlu0 %3658, %v3459_v40   ;;  %1039 = vperm.xlu2 %3657, %v3462_v43  }
  0x7d   : > { %1026 = vperm.xlu1 %3656, %v3461_v42  }
  0x7e   : > { %v3994_v46 = vpop.permute.xlu2 %659 }
  0x84   : > { %1013 = vrot.lane.b32.xlu0 %v1008_v32, %s5705_s17  ;;  %1079 = vrot.lane.b32.xlu2 %v1075_v37, %s5732_s25  ;;  %v3484_v37 = vld [vmem:[%s5695_s4 + $0xbc] sm:$0xf] }
  0x85   : > { %1065 = vperm.xlu1 %3656, %v3464_v47   ;;  %v4154_v47 = vperm.slane %v4123_v34, 1 }
  0x86   : > { %v4009_v51 = vpop.permute.xlu2 %686 }
  0x87   : > { %5774 = vst [vmem:[#allocation10_spill] sm:$0xff] %v4154_v47 }
  0x8c   : > { %1052 = vperm.xlu0 %3658, %v3463_v48   ;;  %1107 = vperm.xlu2 %3657, %v3466_v50   ;;  %v894_v48 = vperm.slane %v3897_v4, 1  ;;  %v3485_v50 = vld [vmem:[%s5695_s4 + $0xc0] sm:$0xf] }
  0x8d   : > { %1094 = vperm.xlu1 %3656, %v3465_v49  }
  0x8e   : > { %v4017_v54 = vpop.permute.xlu2 %725 }
  0x8f   : > { %v4011_v52 = vpop.permute.xlu1 %626 }
  0x94   : > { %1081 = vrot.lane.b32.xlu0 %v1076_v38, %s5732_s25  ;;  %1147 = vrot.lane.b32.xlu2 %v1143_v44, %s5707_s21  ;;  %v4137_v38 = vperm.slane %v4123_v34, 0 }
  0x95   : > { %1133 = vperm.xlu1 %3656, %v3468_v53  }
  0x96   : > { %v4033_v60 = vpop.permute.xlu2 %741  ;;  %5772 = vst [vmem:[#allocation8_spill] sm:$0xff] %v4137_v38 }
  0x97   : > { %v4023_v56 = vpop.permute.xlu1 %637 }
  0x9c   : > { %1120 = vperm.xlu0 %3658, %v3467_v55   ;;  %1175 = vperm.xlu2 %3657, %v3470_v59   ;;  %v4167_v55 = vperm.slane %v4128_v35, 1 }
  0x9d   : > { %1162 = vperm.xlu1 %3656, %v3469_v58  }
  0x9e   : > { %v4025_v57 = vpop.permute.xlu0 %610  ;;  %v4049_v3 = vpop.permute.xlu2 %780  ;;  %5775 = vst [vmem:[#allocation11_spill] sm:$0xff] %v4167_v55 }
  0x9f   : > { %v4035_v61 = vpop.permute.xlu1 %712 }
  0xa4   : > { %1149 = vrot.lane.b32.xlu0 %v1144_v45, %s5707_s21  ;;  %1219 = vperm.xlu2 %3657, %v1216_v0   ;;  %s5786_s21 = smov 15  }
  0xa5   : > { %1201 = vperm.xlu1 %3656, %v3472_v63  }
  0xa6   : > { %v613_v62 = vpop.permute.xlu0 %612  ;;  %v4072_v13 = vpop.permute.xlu2 %809 }
  0xa7   : > { %v4047_v2 = vpop.permute.xlu1 %673  ;;  %v617_v40 = vsel %vm616_vm0, %v4025_v57, %v613_v62  ;;  %v618_v42 = vsel %vm616_vm0, %v613_v62, %v4025_v57  ;;  %v895_v57 = vperm.slane %v3897_v4, 5  ;;  %v4178_v62 = vperm.slane %v4123_v34, 2 }
  0xa8   : > { %v621_v44 = vmul.f32 %v4137_v38, %v618_v42  ;;  %v622_v45 = vmul.f32 %v4140_v39, %v617_v40 }
  0xa9   : > { %5777 = vst [vmem:[#allocation13_spill] sm:$0xff] %v4178_v62 }
  0xaa   : > { %v640_v63 = vperm.slane %v621_v44, 1  ;;  %v641_v0 = vperm.slane %v622_v45, 1 }
  0xac   : > { %1188 = vperm.xlu0 %3658, %v3471_v1   ;;  %1238 = vperm.xlu2 %3657, %v3473_v7   ;;  %v651_v1 = vperm.slane %v621_v44, 2  ;;  %v4182_v7 = vperm.slane %v4128_v35, 2 }
  0xad   : > { %1260 = vperm.xlu1 %3656, %v3475_v6  }
  0xae   : > { %v4051_v5 = vpop.permute.xlu0 %671  ;;  %v4087_v19 = vpop.permute.xlu2 %848  ;;  %5778 = vst [vmem:[#allocation14_spill] sm:$0xff] %v4182_v7  ;;  %v653_v42 = vmul.f32 %v651_v1, %v3984_v41 }
  0xaf   : > { %v4062_v9 = vpop.permute.xlu1 %739  ;;  %v677_v53 = vsel %vm675_vm1, %v4047_v2, %v4051_v5  ;;  %v676_v59 = vsel %vm675_vm1, %v4051_v5, %v4047_v2  ;;  %v4187_v2 = vperm.slane %v895_v57, 1 }
  0xb0   : > { %v680_v6 = vmul.f32 %v4154_v47, %v677_v53  ;;  %v744_v30 = vsel %vm743_vm2, %v4062_v9, %v4033_v60 }
  0xb2   : > { %v689_v40 = vperm.slane %v680_v6, 0  ;;  %v715_v57 = vperm.slane %v680_v6, 2  ;;  %v702_v1 = vperm.slane %v680_v6, 1 }
  0xb4   : > { %1249 = vperm.xlu0 %3658, %v3474_v8   ;;  %1271 = vperm.xlu2 %3657, %v3476_v12   ;;  %v4184_v8 = vperm.slane %v894_v48, 1  ;;  %v681_v12 = vmul.f32 %v4167_v55, %v676_v59 }
  0xb5   : > { %1316 = vperm.xlu1 %3656, %v3479_v11   ;;  %v652_v11 = vperm.slane %v622_v45, 2 }
  0xb6   : > { %v4064_v10 = vpop.permute.xlu0 %699  ;;  %v4105_v26 = vpop.permute.xlu2 %891  ;;  %v716_v59 = vperm.slane %v681_v12, 2  ;;  %v703_v55 = vperm.slane %v681_v12, 1 }
  0xb7   : > { %v4077_v15 = vpop.permute.xlu1 %767  ;;  %v654_v53 = vmul.f32 %v652_v11, %v3984_v41  ;;  %v691_v41 = vmul.f32 %v689_v40, %v4009_v51 }
  0xbc   : > { %1303 = vperm.xlu0 %3658, %v3478_v14   ;;  %1290 = vperm.xlu2 %3657, %v3477_v18   ;;  %v629_v14 = vperm.slane %v621_v44, 0  ;;  %v4193_v18 = vperm.slane %v4123_v34, 3 }
  0xbd   : > { %1376 = vperm.xlu1 %3656, %v3483_v17   ;;  %v630_v17 = vperm.slane %v622_v45, 0 }
  0xbe   : > { %v4079_v16 = vpop.permute.xlu0 %754  ;;  %v4118_v33 = vpop.permute.xlu2 %943  ;;  %5779 = vst [vmem:[#allocation15_spill] sm:$0xff] %v4193_v18  ;;  %v631_v39 = vmul.f32 %v629_v14, %v4011_v52 }
  0xbf   : > { %v4092_v21 = vpop.permute.xlu1 %807  ;;  %v632_v38 = vmul.f32 %v630_v17, %v4011_v52 }
  0xc4   : > { %1363 = vperm.xlu0 %3658, %v3482_v20   ;;  %1329 = vperm.xlu2 %3657, %v3480_v24   ;;  %v4196_v20 = vperm.slane %v4128_v35, 3  ;;  %v643_v24 = vmul.f32 %v641_v0, %v4023_v56  ;;  %v4221_v0 = vmul.f32 %v4182_v7, %v744_v30 }
  0xc5   : > { %1436 = vperm.xlu1 %3656, %v3487_v23   ;;  %v642_v23 = vmul.f32 %v640_v63, %v4023_v56  ;;  %v3488_v56 = vld [vmem:[%s5695_s4 + $0xcc] sm:$0xf]  ;;  %v728_v63 = vperm.slane %v680_v6, 3 }
  0xc6   : > { %v4094_v22 = vpop.permute.xlu0 %793  ;;  %v4170_v58 = vpop.permute.xlu2 %971  ;;  %5780 = vst [vmem:[#allocation16_spill] sm:$0xff] %v4196_v20 }
  0xc7   : > { %v4107_v27 = vpop.permute.xlu1 %835  ;;  %5776 = vst [vmem:[#allocation12_spill] sm:$0xff] %v4170_v58  ;;  %v704_v58 = vmul.f32 %v702_v1, %v4064_v10 }
  0xcc   : > { %1423 = vperm.xlu0 %3658, %v3486_v25   ;;  %1350 = vperm.xlu2 %3657, %v3481_v29   ;;  %v662_v25 = vperm.slane %v621_v44, 3  ;;  %v663_v29 = vperm.slane %v622_v45, 3  ;;  %v690_v44 = vperm.slane %v681_v12, 0  ;;  %v877_v45 = vperm.slane %v3897_v4, 0 }
  0xce   : > { %v4109_v28 = vpop.permute.xlu0 %822  ;;  %v4223_v47 = vpop.permute.xlu2 %1011  ;;  %v664_v11 = vmul.f32 %v662_v25, %v3994_v46  ;;  %v692_v30 = vmul.f32 %v690_v44, %v4009_v51  ;;  %v665_v6 = vmul.f32 %v663_v29, %v3994_v46  ;;  %v4237_v7 = vperm.slane %v877_v45, 0  ;;  %v3491_v44 = vld [vmem:[%s5695_s4 + $0xd8] sm:$0xf] }
  0xcf   : > { %v4116_v32 = vpop.permute.xlu1 %874  ;;  %v784_v25 = vperm.slane %v4221_v0, 2  ;;  %v718_v51 = vmul.f32 %v716_v59, %v4035_v61  ;;  %v693_v29 = vadd.f32 %v691_v41, %v631_v39  ;;  %v706_v45 = vadd.f32 %v704_v58, %v642_v23 }
  0xd0   : > { %v758_v59 = vperm.slane %v4221_v0, 0  ;;  %v797_v58 = vperm.slane %v4221_v0, 3 }
  0xd4   : > { %1389 = vperm.xlu2 %3657, %v3484_v37   ;;  %v745_v37 = vsel %vm743_vm2, %v4033_v60, %v4062_v9  ;;  %v729_v60 = vperm.slane %v681_v12, 3 }
  0xd5   : > { %v4218_v9 = vmul.f32 %v4178_v62, %v745_v37  ;;  %v705_v37 = vmul.f32 %v703_v55, %v4064_v10  ;;  %v717_v10 = vmul.f32 %v715_v57, %v4035_v61  ;;  %v771_v55 = vperm.slane %v4221_v0, 1 }
  0xd6   : > { %v4130_v36 = vpop.permute.xlu0 %861  ;;  %v731_v14 = vmul.f32 %v729_v60, %v4017_v54  ;;  %v694_v57 = vadd.f32 %v692_v30, %v632_v38  ;;  %v812_v61 = vsel %vm811_vm3, %v4092_v21, %v4072_v13  ;;  %v928_v38 = vperm.slane %v3897_v4, 3 }
  0xd7   : > { %v4148_v43 = vpop.permute.xlu1 %925  ;;  %v783_v17 = vperm.slane %v4218_v9, 2  ;;  %v770_v46 = vperm.slane %v4218_v9, 1  ;;  %v757_v39 = vperm.slane %v4218_v9, 0  ;;  %v796_v41 = vperm.slane %v4218_v9, 3 }
  0xd8   : > { %v733_v60 = vadd.f32 %v731_v14, %v665_v6  ;;  %v817_v23 = vmul.f32 %v4196_v20, %v812_v61  ;;  %v4273_v6 = vpop.permute.xlu2 %1039  ;;  %v911_v14 = vperm.slane %v3897_v4, 2 }
  0xd9   : > { %v785_v9 = vmul.f32 %v783_v17, %v4049_v3  ;;  %v932_v17 = vperm.slane %v928_v38, 3 }
  0xdc   : > { %1410 = vperm.xlu2 %3657, %v3485_v50   ;;  %v878_v50 = vperm.slane %v3897_v4, 4 }
  0xde   : > { %v4157_v49 = vpop.permute.xlu0 %908  ;;  %v4239_v52 = vperm.slane %v878_v50, 0  ;;  %v707_v50 = vadd.f32 %v705_v37, %v643_v24  ;;  %v720_v24 = vadd.f32 %v718_v51, %v654_v53  ;;  %v772_v37 = vmul.f32 %v770_v46, %v4077_v15 }
  0xdf   : > { %v4190_v5 = vpop.permute.xlu1 %958  ;;  %v900_v53 = vmul.f32 %v4184_v8, %v4105_v26  ;;  %v760_v51 = vmul.f32 %v758_v59, %v4079_v16  ;;  %v799_v59 = vmul.f32 %v797_v58, %v4094_v22 }
  0xe0   : > { %v774_v20 = vadd.f32 %v772_v37, %v706_v45 }
  0xe4   : > { %1449 = vperm.xlu2 %3657, %v3488_v56   ;;  %v730_v56 = vmul.f32 %v728_v63, %v4017_v54  ;;  %v813_v54 = vsel %vm811_vm3, %v4072_v13, %v4092_v21  ;;  %v929_v13 = vperm.slane %v3897_v4, 7  ;;  %v719_v21 = vadd.f32 %v717_v10, %v653_v42 }
  0xe5   : > { %v4263_v1 = vmul.f32 %v4193_v18, %v813_v54  ;;  %v912_v54 = vperm.slane %v3897_v4, 6  ;;  %v786_v42 = vmul.f32 %v784_v25, %v4049_v3  ;;  %v759_v10 = vmul.f32 %v757_v39, %v4079_v16 }
  0xe6   : > { %v4209_v48 = vpop.permute.xlu0 %945  ;;  %v732_v63 = vadd.f32 %v730_v56, %v664_v11  ;;  %v773_v11 = vmul.f32 %v771_v55, %v4077_v15  ;;  %v839_v56 = vperm.slane %v817_v23, 1  ;;  %v901_v15 = vmul.f32 %v4187_v2, %v4105_v26 }
  0xe7   : > { %v4233_v12 = vpop.permute.xlu1 %997  ;;  %v838_v30 = vperm.slane %v4263_v1, 1  ;;  %v933_v46 = vperm.slane %v929_v13, 3  ;;  %v851_v55 = vperm.slane %v4263_v1, 2  ;;  %v787_v25 = vadd.f32 %v785_v9, %v719_v21 }
  0xe8   : > { %v775_v4 = vadd.f32 %v773_v11, %v707_v50  ;;  %v841_v8 = vmul.f32 %v839_v56, %v4107_v27  ;;  %v915_v18 = vperm.slane %v911_v14, 2  ;;  %v916_v62 = vperm.slane %v912_v54, 2 }
  0xe9   : > { %v840_v3 = vmul.f32 %v838_v30, %v4107_v27  ;;  %v788_v26 = vadd.f32 %v786_v42, %v720_v24  ;;  %v761_v2 = vadd.f32 %v759_v10, %v693_v29  ;;  %v762_v39 = vadd.f32 %v760_v51, %v694_v57  ;;  %v1080_v30 = vpop.permute.xlu2 %1079 }
  0xea   : > { %v798_v16 = vmul.f32 %v796_v41, %v4094_v22  ;;  %v825_v38 = vperm.slane %v4263_v1, 0  ;;  %v853_v45 = vmul.f32 %v851_v55, %v4087_v19  ;;  %v826_v21 = vperm.slane %v817_v23, 0 }
  0xeb   : > { %v842_v13 = vadd.f32 %v840_v3, %v774_v20  ;;  %v4297_v27 = vperm.slane %v4123_v34, 5  ;;  %v4300_v29 = vperm.slane %v4128_v35, 5  ;;  %v843_v41 = vadd.f32 %v841_v8, %v775_v4 }
  0xec   : > { %1488 = vperm.xlu2 %3657, %v3491_v44   ;;  %v852_v44 = vperm.slane %v817_v23, 2  ;;  %v827_v24 = vmul.f32 %v825_v38, %v4109_v28  ;;  %v948_v22 = vsel %vm947_vm4, %v4118_v33, %v4209_v48  ;;  %v800_v20 = vadd.f32 %v798_v16, %v732_v63 }
  0xed   : > { %5781 = vst [vmem:[#allocation17_spill] sm:$0xff] %v4300_v29  ;;  %v828_v58 = vmul.f32 %v826_v21, %v4109_v28  ;;  %v864_v37 = vperm.slane %v4263_v1, 3  ;;  %v865_v11 = vperm.slane %v817_v23, 3  ;;  %v801_v9 = vadd.f32 %v799_v59, %v733_v60 }
  0xee   : > { %v4251_v40 = vpop.permute.xlu0 %984  ;;  %v854_v50 = vmul.f32 %v852_v44, %v4087_v19  ;;  %v949_v19 = vsel %vm947_vm4, %v4209_v48, %v4118_v33  ;;  %v883_v56 = vmul.f32 %v4237_v7, %v4116_v32  ;;  %v855_v14 = vadd.f32 %v853_v45, %v787_v25 }
  0xef   : > { %v4276_v0 = vpop.permute.xlu1 %1026  ;;  %v866_v10 = vmul.f32 %v864_v37, %v4130_v36  ;;  %v867_v51 = vmul.f32 %v865_v11, %v4130_v36  ;;  %v952_v33 = vmul.f32 %v4297_v27, %v948_v22  ;;  %v4323_v28 = vmul.f32 %v4300_v29, %v949_v19  ;;  %v5784_v22 = vld [vmem:[#allocation12_spill] sm:$0xff] }
  0xf0   : > { %v856_v54 = vadd.f32 %v854_v50, %v788_v26  ;;  %v902_v48 = vadd.f32 %v900_v53, %v842_v13  ;;  %v903_v63 = vadd.f32 %v901_v15, %v843_v41  ;;  %v829_v1 = vadd.f32 %v827_v24, %v761_v2 }
  0xf1   : > { %v884_v60 = vmul.f32 %v4239_v52, %v4116_v32  ;;  %v830_v7 = vadd.f32 %v828_v58, %v762_v39  ;;  %v934_v23 = vmul.f32 %v932_v17, %v4148_v43  ;;  %v935_v55 = vmul.f32 %v933_v46, %v4148_v43  ;;  %v4352_v50 = vpop.permute.xlu2 %1107 }
  0xf2   : > { %v885_v44 = vadd.f32 %v883_v56, %v829_v1  ;;  %v917_v36 = vmul.f32 %v915_v18, %v4157_v49  ;;  %v4332_v4 = vperm.slane %v4123_v34, 6  ;;  %v4335_v53 = vperm.slane %v4128_v35, 6 }
  0xf3   : > { %v868_v15 = vadd.f32 %v866_v10, %v800_v20  ;;  %v869_v3 = vadd.f32 %v867_v51, %v801_v9  ;;  %v961_v25 = vperm.slane %v952_v33, 0  ;;  %v962_v32 = vperm.slane %v4323_v28, 0 }
  0xf4   : > { %v886_v17 = vadd.f32 %v884_v60, %v830_v7  ;;  %v918_v43 = vmul.f32 %v916_v62, %v4157_v49  ;;  %v974_v2 = vperm.slane %v952_v33, 1  ;;  %v975_v39 = vperm.slane %v4323_v28, 1 }
  0xf5   : > { %v936_v8 = vadd.f32 %v934_v23, %v868_v15  ;;  %v937_v26 = vadd.f32 %v935_v55, %v869_v3  ;;  %v919_v16 = vadd.f32 %v917_v36, %v855_v14  ;;  %v1000_v59 = vperm.slane %v952_v33, 3 }
  0xf6   : > { %v1014_v61 = vpop.permute.xlu0 %1013  ;;  %v1001_v38 = vperm.slane %v4323_v28, 3  ;;  %v963_v62 = vmul.f32 %v961_v25, %v4190_v5  ;;  %v964_v45 = vmul.f32 %v962_v32, %v4190_v5  ;;  %v920_v13 = vadd.f32 %v918_v43, %v856_v54 }
  0xf7   : > { %v4302_v57 = vpop.permute.xlu1 %1065  ;;  %v1016_v18 = vsel %vm1015_vm5, %v4223_v47, %v1014_v61  ;;  %v1017_v46 = vsel %vm1015_vm5, %v1014_v61, %v4223_v47  ;;  %v987_v21 = vperm.slane %v952_v33, 2  ;;  %v4357_v41 = vperm.slane %v4123_v34, 7 }
  0xf8   : > { %v1020_v47 = vmul.f32 %v4332_v4, %v1016_v18  ;;  %v1021_v61 = vmul.f32 %v4335_v53, %v1017_v46  ;;  %v4360_v24 = vperm.slane %v4128_v35, 7  ;;  %v976_v19 = vmul.f32 %v974_v2, %v5784_v22 }
  0xf9   : > { %5782 = vst [vmem:[#allocation18_spill] sm:$0xff] %v4357_v41  ;;  %v977_v20 = vmul.f32 %v975_v39, %v5784_v22  ;;  %v1002_v37 = vmul.f32 %v1000_v59, %v4233_v12  ;;  %v1003_v11 = vmul.f32 %v1001_v38, %v4233_v12  ;;  %v988_v34 = vperm.slane %v4323_v28, 2  ;;  %v1148_v46 = vpop.permute.xlu2 %1147 }
  0xfa   : > { %5783 = vst [vmem:[#allocation19_spill] sm:$0xff] %v4360_v24  ;;  %v989_v9 = vmul.f32 %v987_v21, %v4251_v40  ;;  %v965_v35 = vadd.f32 %v963_v62, %v885_v44  ;;  %v966_v56 = vadd.f32 %v964_v45, %v886_v17  ;;  %v1029_v14 = vperm.slane %v1020_v47, 0 }
  0xfb   : > { %v1030_v54 = vperm.slane %v1021_v61, 0  ;;  %v1042_v51 = vperm.slane %v1020_v47, 1  ;;  %v1043_v33 = vperm.slane %v1021_v61, 1  ;;  %v979_v7 = vadd.f32 %v977_v20, %v903_v63 }
  0xfc   : > { %v1068_v23 = vperm.slane %v1020_v47, 3  ;;  %v1069_v55 = vperm.slane %v1021_v61, 3  ;;  %v1004_v12 = vadd.f32 %v1002_v37, %v936_v8  ;;  %v1005_v36 = vadd.f32 %v1003_v11, %v937_v26 }
  0xfd   : > { %v990_v28 = vmul.f32 %v988_v34, %v4251_v40  ;;  %v991_v15 = vadd.f32 %v989_v9, %v919_v16  ;;  %v1031_v3 = vmul.f32 %v1029_v14, %v4276_v0  ;;  %v1032_v25 = vmul.f32 %v1030_v54, %v4276_v0 }
  0xfe   : > { %v4317_v42 = vpop.permute.xlu0 %1052  ;;  %v1055_v32 = vperm.slane %v1020_v47, 2  ;;  %v1056_v17 = vperm.slane %v1021_v61, 2  ;;  %v1044_v43 = vmul.f32 %v1042_v51, %v4273_v6  ;;  %v1045_v18 = vmul.f32 %v1043_v33, %v4273_v6 }
  0xff   : > { %v4338_v52 = vpop.permute.xlu1 %1094  ;;  %v1070_v8 = vmul.f32 %v1068_v23, %v4302_v57  ;;  %v1071_v26 = vmul.f32 %v1069_v55, %v4302_v57  ;;  %v992_v39 = vadd.f32 %v990_v28, %v920_v13  ;;  %v1033_v59 = vadd.f32 %v1031_v3, %v965_v35  ;;  %v4389_v13 = vld [vmem:[%s5693_s2 + $0x10] ss:$0 sm:$0xff] }
 0x100   : > { %v1057_v16 = vmul.f32 %v1055_v32, %v4317_v42  ;;  %v1058_v0 = vmul.f32 %v1056_v17, %v4317_v42  ;;  %v1034_v38 = vadd.f32 %v1032_v25, %v966_v56  ;;  %v1047_v47 = vadd.f32 %v1045_v18, %v979_v7  ;;  %v4394_v42 = vld [vmem:[%s5693_s2 + $0x18] ss:$0 sm:$0xff] }
 0x101   : > { %v1072_v21 = vadd.f32 %v1070_v8, %v1004_v12  ;;  %v1073_v22 = vadd.f32 %v1071_v26, %v1005_v36  ;;  %v1176_v12 = vpop.permute.xlu2 %1175 }
 0x106   : > { %v1082_v49 = vpop.permute.xlu0 %1081 }
 0x107   : > { %v1084_v5 = vsel %vm1083_vm6, %v1080_v30, %v1082_v49  ;;  %v1085_v58 = vsel %vm1083_vm6, %v1082_v49, %v1080_v30  ;;  %v1134_v10 = vpop.permute.xlu1 %1133  ;;  %v978_v30 = vadd.f32 %v976_v19, %v902_v48 }
 0x108   : > { %v1088_v1 = vmul.f32 %v4357_v41, %v1084_v5  ;;  %v1089_v60 = vmul.f32 %v4360_v24, %v1085_v58  ;;  %v1059_v5 = vadd.f32 %v1057_v16, %v991_v15  ;;  %v1060_v58 = vadd.f32 %v1058_v0, %v992_v39 }
 0x109   : > { %v1046_v45 = vadd.f32 %v1044_v43, %v978_v30 }
 0x10a   : > { %v1097_v48 = vperm.slane %v1088_v1, 0  ;;  %v1098_v63 = vperm.slane %v1089_v60, 0  ;;  %v1110_v40 = vperm.slane %v1088_v1, 1  ;;  %v1111_v2 = vperm.slane %v1089_v60, 1 }
 0x10b   : > { %v1136_v49 = vperm.slane %v1088_v1, 3  ;;  %v1137_v6 = vperm.slane %v1089_v60, 3  ;;  %v1123_v37 = vperm.slane %v1088_v1, 2 }
 0x10c   : > { %v1099_v61 = vmul.f32 %v1097_v48, %v4338_v52  ;;  %v1100_v57 = vmul.f32 %v1098_v63, %v4338_v52  ;;  %v1112_v19 = vmul.f32 %v1110_v40, %v4352_v50  ;;  %v1113_v20 = vmul.f32 %v1111_v2, %v4352_v50 }
 0x10d   : > { %v1124_v52 = vperm.slane %v1089_v60, 2  ;;  %v1138_v34 = vmul.f32 %v1136_v49, %v1134_v10  ;;  %v1139_v9 = vmul.f32 %v1137_v6, %v1134_v10 }
 0x10e   : > { %v1121_v44 = vpop.permute.xlu0 %1120  ;;  %v1101_v51 = vadd.f32 %v1099_v61, %v1033_v59  ;;  %v1102_v33 = vadd.f32 %v1100_v57, %v1034_v38  ;;  %v1114_v7 = vadd.f32 %v1112_v19, %v1046_v45  ;;  %v1115_v1 = vadd.f32 %v1113_v20, %v1047_v47  ;;  %v1220_v20 = vpop.permute.xlu2 %1219 }
 0x10f   : > { %v1163_v62 = vpop.permute.xlu1 %1162  ;;  %v1125_v50 = vmul.f32 %v1123_v37, %v1121_v44  ;;  %v1126_v30 = vmul.f32 %v1124_v52, %v1121_v44  ;;  %v1140_v36 = vadd.f32 %v1138_v34, %v1072_v21  ;;  %v1141_v28 = vadd.f32 %v1139_v9, %v1073_v22  ;;  %v3499_v34 = vld [vmem:[%s5695_s4 + $0xf8] sm:$0xf] }
 0x111   : > { %v1127_v8 = vadd.f32 %v1125_v50, %v1059_v5  ;;  %v1128_v26 = vadd.f32 %v1126_v30, %v1060_v58  ;;  %v3494_v50 = vld [vmem:[%s5695_s4 + $0xe4] sm:$0xf]  ;;  %v3493_v30 = vld [vmem:[%s5695_s4 + $0xe0] sm:$0xf] }
 0x116   : > { %v1150_v11 = vpop.permute.xlu0 %1149  ;;  %v4432_v9 = vpop.permute.xlu2 %1238 }
 0x117   : > { %v1152_v35 = vsel %vm1151_vm7, %v1148_v46, %v1150_v11  ;;  %v1153_v56 = vsel %vm1151_vm7, %v1150_v11, %v1148_v46  ;;  %v1202_v15 = vpop.permute.xlu1 %1201  ;;  %v3495_v11 = vld [vmem:[%s5695_s4 + $0xe8] sm:$0xf] }
 0x118   : > { %v1156_v14 = vmul.f32 %v4389_v13, %v1152_v35  ;;  %v1157_v54 = vmul.f32 %v4394_v42, %v1153_v56  ;;  %v3490_v35 = vld [vmem:[%s5695_s4 + $0xd4] sm:$0xf]  ;;  %v3489_v56 = vld [vmem:[%s5695_s4 + $0xd0] sm:$0xf] }
 0x11a   : > { %v1165_v60 = vperm.slane %v1156_v14, 0  ;;  %v1166_v23 = vperm.slane %v1157_v54, 0  ;;  %v1178_v55 = vperm.slane %v1156_v14, 1  ;;  %v1179_v10 = vperm.slane %v1157_v54, 1 }
 0x11b   : > { %v1204_v3 = vperm.slane %v1156_v14, 3  ;;  %v1205_v25 = vperm.slane %v1157_v54, 3  ;;  %v1191_v46 = vperm.slane %v1156_v14, 2  ;;  %v1192_v44 = vperm.slane %v1157_v54, 2  ;;  %v3503_v54 = vld [vmem:[%s5695_s4 + $0x108] sm:$0xf] }
 0x11c   : > { %v1167_v32 = vmul.f32 %v1165_v60, %v1163_v62  ;;  %v1168_v17 = vmul.f32 %v1166_v23, %v1163_v62  ;;  %v1180_v43 = vmul.f32 %v1178_v55, %v1176_v12  ;;  %v1181_v18 = vmul.f32 %v1179_v10, %v1176_v12  ;;  %v3511_v23 = vld [vmem:[%s5695_s4 + $0x124] sm:$0xf]  ;;  %v3498_v55 = vld [vmem:[%s5695_s4 + $0xf4] sm:$0xf]  ;;  %v3497_v10 = vld [vmem:[%s5695_s4 + $0xf0] sm:$0xf] }
 0x11d   : > { %v1206_v48 = vmul.f32 %v1204_v3, %v1202_v15  ;;  %v1207_v63 = vmul.f32 %v1205_v25, %v1202_v15 }
 0x11e   : > { %v1189_v40 = vpop.permute.xlu0 %1188  ;;  %v1169_v2 = vadd.f32 %v1167_v32, %v1101_v51  ;;  %v1170_v39 = vadd.f32 %v1168_v17, %v1102_v33  ;;  %v1182_v16 = vadd.f32 %v1180_v43, %v1114_v7  ;;  %v1183_v0 = vadd.f32 %v1181_v18, %v1115_v1  ;;  %v4444_v14 = vpop.permute.xlu2 %1271  ;;  %v3492_v51 = vld [vmem:[%s5695_s4 + $0xdc] sm:$0xf]  ;;  %v3507_v7 = vld [vmem:[%s5695_s4 + $0x118] sm:$0xf]  ;;  %v3496_v1 = vld [vmem:[%s5695_s4 + $0xec] sm:$0xf] }
 0x11f   : > { %v1193_v59 = vmul.f32 %v1191_v46, %v1189_v40  ;;  %v1194_v38 = vmul.f32 %v1192_v44, %v1189_v40  ;;  %v1208_v49 = vadd.f32 %v1206_v48, %v1140_v36  ;;  %v1209_v6 = vadd.f32 %v1207_v63, %v1141_v28  ;;  %v3515_v36 = vld [vmem:[%s5695_s4 + $0x134] sm:$0xf]  ;;  %v3500_v28 = vld [vmem:[%s5695_s4 + $0xfc] sm:$0xf]  ;;  %v4495_v3 = vpop.permute.xlu1 %1260  ;;  %v3519_v32 = vld [vmem:[%s5695_s4 + $0x144] sm:$0xf] }
 0x120   : > { %v1210_v62 = vadd.f32 %v1182_v16, %v1169_v2  ;;  %v1211_v61 = vadd.f32 %v1183_v0, %v1170_v39  ;;  %v3502_v17 = vld [vmem:[%s5695_s4 + $0x104] sm:$0xf]  ;;  %v3501_v43 = vld [vmem:[%s5695_s4 + $0x100] sm:$0xf]  ;;  %v3523_v48 = vld [vmem:[%s5695_s4 + $0x154] sm:$0xf] }
 0x121   : > { %v1195_v45 = vadd.f32 %v1193_v59, %v1127_v8  ;;  %v1196_v47 = vadd.f32 %v1194_v38, %v1128_v26  ;;  %v3504_v46 = vld [vmem:[%s5695_s4 + $0x10c] sm:$0xf]  ;;  %v3526_v8 = vld [vmem:[%s5695_s4 + $0x160] sm:$0xf]  ;;  %v3506_v26 = vld [vmem:[%s5695_s4 + $0x114] sm:$0xf] }
 0x122   : > { %v3505_v40 = vld [vmem:[%s5695_s4 + $0x110] sm:$0xf]  ;;  %v3529_v0 = vld [vmem:[%s5695_s4 + $0x16c] sm:$0xf]  ;;  %v3509_v59 = vld [vmem:[%s5696_s5 + $0x4] sm:$0xf] }
 0x123   : > { %v1212_v57 = vadd.f32 %v1208_v49, %v1195_v45  ;;  %v1213_v21 = vadd.f32 %v1209_v6, %v1196_v47  ;;  %v3508_v38 = vld [vmem:[%s5695_s4 + $0x11c] sm:$0xf]  ;;  %v3530_v47 = vld [vmem:[%s5695_s4 + $0x170] sm:$0xf] }
 0x125   : > { %v1214_v22 = vadd.f32 %v1212_v57, %v1210_v62  ;;  %v1215_v19 = vadd.f32 %v1213_v21, %v1211_v61  ;;  %v3510_v62 = vld [vmem:[%s5695_s4 + $0x120] sm:$0xf]  ;;  %v3512_v61 = vld [vmem:[%s5695_s4 + $0x128] sm:$0xf] }
 0x126   : > { %v4454_v33 = vpop.permute.xlu2 %1290  ;;  %v4497_v25 = vpop.permute.xlu0 %1249 }
 0x127   : > { %v1222_v5 = vadd.f32 %v1220_v20, %v1214_v22  ;;  %v1223_v58 = vadd.f32 %v1220_v20, %v1215_v19  ;;  %v4513_v63 = vpop.permute.xlu1 %1316 }
 0x129   : > { %v4404_v37 = vmax.f32 %v1222_v5, 0.0  ;;  %v4406_v52 = vmax.f32 %v1223_v58, 0.0  ;;  %v3533_v5 = vld [vmem:[%s5695_s4 + $0x17c] sm:$0xf]  ;;  %v3513_v58 = vld [vmem:[%s5695_s4 + $0x12c] sm:$0xf] }
 0x12b   : > { %1512 = vrot.lane.b32.xlu2 %v4406_v52, %s5730_s18  ;;  %1228 = vrot.lane.b32.xlu1 %v4406_v52, %s5728_s26 }
 0x12c   : > { %1226 = vrot.lane.b32.xlu0 %v4404_v37, %s5728_s26  ;;  %s5806_s26 = smov 16  }
 0x12e   : > { %v4470_v60 = vpop.permute.xlu2 %1329  ;;  %v4518_v44 = vpop.permute.xlu0 %1303 }
 0x12f   : > { %v4533_v39 = vpop.permute.xlu1 %1376 }
 0x133   : > { %1548 = vperm.xlu2 %3657, %v3495_v11   ;;  %1280 = vrot.lane.b32.xlu1 %v4406_v52, %s5726_s20  ;;  %v3516_v11 = vld [vmem:[%s5695_s4 + $0x138] sm:$0xf] }
 0x134   : > { %1278 = vrot.lane.b32.xlu0 %v4404_v37, %s5726_s20  ;;  %s5790_s20 = smov 112  }
 0x136   : > { %v4483_v12 = vpop.permute.xlu2 %1350  ;;  %v4535_v16 = vpop.permute.xlu0 %1363 }
 0x137   : > { %v4548_v6 = vpop.permute.xlu1 %1436 }
 0x13b   : > { %1572 = vrot.lane.b32.xlu2 %v4406_v52, %s5785_s22  ;;  %1340 = vrot.lane.b32.xlu1 %v4406_v52, %s5786_s21 }
 0x13c   : > { %1338 = vrot.lane.b32.xlu0 %v4404_v37, %s5786_s21 }
 0x13e   : > { %v4493_v15 = vpop.permute.xlu2 %1389  ;;  %v4550_v45 = vpop.permute.xlu0 %1423 }
 0x143   : > { %1608 = vperm.xlu2 %3657, %v3499_v34   ;;  %1400 = vrot.lane.b32.xlu1 %v4406_v52, %s5787_s12  ;;  %v5791_v34 = vld [vmem:[#allocation8_spill] sm:$0xff] }
 0x144   : > { %1398 = vrot.lane.b32.xlu0 %v4404_v37, %s5787_s12 }
 0x146   : > { %v4508_v18 = vpop.permute.xlu2 %1410 }
 0x14b   : > { %1632 = vrot.lane.b32.xlu2 %v4406_v52, %s5732_s25  ;;  %1475 = vperm.xlu1 %3656, %v3490_v35   ;;  %s3715_s25 = scalar_lea.hbm %s5699_s8, 64 }
 0x14c   : > { %1462 = vperm.xlu0 %3658, %v3489_v56   ;;  %v5792_v56 = vld [vmem:[#allocation9_spill] sm:$0xff] }
 0x14e   : > { %v4531_v2 = vpop.permute.xlu2 %1449 }
 0x153   : > { %1668 = vperm.xlu2 %3657, %v3503_v54   ;;  %1510 = vrot.lane.b32.xlu1 %v4404_v37, %s5788_s13 }
 0x154   : > { %1501 = vperm.xlu0 %3658, %v3492_v51  }
 0x156   : > { %v4546_v49 = vpop.permute.xlu2 %1488 }
 0x15b   : > { %1692 = vrot.lane.b32.xlu2 %v4406_v52, %s5789_s23  ;;  %1535 = vperm.xlu1 %3656, %v3494_v50  }
 0x15c   : > { %1522 = vperm.xlu0 %3658, %v3493_v30  }
 0x163   : > { %1728 = vperm.xlu2 %3657, %v3507_v7   ;;  %1570 = vrot.lane.b32.xlu1 %v4404_v37, %s5785_s22 }
 0x164   : > { %1561 = vperm.xlu0 %3658, %v3496_v1  }
 0x16b   : > { %1810 = vperm.xlu2 %3657, %v3511_v23   ;;  %1595 = vperm.xlu1 %3656, %v3498_v55  }
 0x16c   : > { %1582 = vperm.xlu0 %3658, %v3497_v10  }
 0x173   : > { %1869 = vperm.xlu2 %3657, %v3515_v36   ;;  %1630 = vrot.lane.b32.xlu1 %v4404_v37, %s5790_s20 }
 0x174   : > { %1621 = vperm.xlu0 %3658, %v3500_v28  }
 0x17b   : > { %1934 = vperm.xlu2 %3657, %v3519_v32   ;;  %1655 = vperm.xlu1 %3656, %v3502_v17  }
 0x17c   : > { %1642 = vperm.xlu0 %3658, %v3501_v43  }
 0x183   : > { %1999 = vperm.xlu2 %3657, %v3523_v48   ;;  %1690 = vrot.lane.b32.xlu1 %v4404_v37, %s5789_s23  ;;  %v5793_v48 = vld [vmem:[#allocation10_spill] sm:$0xff] }
 0x184   : > { %1681 = vperm.xlu0 %3658, %v3504_v46  }
 0x185   : > { %v4561_v57 = vpop.permute.xlu2 %1512 }
 0x18b   : > { %2038 = vperm.xlu2 %3657, %v3526_v8   ;;  %1715 = vperm.xlu1 %3656, %v3506_v26   ;;  %v5794_v8 = vld [vmem:[#allocation11_spill] sm:$0xff] }
 0x18c   : > { %1702 = vperm.xlu0 %3658, %v3505_v40   ;;  %v3534_v40 = vld [vmem:[%s5695_s4 + $0x180] sm:$0xf] }
 0x18d   : > { %v4579_v30 = vpop.permute.xlu2 %1548 }
 0x193   : > { %2089 = vperm.xlu2 %3657, %v3529_v0   ;;  %1760 = vperm.xlu1 %3656, %v3509_v59   ;;  %v3514_v0 = vld [vmem:[%s5695_s4 + $0x130] sm:$0xf] }
 0x194   : > { %1741 = vperm.xlu0 %3658, %v3508_v38  }
 0x19b   : > { %2119 = vperm.xlu2 %3657, %v3530_v47   ;;  %1799 = vperm.xlu1 %3656, %v3510_v62  }
 0x19c   : > { %1821 = vperm.xlu0 %3658, %v3512_v61   ;;  %v3520_v61 = vld [vmem:[%s5695_s4 + $0x148] sm:$0xf] }
 0x19d   : > { %v1229_v21 = vpop.permute.xlu1 %1228 }
 0x19e   : > { %v1227_v22 = vpop.permute.xlu0 %1226 }
 0x19f   : > { %v1230_v19 = vsel %vm616_vm0, %v1227_v22, %v1229_v21  ;;  %v1231_v20 = vsel %vm616_vm0, %v1229_v21, %v1227_v22 }
 0x1a0   : > { %v1232_v35 = vmul.f32 %v1231_v20, %v5791_v34  ;;  %v1233_v54 = vmul.f32 %v1230_v19, %v5792_v56 }
 0x1a2   : > { %v1252_v10 = vperm.slane %v1232_v35, 1  ;;  %v1253_v36 = vperm.slane %v1233_v54, 1  ;;  %v1241_v17 = vperm.slane %v1232_v35, 0  ;;  %v1242_v43 = vperm.slane %v1233_v54, 0 }
 0x1a3   : > { %2158 = vperm.xlu2 %3657, %v3533_v5   ;;  %1832 = vperm.xlu1 %3656, %v3513_v58   ;;  %v1263_v59 = vperm.slane %v1232_v35, 2  ;;  %v1264_v38 = vperm.slane %v1233_v54, 2  ;;  %v1274_v47 = vperm.slane %v1232_v35, 3  ;;  %v1275_v62 = vperm.slane %v1233_v54, 3 }
 0x1a4   : > { %1882 = vperm.xlu0 %3658, %v3516_v11   ;;  %v1254_v11 = vmul.f32 %v1252_v10, %v4497_v25  ;;  %v1243_v35 = vmul.f32 %v1241_v17, %v4432_v9  ;;  %v1244_v54 = vmul.f32 %v1242_v43, %v4432_v9 }
 0x1a5   : > { %v1281_v51 = vpop.permute.xlu1 %1280  ;;  %v1265_v10 = vmul.f32 %v1263_v59, %v4495_v3  ;;  %v1277_v17 = vmul.f32 %v1275_v62, %v4444_v14 }
 0x1a6   : > { %v1279_v7 = vpop.permute.xlu0 %1278 }
 0x1a7   : > { %v1282_v28 = vsel %vm675_vm1, %v1279_v7, %v1281_v51  ;;  %v1283_v32 = vsel %vm675_vm1, %v1281_v51, %v1279_v7  ;;  %v1255_v51 = vmul.f32 %v1253_v36, %v4497_v25  ;;  %v1266_v25 = vmul.f32 %v1264_v38, %v4495_v3  ;;  %v5796_v3 = vld [vmem:[#allocation14_spill] sm:$0xff] }
 0x1a8   : > { %v1284_v46 = vmul.f32 %v1283_v32, %v5793_v48  ;;  %v1285_v26 = vmul.f32 %v1282_v28, %v5794_v8 }
 0x1aa   : > { %v1293_v21 = vperm.slane %v1284_v46, 0  ;;  %v1294_v22 = vperm.slane %v1285_v26, 0  ;;  %v1306_v19 = vperm.slane %v1284_v46, 1  ;;  %v1307_v20 = vperm.slane %v1285_v26, 1 }
 0x1ab   : > { %v1319_v5 = vperm.slane %v1284_v46, 2  ;;  %v1320_v58 = vperm.slane %v1285_v26, 2  ;;  %2184 = vperm.xlu2 %3657, %v3534_v40   ;;  %1856 = vperm.xlu1 %3656, %v3514_v0   ;;  %v1332_v7 = vperm.slane %v1284_v46, 3  ;;  %v1333_v28 = vperm.slane %v1285_v26, 3  ;;  %v5795_v0 = vld [vmem:[#allocation13_spill] sm:$0xff] }
 0x1ac   : > { %1947 = vperm.xlu0 %3658, %v3520_v61   ;;  %v1308_v23 = vmul.f32 %v1306_v19, %v4518_v44  ;;  %v1309_v55 = vmul.f32 %v1307_v20, %v4518_v44  ;;  %v1295_v1 = vmul.f32 %v1293_v21, %v4454_v33  ;;  %v1296_v40 = vmul.f32 %v1294_v22, %v4454_v33  ;;  %v4617_v33 = vpop.permute.xlu2 %1572  ;;  %v3524_v61 = vld [vmem:[%s5695_s4 + $0x158] sm:$0xf] }
 0x1ad   : > { %v1341_v32 = vpop.permute.xlu1 %1340  ;;  %v1276_v46 = vmul.f32 %v1274_v47, %v4444_v14  ;;  %v1321_v9 = vmul.f32 %v1319_v5, %v4513_v63  ;;  %v1322_v43 = vmul.f32 %v1320_v58, %v4513_v63  ;;  %v3537_v14 = vld [vmem:[%s5695_s4 + $0x18c] sm:$0xf]  ;;  %v3517_v63 = vld [vmem:[%s5695_s4 + $0x13c] sm:$0xf]  ;;  %v1334_v47 = vmul.f32 %v1332_v7, %v4470_v60 }
 0x1ae   : > { %v1339_v36 = vpop.permute.xlu0 %1338  ;;  %v1335_v62 = vmul.f32 %v1333_v28, %v4470_v60  ;;  %v1310_v21 = vadd.f32 %v1308_v23, %v1254_v11  ;;  %v1311_v22 = vadd.f32 %v1309_v55, %v1255_v51  ;;  %v1297_v19 = vadd.f32 %v1295_v1, %v1243_v35 }
 0x1af   : > { %v1342_v44 = vsel %vm743_vm2, %v1339_v36, %v1341_v32  ;;  %v1343_v26 = vsel %vm743_vm2, %v1341_v32, %v1339_v36  ;;  %v1298_v20 = vadd.f32 %v1296_v40, %v1244_v54  ;;  %v1323_v54 = vadd.f32 %v1321_v9, %v1265_v10 }
 0x1b0   : > { %v1344_v59 = vmul.f32 %v1343_v26, %v5795_v0  ;;  %v1345_v38 = vmul.f32 %v1342_v44, %v5796_v3  ;;  %v1324_v40 = vadd.f32 %v1322_v43, %v1266_v25 }
 0x1b2   : > { %v1353_v5 = vperm.slane %v1344_v59, 0  ;;  %v1354_v58 = vperm.slane %v1345_v38, 0  ;;  %v1366_v32 = vperm.slane %v1344_v59, 1  ;;  %v1367_v36 = vperm.slane %v1345_v38, 1 }
 0x1b3   : > { %v1379_v44 = vperm.slane %v1344_v59, 2  ;;  %v1380_v26 = vperm.slane %v1345_v38, 2  ;;  %v1392_v50 = vperm.slane %v1344_v59, 3  ;;  %v1393_v3 = vperm.slane %v1345_v38, 3  ;;  %2223 = vperm.xlu2 %3657, %v3537_v14   ;;  %1895 = vperm.xlu1 %3656, %v3517_v63  }
 0x1b4   : > { %2012 = vperm.xlu0 %3658, %v3524_v61   ;;  %v1368_v60 = vmul.f32 %v1366_v32, %v4535_v16  ;;  %v1369_v7 = vmul.f32 %v1367_v36, %v4535_v16  ;;  %v1355_v23 = vmul.f32 %v1353_v5, %v4483_v12  ;;  %v1356_v1 = vmul.f32 %v1354_v58, %v4483_v12  ;;  %v5797_v5 = vld [vmem:[#allocation15_spill] sm:$0xff]  ;;  %v5798_v58 = vld [vmem:[#allocation16_spill] sm:$0xff] }
 0x1b5   : > { %v1381_v55 = vmul.f32 %v1379_v44, %v4533_v39  ;;  %v1382_v11 = vmul.f32 %v1380_v26, %v4533_v39  ;;  %v1401_v51 = vpop.permute.xlu1 %1400  ;;  %v1394_v28 = vmul.f32 %v1392_v50, %v4493_v15  ;;  %v1395_v35 = vmul.f32 %v1393_v3, %v4493_v15  ;;  %v3518_v15 = vld [vmem:[%s5695_s4 + $0x140] sm:$0xf]  ;;  %v4652_v3 = vpop.permute.xlu2 %1608 }
 0x1b6   : > { %v1399_v59 = vpop.permute.xlu0 %1398  ;;  %v1336_v38 = vadd.f32 %v1334_v47, %v1276_v46  ;;  %v1337_v14 = vadd.f32 %v1335_v62, %v1277_v17  ;;  %v1370_v63 = vadd.f32 %v1368_v60, %v1310_v21  ;;  %v1371_v61 = vadd.f32 %v1369_v7, %v1311_v22  ;;  %v3527_v17 = vld [vmem:[%s5695_s4 + $0x164] sm:$0xf] }
 0x1b7   : > { %v1402_v16 = vsel %vm811_vm3, %v1399_v59, %v1401_v51  ;;  %v1403_v12 = vsel %vm811_vm3, %v1401_v51, %v1399_v59  ;;  %v1357_v50 = vadd.f32 %v1355_v23, %v1297_v19  ;;  %v1358_v10 = vadd.f32 %v1356_v1, %v1298_v20 }
 0x1b8   : > { %v1404_v39 = vmul.f32 %v1403_v12, %v5797_v5  ;;  %v1405_v32 = vmul.f32 %v1402_v16, %v5798_v58  ;;  %v1383_v25 = vadd.f32 %v1381_v55, %v1323_v54  ;;  %v1384_v46 = vadd.f32 %v1382_v11, %v1324_v40 }
 0x1b9   : > { %v1396_v9 = vadd.f32 %v1394_v28, %v1336_v38  ;;  %v1397_v43 = vadd.f32 %v1395_v35, %v1337_v14  ;;  %v5800_v14 = vperm.slane %v4406_v52, 1 }
 0x1ba   : > { %v1439_v47 = vperm.slane %v1404_v39, 2  ;;  %v1440_v62 = vperm.slane %v1405_v32, 2  ;;  %v1426_v21 = vperm.slane %v1404_v39, 1  ;;  %v1427_v22 = vperm.slane %v1405_v32, 1 }
 0x1bb   : > { %1921 = vperm.xlu1 %3656, %v3518_v15   ;;  %v1413_v36 = vperm.slane %v1404_v39, 0  ;;  %v1414_v44 = vperm.slane %v1405_v32, 0  ;;  %v1452_v26 = vperm.slane %v1404_v39, 3  ;;  %v1453_v19 = vperm.slane %v1405_v32, 3 }
 0x1bc   : > { %v1441_v20 = vmul.f32 %v1439_v47, %v4548_v6  ;;  %v1442_v60 = vmul.f32 %v1440_v62, %v4548_v6  ;;  %2055 = vperm.xlu0 %3658, %v3527_v17   ;;  %v1428_v7 = vmul.f32 %v1426_v21, %v4550_v45  ;;  %v1429_v23 = vmul.f32 %v1427_v22, %v4550_v45 }
 0x1bd   : > { %v4658_v1 = vpop.permute.xlu1 %1475  ;;  %v1415_v55 = vmul.f32 %v1413_v36, %v4508_v18  ;;  %v1416_v11 = vmul.f32 %v1414_v44, %v4508_v18  ;;  %v1454_v51 = vmul.f32 %v1452_v26, %v4531_v2  ;;  %v1455_v28 = vmul.f32 %v1453_v19, %v4531_v2  ;;  %v4694_v62 = vpop.permute.xlu2 %1632  ;;  %v3522_v36 = vld [vmem:[%s5695_s4 + $0x150] sm:$0xf]  ;;  %v3535_v26 = vld [vmem:[%s5695_s4 + $0x184] sm:$0xf] }
 0x1be   : > { %v4664_v35 = vadd.f32 %v1441_v20, %v1383_v25  ;;  %v1444_v54 = vadd.f32 %v1442_v60, %v1384_v46  ;;  %v4666_v40 = vadd.f32 %v1428_v7, %v1370_v63  ;;  %v1431_v6 = vadd.f32 %v1429_v23, %v1371_v61  ;;  %v1463_v59 = vpop.permute.xlu0 %1462  ;;  %v3521_v63 = vld [vmem:[%s5695_s4 + $0x14c] sm:$0xf] }
 0x1bf   : > { %v5799_v45 = vperm.slane %v4406_v52, 2  ;;  %v1481_v16 = vmul.f32 %v5800_v14, %v4658_v1  ;;  %v1417_v18 = vadd.f32 %v1415_v55, %v1357_v50  ;;  %v1418_v12 = vadd.f32 %v1416_v11, %v1358_v10  ;;  %v3531_v50 = vld [vmem:[%s5695_s4 + $0x174] sm:$0xf]  ;;  %v3528_v11 = vld [vmem:[%s5695_s4 + $0x168] sm:$0xf] }
 0x1c0   : > { %v5801_v39 = vperm.slane %v4404_v37, 0  ;;  %v5802_v32 = vperm.slane %v4406_v52, 0  ;;  %v4681_v61 = vadd.f32 %v1454_v51, %v1396_v9  ;;  %v1457_v25 = vadd.f32 %v1455_v28, %v1397_v43 }
 0x1c1   : > { %v1494_v38 = vmul.f32 %v5799_v45, %v4546_v49  ;;  %v4683_v46 = vadd.f32 %v1481_v16, %v1431_v6  ;;  %v1505_v9 = vperm.slane %v4406_v52, 3  ;;  %v3525_v52 = vld [vmem:[%s5695_s4 + $0x15c] sm:$0xf] }
 0x1c2   : > { %v1467_v2 = vmul.f32 %v5801_v39, %v1463_v59  ;;  %v1468_v15 = vmul.f32 %v5802_v32, %v1463_v59  ;;  %v1478_v39 = vperm.slane %v4404_v37, 1 }
 0x1c3   : > { %v4688_v10 = vadd.f32 %v1494_v38, %v1444_v54  ;;  %1960 = vperm.xlu1 %3656, %v3521_v63   ;;  %v3532_v54 = vld [vmem:[%s5695_s4 + $0x178] sm:$0xf] }
 0x1c4   : > { %v4690_v17 = vadd.f32 %v1467_v2, %v1417_v18  ;;  %v4692_v47 = vadd.f32 %v1468_v15, %v1418_v12  ;;  %2132 = vperm.xlu0 %3658, %v3531_v50   ;;  %v3536_v12 = vld [vmem:[%s5695_s4 + $0x188] sm:$0xf]  ;;  %v1504_v2 = vperm.slane %v4404_v37, 3  ;;  %v1480_v63 = vmul.f32 %v1478_v39, %v4658_v1 }
 0x1c5   : > { %v1511_v21 = vpop.permute.xlu1 %1510  ;;  %v4705_v20 = vpop.permute.xlu2 %1668 }
 0x1c6   : > { %v1502_v43 = vpop.permute.xlu0 %1501  ;;  %v1514_v59 = vsel %vm947_vm4, %v1511_v21, %v4561_v57  ;;  %v1515_v45 = vsel %vm947_vm4, %v4561_v57, %v1511_v21  ;;  %v1491_v57 = vperm.slane %v4404_v37, 2 }
 0x1c7   : > { %v1507_v22 = vmul.f32 %v1505_v9, %v1502_v43  ;;  %v1516_v14 = vmul.f32 %v1514_v59, %v4297_v27  ;;  %v1517_v16 = vmul.f32 %v1515_v45, %v4300_v29 }
 0x1c9   : > { %v4700_v44 = vadd.f32 %v1507_v22, %v1457_v25  ;;  %v1551_v32 = vperm.slane %v1516_v14, 2  ;;  %v1552_v15 = vperm.slane %v1517_v16, 2  ;;  %v1506_v25 = vmul.f32 %v1504_v2, %v1502_v43 }
 0x1ca   : > { %v1538_v21 = vperm.slane %v1516_v14, 1  ;;  %v1539_v9 = vperm.slane %v1517_v16, 1  ;;  %v1526_v37 = vperm.slane %v1517_v16, 0 }
 0x1cb   : > { %1986 = vperm.xlu1 %3656, %v3522_v36   ;;  %v1553_v1 = vmul.f32 %v1551_v32, %v4579_v30  ;;  %v1554_v43 = vmul.f32 %v1552_v15, %v4579_v30  ;;  %v1564_v32 = vperm.slane %v1516_v14, 3 }
 0x1cc   : > { %2197 = vperm.xlu0 %3658, %v3535_v26   ;;  %v1493_v26 = vmul.f32 %v1491_v57, %v4546_v49  ;;  %v4758_v49 = vadd.f32 %v1506_v25, %v4681_v61 }
 0x1cd   : > { %v1536_v19 = vpop.permute.xlu1 %1535  ;;  %v4712_v55 = vpop.permute.xlu2 %1692  ;;  %v4772_v57 = vadd.f32 %v1554_v43, %v4688_v10 }
 0x1ce   : > { %v1523_v60 = vpop.permute.xlu0 %1522  ;;  %v1541_v59 = vmul.f32 %v1539_v9, %v1536_v19  ;;  %v1495_v30 = vadd.f32 %v1493_v26, %v4664_v35 }
 0x1cf   : > { %v1528_v39 = vmul.f32 %v1526_v37, %v1523_v60 }
 0x1d0   : > { %v1543_v61 = vadd.f32 %v1541_v59, %v4683_v46 }
 0x1d3   : > { %2025 = vperm.xlu1 %3656, %v3525_v52   ;;  %v1525_v52 = vperm.slane %v1516_v14, 0  ;;  %v1530_v14 = vadd.f32 %v1528_v39, %v4692_v47 }
 0x1d5   : > { %v1571_v7 = vpop.permute.xlu1 %1570  ;;  %v4724_v6 = vpop.permute.xlu2 %1728 }
 0x1d6   : > { %v4710_v23 = vpop.permute.xlu0 %1561  ;;  %v1574_v22 = vsel %vm1015_vm5, %v1571_v7, %v4617_v33  ;;  %v1575_v36 = vsel %vm1015_vm5, %v4617_v33, %v1571_v7  ;;  %v1482_v33 = vadd.f32 %v1480_v63, %v4666_v40  ;;  %v3540_v7 = vld [vmem:[%s5695_s4 + $0x198] sm:$0xf]  ;;  %v4774_v63 = vadd.f32 %v1553_v1, %v1495_v30 }
 0x1d7   : > { %v1576_v2 = vmul.f32 %v1574_v22, %v4332_v4  ;;  %v1577_v29 = vmul.f32 %v1575_v36, %v4335_v53  ;;  %v1566_v46 = vmul.f32 %v1564_v32, %v4710_v23 }
 0x1d9   : > { %v1612_v25 = vperm.slane %v1577_v29, 2  ;;  %v1599_v9 = vperm.slane %v1577_v29, 1  ;;  %v1586_v36 = vperm.slane %v1577_v29, 0  ;;  %v1624_v30 = vperm.slane %v1576_v2, 3 }
 0x1db   : > { %2072 = vperm.xlu1 %3656, %v3528_v11  }
 0x1dd   : > { %v4717_v51 = vpop.permute.xlu1 %1595  ;;  %v4743_v50 = vpop.permute.xlu2 %1810 }
 0x1de   : > { %v4719_v28 = vpop.permute.xlu0 %1582 }
 0x1e3   : > { %2145 = vperm.xlu1 %3656, %v3532_v54   ;;  %v1540_v54 = vmul.f32 %v1538_v21, %v1536_v19  ;;  %v1565_v19 = vperm.slane %v1517_v16, 3  ;;  %v1611_v16 = vperm.slane %v1576_v2, 2  ;;  %v1598_v21 = vperm.slane %v1576_v2, 1 }
 0x1e5   : > { %v1631_v38 = vpop.permute.xlu1 %1630  ;;  %v1542_v40 = vadd.f32 %v1540_v54, %v1482_v33  ;;  %v1567_v10 = vmul.f32 %v1565_v19, %v4710_v23  ;;  %v4786_v26 = vpop.permute.xlu2 %1869  ;;  %v1600_v47 = vmul.f32 %v1598_v21, %v4717_v51  ;;  %v1613_v23 = vmul.f32 %v1611_v16, %v4652_v3 }
 0x1e6   : > { %v4734_v18 = vpop.permute.xlu0 %1621  ;;  %v1635_v15 = vsel %vm1083_vm6, %v4694_v62, %v1631_v38  ;;  %v1614_v54 = vmul.f32 %v1612_v25, %v4652_v3  ;;  %v1625_v3 = vperm.slane %v1577_v29, 3 }
 0x1e7   : > { %v1602_v19 = vadd.f32 %v1600_v47, %v1542_v40 }
 0x1eb   : > { %2210 = vperm.xlu1 %3656, %v3536_v12   ;;  %v1527_v12 = vmul.f32 %v1525_v52, %v1523_v60  ;;  %v1634_v60 = vsel %vm1083_vm6, %v1631_v38, %v4694_v62  ;;  %v4782_v62 = vmul.f32 %v1635_v15, %v4360_v24  ;;  %v1585_v38 = vperm.slane %v1576_v2, 0 }
 0x1ec   : > { %v4779_v22 = vmul.f32 %v1634_v60, %v4357_v41  ;;  %v1601_v52 = vmul.f32 %v1599_v9, %v4717_v51 }
 0x1ed   : > { %v1656_v11 = vpop.permute.xlu1 %1655  ;;  %v1529_v35 = vadd.f32 %v1527_v12, %v4690_v17  ;;  %v1587_v59 = vmul.f32 %v1585_v38, %v4719_v28  ;;  %v1588_v12 = vmul.f32 %v1586_v36, %v4719_v28  ;;  %v1659_v51 = vperm.slane %v4782_v62, 1 }
 0x1ee   : > { %v1643_v45 = vpop.permute.xlu0 %1642  ;;  %v1658_v39 = vperm.slane %v4779_v22, 1  ;;  %v1645_v32 = vperm.slane %v4779_v22, 0  ;;  %v1646_v28 = vperm.slane %v4782_v62, 0  ;;  %v1603_v60 = vadd.f32 %v1601_v52, %v1543_v61 }
 0x1ef   : > { %v1661_v16 = vmul.f32 %v1659_v51, %v1656_v11  ;;  %v1589_v25 = vadd.f32 %v1587_v59, %v1529_v35  ;;  %v1627_v38 = vmul.f32 %v1625_v3, %v4734_v18  ;;  %v1671_v36 = vperm.slane %v4779_v22, 2 }
 0x1f0   : > { %v1660_v15 = vmul.f32 %v1658_v39, %v1656_v11  ;;  %v1647_v21 = vmul.f32 %v1645_v32, %v1643_v45  ;;  %v1648_v9 = vmul.f32 %v1646_v28, %v1643_v45  ;;  %v1672_v40 = vperm.slane %v4782_v62, 2 }
 0x1f1   : > { %v1663_v45 = vadd.f32 %v1661_v16, %v1603_v60  ;;  %v1684_v39 = vperm.slane %v4779_v22, 3  ;;  %v1685_v51 = vperm.slane %v4782_v62, 3  ;;  %v1568_v60 = vadd.f32 %v1566_v46, %v4758_v49 }
 0x1f2   : > { %v1673_v16 = vmul.f32 %v1671_v36, %v4705_v20 }
 0x1f3   : > { %2275 = vperm.xlu1 %3656, %v3540_v7  }
 0x1f5   : > { %v1691_v17 = vpop.permute.xlu1 %1690 }
 0x1f6   : > { %v1694_v37 = vsel %vm1151_vm7, %v1691_v17, %v4712_v55  ;;  %v1695_v1 = vsel %vm1151_vm7, %v4712_v55, %v1691_v17  ;;  %v1682_v43 = vpop.permute.xlu0 %1681  ;;  %v3544_v55 = vld [vmem:[%s5695_s4 + $0x1a8] sm:$0xf] }
 0x1f7   : > { %v4803_v33 = vmul.f32 %v4389_v13, %v1694_v37  ;;  %v4806_v7 = vmul.f32 %v4394_v42, %v1695_v1  ;;  %v1590_v13 = vadd.f32 %v1588_v12, %v1530_v14  ;;  %v1626_v42 = vmul.f32 %v1624_v30, %v4734_v18  ;;  %v4821_v12 = vpop.permute.xlu2 %1934 }
 0x1f8   : > { %v1662_v14 = vadd.f32 %v1660_v15, %v1602_v19  ;;  %v1649_v37 = vadd.f32 %v1647_v21, %v1589_v25  ;;  %v1569_v15 = vadd.f32 %v1567_v10, %v4700_v44  ;;  %v1674_v25 = vmul.f32 %v1672_v40, %v4705_v20 }
 0x1f9   : > { %v1718_v2 = vperm.slane %v4803_v33, 1  ;;  %v1719_v29 = vperm.slane %v4806_v7, 1  ;;  %v1705_v11 = vperm.slane %v4803_v33, 0  ;;  %v1706_v35 = vperm.slane %v4806_v7, 0 }
 0x1fa   : > { %v1650_v18 = vadd.f32 %v1648_v9, %v1590_v13  ;;  %v1731_v3 = vperm.slane %v4803_v33, 2  ;;  %v1732_v32 = vperm.slane %v4806_v7, 2  ;;  %v1686_v13 = vmul.f32 %v1684_v39, %v1682_v43 }
 0x1fb   : > { %2340 = vperm.xlu1 %3656, %v3544_v55   ;;  %v1687_v22 = vmul.f32 %v1685_v51, %v1682_v43  ;;  %v1628_v9 = vadd.f32 %v1626_v42, %v1568_v60  ;;  %v1744_v44 = vperm.slane %v4803_v33, 3  ;;  %v1745_v46 = vperm.slane %v4806_v7, 3  ;;  %v1768_v7 = vld.sshfl [vmem:[#allocation1 + $0x8] sm:$0xff pattern:$0x75316420] }
 0x1fc   : > { %v1734_v49 = vmul.f32 %v1732_v32, %v4724_v6 }
 0x1fd   : > { %v1716_v61 = vpop.permute.xlu1 %1715  ;;  %v1688_v43 = vadd.f32 %v1686_v13, %v1628_v9 }
 0x1fe   : > { %v1720_v17 = vmul.f32 %v1718_v2, %v1716_v61  ;;  %v1721_v47 = vmul.f32 %v1719_v29, %v1716_v61  ;;  %v1703_v52 = vpop.permute.xlu0 %1702  ;;  %v1629_v2 = vadd.f32 %v1627_v38, %v1569_v15  ;;  %v1616_v29 = vadd.f32 %v1614_v54, %v4772_v57 }
 0x1ff   : > { %v1707_v1 = vmul.f32 %v1705_v11, %v1703_v52  ;;  %v1708_v59 = vmul.f32 %v1706_v35, %v1703_v52  ;;  %v1615_v61 = vadd.f32 %v1613_v23, %v4774_v63  ;;  %v1733_v11 = vmul.f32 %v1731_v3, %v4724_v6  ;;  %v4837_v23 = vpop.permute.xlu2 %1999 }
 0x200   : > { %v1722_v55 = vadd.f32 %v1720_v17, %v1662_v14  ;;  %v1723_v30 = vadd.f32 %v1721_v47, %v1663_v45  ;;  %v1676_v10 = vadd.f32 %v1674_v25, %v1616_v29  ;;  %v1689_v40 = vadd.f32 %v1687_v22, %v1629_v2 }
 0x201   : > { %v1709_v28 = vadd.f32 %v1707_v1, %v1649_v37  ;;  %v1710_v19 = vadd.f32 %v1708_v59, %v1650_v18  ;;  %v1675_v36 = vadd.f32 %v1673_v16, %v1615_v61  ;;  %v1767_v18 = vld.sshfl [vmem:[#allocation1] sm:$0xff pattern:$0x75316420] }
 0x202   : > { %v1736_v38 = vadd.f32 %v1734_v49, %v1676_v10  ;;  %v601_v59 = vld [vmem:[%s335_s19] sm:$0xff] }
 0x203   : > { %v1750_v21 = vadd.f32 %v1722_v55, %v1709_v28  ;;  %v1751_v62 = vadd.f32 %v1723_v30, %v1710_v19  ;;  %v1735_v57 = vadd.f32 %v1733_v11, %v1675_v36 }
 0x205   : > { %v1761_v17 = vpop.permute.xlu1 %1760 }
 0x206   : > { %v1742_v20 = vpop.permute.xlu0 %1741 }
 0x207   : > { %v1746_v35 = vmul.f32 %v1744_v44, %v1742_v20  ;;  %v1747_v42 = vmul.f32 %v1745_v46, %v1742_v20  ;;  %v2039_v55 = vpop.permute.xlu2 %2038 }
 0x209   : > { %v1748_v54 = vadd.f32 %v1746_v35, %v1688_v43  ;;  %v1749_v63 = vadd.f32 %v1747_v42, %v1689_v40 }
 0x20b   : > { %v1752_v14 = vadd.f32 %v1748_v54, %v1735_v57  ;;  %v1753_v6 = vadd.f32 %v1749_v63, %v1736_v38 }
 0x20d   : > { %v1754_v45 = vadd.f32 %v1752_v14, %v1750_v21  ;;  %v1755_v33 = vadd.f32 %v1753_v6, %v1751_v62  ;;  %v4886_v14 = vpop.permute.xlu1 %1799  ;;  %v3539_v6 = vld [vmem:[%s5695_s4 + $0x194] sm:$0xf] }
 0x20e   : > { %v4839_v47 = vpop.permute.xlu0 %1821 }
 0x20f   : > { %v1763_v52 = vadd.f32 %v1761_v17, %v1754_v45  ;;  %v1764_v37 = vadd.f32 %v1761_v17, %v1755_v33  ;;  %v2090_v62 = vpop.permute.xlu2 %2089 }
 0x211   : > { %v1772_v1 = vadd.f32 %v1768_v7, %v1764_v37  ;;  %v1771_v39 = vadd.f32 %v1767_v18, %v1763_v52  ;;  %v3543_v7 = vld [vmem:[%s5695_s4 + $0x1a4] sm:$0xf]  ;;  %v3538_v52 = vld [vmem:[%s5695_s4 + $0x190] sm:$0xf] }
 0x213   : > { %v1775_v51 = vrot.slane %v1772_v1, 4  ;;  %v3541_v1 = vld [vmem:[%s5695_s4 + $0x19c] sm:$0xf] }
 0x215   : > { %v1777_v30 = vsel %vm1776_vm8, %v1771_v39, %v1775_v51  ;;  %v4893_v17 = vpop.permute.xlu1 %1832 }
 0x216   : > { %v4847_v3 = vadd.f32 %v1777_v30, %v601_v59  ;;  %v4849_v32 = vpop.permute.xlu0 %1882 }
 0x218   : > { %v4852_v28 = vmax.f32 %v4847_v3, 0.0 }
 0x21a   : > { %1782 = vst [vmem:[#allocation1] ss:$2 sm:$0xff] %v4852_v28  ;;  %v2041_v19 = vperm.slane %v4852_v28, 0  ;;  %v2042_v60 = vperm.slane %v4852_v28, 4  ;;  %v2092_v15 = vperm.slane %v4852_v28, 3  ;;  %v2093_v16 = vperm.slane %v4852_v28, 7 }
 0x21b   : > { %v2058_v10 = vperm.slane %v4852_v28, 1  ;;  %v2059_v20 = vperm.slane %v4852_v28, 5 }
 0x21c   : > { %v2045_v25 = vperm.slane %v2041_v19, 0  ;;  %v2046_v13 = vperm.slane %v2042_v60, 0  ;;  %v2096_v22 = vperm.slane %v2092_v15, 3  ;;  %v2097_v21 = vperm.slane %v2093_v16, 3  ;;  %v4919_v15 = vpop.permute.xlu2 %2119  ;;  %v3545_v16 = vld [vmem:[%s5695_s4 + $0x1ac] sm:$0xf] }
 0x21d   : > { %v2062_v40 = vperm.slane %v2058_v10, 1  ;;  %v2063_v35 = vperm.slane %v2059_v20, 1  ;;  %v4906_v59 = vpop.permute.xlu1 %1856  ;;  %v3552_v10 = vld [vmem:[%s5695_s4 + $0x1c4] sm:$0xf] }
 0x21e   : > { %v4859_v9 = vpop.permute.xlu0 %1947  ;;  %v4861_v2 = vmul.f32 %v2045_v25, %v2039_v55  ;;  %v4863_v29 = vmul.f32 %v2046_v13, %v2039_v55  ;;  %v4865_v61 = vmul.f32 %v2096_v22, %v2090_v62  ;;  %v4867_v11 = vmul.f32 %v2097_v21, %v2090_v62  ;;  %v3542_v55 = vld [vmem:[%s5695_s4 + $0x1a0] sm:$0xf]  ;;  %v3549_v21 = vld [vmem:[%s5695_s4 + $0x1b8] sm:$0xf] }
 0x221   : > { %v1784_v49 = vld.sshfl [vmem:[#allocation1 + $0x8] sm:$0xff pattern:$0x75316420]  ;;  %v1783_v44 = vld.sshfl [vmem:[#allocation1] sm:$0xff pattern:$0x75316420] }
 0x222   : > { %1789 = vrot.lane.b32.xlu0 %v1784_v49, %s5805_s24  ;;  %1787 = vrot.lane.b32.xlu2 %v1783_v44, %s5805_s24  ;;  %1839 = vst [vmem:[#allocation1] ss:$2 sm:$0xff] %v4852_v28  ;;  %v3548_v49 = vld [vmem:[%s5695_s4 + $0x1b4] sm:$0xf] }
 0x224   : > { %v4932_v62 = vpop.permute.xlu2 %2158 }
 0x225   : > { %v4916_v60 = vpop.permute.xlu1 %1895  ;;  %5807 = vst [vmem:[#allocation12_spill] sm:$0xff] %v4932_v62 }
 0x226   : > { %v4872_v46 = vpop.permute.xlu0 %2012 }
 0x229   : > { %v1841_v36 = vld.sshfl [vmem:[#allocation1 + $0x8] sm:$0xff pattern:$0x75316420]  ;;  %v1840_v43 = vld.sshfl [vmem:[#allocation1] sm:$0xff pattern:$0x75316420] }
 0x22a   : > { %1846 = vrot.lane.b32.xlu0 %v1841_v36, %s5806_s26  ;;  %1844 = vrot.lane.b32.xlu2 %v1840_v43, %s5806_s26  ;;  %1904 = vst [vmem:[#allocation1] ss:$2 sm:$0xff] %v4852_v28  ;;  %v3558_v36 = vld [vmem:[%s5695_s4 + $0x1dc] sm:$0xf]  ;;  %v3546_v43 = vld [vmem:[%s5696_s5 + $0x8] sm:$0xf] }
 0x22c   : > { %v4946_v20 = vpop.permute.xlu2 %2184 }
 0x22d   : > { %v4927_v22 = vpop.permute.xlu1 %1921  ;;  %5808 = vst [vmem:[#allocation13_spill] sm:$0xff] %v4946_v20 }
 0x22e   : > { %v2056_v42 = vpop.permute.xlu0 %2055 }
 0x22f   : > { %v4879_v38 = vmul.f32 %v2062_v40, %v2056_v42  ;;  %v4881_v57 = vmul.f32 %v2063_v35, %v2056_v42  ;;  %v3554_v40 = vld [vmem:[%s5695_s4 + $0x1cc] sm:$0xf] }
 0x231   : > { %v1906_v54 = vld.sshfl [vmem:[#allocation1 + $0x8] sm:$0xff pattern:$0x75316420]  ;;  %v1905_v63 = vld.sshfl [vmem:[#allocation1] sm:$0xff pattern:$0x75316420] }
 0x232   : > { %1911 = vrot.lane.b32.xlu0 %v1906_v54, %s5786_s21  ;;  %1909 = vrot.lane.b32.xlu2 %v1905_v63, %s5786_s21  ;;  %1969 = vst [vmem:[#allocation1] ss:$2 sm:$0xff] %v4852_v28  ;;  %v3559_v54 = vld [vmem:[%s5695_s4 + $0x1e0] sm:$0xf]  ;;  %v3547_v63 = vld [vmem:[%s5695_s4 + $0x1b0] sm:$0xf] }
 0x234   : > { %v4960_v42 = vpop.permute.xlu2 %2223 }
 0x235   : > { %v4938_v44 = vpop.permute.xlu1 %1960  ;;  %5809 = vst [vmem:[#allocation15_spill] sm:$0xff] %v4960_v42 }
 0x239   : > { %v1971_v45 = vld.sshfl [vmem:[#allocation1 + $0x8] sm:$0xff pattern:$0x75316420]  ;;  %v1970_v33 = vld.sshfl [vmem:[#allocation1] sm:$0xff pattern:$0x75316420] }
 0x23a   : > { %2262 = vperm.xlu0 %3658, %v3539_v6   ;;  %1974 = vrot.lane.b32.xlu2 %v1970_v33, %s5787_s12  ;;  %2102 = vst [vmem:[#allocation1] ss:$2 sm:$0xff] %v4852_v28  ;;  %v3557_v6 = vld [vmem:[%s5695_s4 + $0x1d8] sm:$0xf] }
 0x23d   : > { %v4958_v35 = vpop.permute.xlu1 %1986 }
 0x241   : > { %v2104_v37 = vld.sshfl [vmem:[#allocation1 + $0x8] sm:$0xff pattern:$0x75316420]  ;;  %v2103_v18 = vld.sshfl [vmem:[#allocation1] sm:$0xff pattern:$0x75316420] }
 0x242   : > { %2327 = vperm.xlu0 %3658, %v3543_v7   ;;  %2249 = vperm.xlu2 %3657, %v3538_v52   ;;  %2167 = vst [vmem:[#allocation1] ss:$2 sm:$0xff] %v4852_v28  ;;  %v3562_v7 = vld [vmem:[%s5695_s4 + $0x1ec] sm:$0xf]  ;;  %v3550_v52 = vld [vmem:[%s5695_s4 + $0x1bc] sm:$0xf] }
 0x243   : > { %2109 = vrot.lane.b32.xlu1 %v2104_v37, %s5788_s13  ;;  %v3561_v37 = vld [vmem:[%s5695_s4 + $0x1e8] sm:$0xf] }
 0x249   : > { %v2169_v39 = vld.sshfl [vmem:[#allocation1 + $0x8] sm:$0xff pattern:$0x75316420]  ;;  %v2168_v51 = vld.sshfl [vmem:[#allocation1] sm:$0xff pattern:$0x75316420] }
 0x24a   : > { %1976 = vrot.lane.b32.xlu0 %v1971_v45, %s5787_s12  ;;  %2288 = vperm.xlu2 %3657, %v3541_v1   ;;  %2232 = vst [vmem:[#allocation1] ss:$2 sm:$0xff] %v4852_v28  ;;  %v4971_v45 = vpop.permute.xlu1 %2025 }
 0x24b   : > { %2174 = vrot.lane.b32.xlu1 %v2169_v39, %s5785_s22 }
 0x251   : > { %v2234_v30 = vld.sshfl [vmem:[#allocation1 + $0x8] sm:$0xff pattern:$0x75316420]  ;;  %v2233_v19 = vld.sshfl [vmem:[#allocation1] sm:$0xff pattern:$0x75316420] }
 0x252   : > { %2314 = vperm.xlu2 %3657, %v3542_v55   ;;  %2107 = vrot.lane.b32.xlu0 %v2103_v18, %s5788_s13  ;;  %2297 = vst [vmem:[#allocation1] ss:$2 sm:$0xff] %v4852_v28  ;;  %v4982_v18 = vpop.permute.xlu0 %2132  ;;  %v2073_v39 = vpop.permute.xlu1 %2072  ;;  %v3551_v55 = vld [vmem:[%s5695_s4 + $0x1c0] sm:$0xf] }
 0x253   : > { %2239 = vrot.lane.b32.xlu1 %v2234_v30, %s5790_s20  ;;  %v3565_v30 = vld [vmem:[%s5695_s4 + $0x1f8] sm:$0xf] }
 0x259   : > { %v2299_v25 = vld.sshfl [vmem:[#allocation1 + $0x8] sm:$0xff pattern:$0x75316420]  ;;  %v2298_v13 = vld.sshfl [vmem:[#allocation1] sm:$0xff pattern:$0x75316420] }
 0x25a   : > { %2353 = vperm.xlu2 %3657, %v3545_v16   ;;  %2172 = vrot.lane.b32.xlu0 %v2168_v51, %s5785_s22  ;;  %2919 = vst [vmem:[#allocation1] ss:$2 sm:$0xff] %v4847_v3  ;;  %v3555_v3 = vld [vmem:[%s5695_s4 + $0x1d0] sm:$0xf] }
 0x25b   : > { %2304 = vrot.lane.b32.xlu1 %v2299_v25, %s5789_s23  ;;  %v3563_v51 = vld [vmem:[%s5695_s4 + $0x1f0] sm:$0xf]  ;;  %v4997_v25 = vpop.permute.xlu1 %2145 }
 0x25c   : > { %5811 = vst [vmem:[#allocation20_spill] sm:$0xff] %v4997_v25 }
 0x262   : > { %2413 = vperm.xlu2 %3657, %v3549_v21   ;;  %2237 = vrot.lane.b32.xlu0 %v2233_v19, %s5790_s20  ;;  %v4993_v19 = vpop.permute.xlu0 %2197  ;;  %v3553_v21 = vld [vmem:[%s5695_s4 + $0x1c8] sm:$0xf] }
 0x263   : > { %2402 = vperm.xlu1 %3656, %v3548_v49   ;;  %5810 = vst [vmem:[#allocation16_spill] sm:$0xff] %v4993_v19  ;;  %v3569_v49 = vld [vmem:[%s5695_s4 + $0x208] sm:$0xf] }
 0x26a   : > { %2503 = vperm.xlu2 %3657, %v3555_v3   ;;  %2302 = vrot.lane.b32.xlu0 %v2298_v13, %s5789_s23  ;;  %v3566_v13 = vld [vmem:[%s5695_s4 + $0x1fc] sm:$0xf] }
 0x26b   : > { %2456 = vperm.xlu1 %3656, %v3552_v10  }
 0x272   : > { %2542 = vperm.xlu2 %3657, %v3558_v36   ;;  %2372 = vperm.xlu0 %3658, %v3546_v43   ;;  %v3567_v36 = vld [vmem:[%s5695_s4 + $0x200] sm:$0xf]  ;;  %v3573_v43 = vld [vmem:[%s5695_s4 + $0x218] sm:$0xf] }
 0x273   : > { %2482 = vperm.xlu1 %3656, %v3554_v40   ;;  %v5016_v40 = vpop.permute.xlu1 %2210 }
 0x274   : > { %5812 = vst [vmem:[#allocation21_spill] sm:$0xff] %v5016_v40 }
 0x27a   : > { %2563 = vperm.xlu2 %3657, %v3559_v54   ;;  %2391 = vperm.xlu0 %3658, %v3547_v63   ;;  %v3556_v54 = vld [vmem:[%s5695_s4 + $0x1d4] sm:$0xf] }
 0x27b   : > { %2529 = vperm.xlu1 %3656, %v3557_v6  }
 0x27c   : > { %v1788_v33 = vpop.permute.xlu2 %1787 }
 0x282   : > { %2602 = vperm.xlu2 %3657, %v3562_v7   ;;  %2424 = vperm.xlu0 %3658, %v3550_v52   ;;  %v3570_v7 = vld [vmem:[%s5695_s4 + $0x20c] sm:$0xf]  ;;  %v3576_v52 = vld [vmem:[%s5695_s4 + $0x224] sm:$0xf] }
 0x283   : > { %2589 = vperm.xlu1 %3656, %v3561_v37   ;;  %v3560_v37 = vld [vmem:[%s5695_s4 + $0x1e4] sm:$0xf] }
 0x284   : > { %v1845_v1 = vpop.permute.xlu2 %1844 }
 0x28a   : > { %2615 = vperm.xlu2 %3657, %v3563_v51   ;;  %2443 = vperm.xlu0 %3658, %v3551_v55   ;;  %v5032_v51 = vpop.permute.xlu1 %2275 }
 0x28b   : > { %2641 = vperm.xlu1 %3656, %v3565_v30   ;;  %5814 = vst [vmem:[#allocation23_spill] sm:$0xff] %v5032_v51 }
 0x28c   : > { %v4995_v16 = vpop.permute.xlu2 %1909 }
 0x292   : > { %2654 = vperm.xlu2 %3657, %v3566_v13   ;;  %2469 = vperm.xlu0 %3658, %v3553_v21   ;;  %v3571_v13 = vld [vmem:[%s5695_s4 + $0x210] sm:$0xf]  ;;  %v5058_v51 = vpop.permute.xlu1 %2340 }
 0x293   : > { %2701 = vperm.xlu1 %3656, %v3569_v49   ;;  %5818 = vst [vmem:[#allocation27_spill] sm:$0xff] %v5058_v51 }
 0x294   : > { %v1790_v3 = vpop.permute.xlu0 %1789  ;;  %v5008_v10 = vpop.permute.xlu2 %1974 }
 0x295   : > { %v1791_v21 = vsel %vm616_vm0, %v1788_v33, %v1790_v3  ;;  %v1792_v49 = vsel %vm616_vm0, %v1790_v3, %v1788_v33 }
 0x29a   : > { %2675 = vperm.xlu2 %3657, %v3567_v36   ;;  %2516 = vperm.xlu0 %3658, %v3556_v54   ;;  %v3564_v36 = vld [vmem:[%s5695_s4 + $0x1f4] sm:$0xf]  ;;  %v2076_v54 = vperm.slane %v4852_v28, 6 }
 0x29b   : > { %2761 = vperm.xlu1 %3656, %v3573_v43   ;;  %v2075_v43 = vperm.slane %v4852_v28, 2 }
 0x29c   : > { %v1847_v63 = vpop.permute.xlu0 %1846  ;;  %v5021_v6 = vpop.permute.xlu2 %2249  ;;  %v2080_v40 = vperm.slane %v2076_v54, 2 }
 0x29d   : > { %5813 = vst [vmem:[#allocation22_spill] sm:$0xff] %v5021_v6  ;;  %v2079_v42 = vperm.slane %v2075_v43, 2  ;;  %v3568_v43 = vld [vmem:[%s5695_s4 + $0x204] sm:$0xf] }
 0x2a2   : > { %2714 = vperm.xlu2 %3657, %v3570_v7   ;;  %2576 = vperm.xlu0 %3658, %v3560_v37   ;;  %v1848_v7 = vsel %vm675_vm1, %v1845_v1, %v1847_v63  ;;  %v1793_v37 = vmul.f32 %v1792_v49, %v5791_v34 }
 0x2a3   : > { %2808 = vperm.xlu1 %3656, %v3576_v52   ;;  %v1849_v52 = vsel %vm675_vm1, %v1847_v63, %v1845_v1  ;;  %v1851_v6 = vmul.f32 %v1848_v7, %v5794_v8  ;;  %v3574_v63 = vld [vmem:[%s5695_s4 + $0x21c] sm:$0xf] }
 0x2a4   : > { %v1912_v55 = vpop.permute.xlu0 %1911  ;;  %v5034_v30 = vpop.permute.xlu2 %2288  ;;  %v1850_v28 = vmul.f32 %v1849_v52, %v5793_v48  ;;  %v1802_v24 = vperm.slane %v1793_v37, 0  ;;  %v1813_v49 = vperm.slane %v1793_v37, 1  ;;  %v1835_v48 = vperm.slane %v1793_v37, 3 }
 0x2a5   : > { %5815 = vst [vmem:[#allocation24_spill] sm:$0xff] %v5034_v30  ;;  %v1794_v30 = vmul.f32 %v1791_v21, %v5792_v56  ;;  %v5067_v21 = vmul.f32 %v2080_v40, %v2073_v39  ;;  %v1824_v56 = vperm.slane %v1793_v37, 2  ;;  %v1860_v52 = vperm.slane %v1851_v6, 0 }
 0x2a6   : > { %v1859_v51 = vperm.slane %v1850_v28, 0  ;;  %v1872_v54 = vperm.slane %v1850_v28, 1  ;;  %v1873_v7 = vperm.slane %v1851_v6, 1  ;;  %v1913_v8 = vsel %vm743_vm2, %v4995_v16, %v1912_v55 }
 0x2a7   : > { %v1803_v1 = vperm.slane %v1794_v30, 0  ;;  %5819 = vst [vmem:[#allocation28_spill] sm:$0xff] %v5067_v21  ;;  %v1825_v34 = vperm.slane %v1794_v30, 2  ;;  %v1886_v41 = vperm.slane %v1851_v6, 2  ;;  %v1898_v19 = vperm.slane %v1850_v28, 3 }
 0x2a8   : > { %v1899_v20 = vperm.slane %v1851_v6, 3  ;;  %v1861_v21 = vmul.f32 %v1859_v51, %v4906_v59  ;;  %v1874_v6 = vmul.f32 %v1872_v54, %v4786_v26 }
 0x2a9   : > { %v1805_v40 = vmul.f32 %v1803_v1, %v4886_v14  ;;  %v1826_v1 = vmul.f32 %v1824_v56, %v4839_v47  ;;  %v1827_v51 = vmul.f32 %v1825_v34, %v4839_v47  ;;  %v3572_v34 = vld [vmem:[%s5695_s4 + $0x214] sm:$0xf] }
 0x2aa   : > { %2735 = vperm.xlu2 %3657, %v3571_v13   ;;  %2628 = vperm.xlu0 %3658, %v3564_v36   ;;  %v5065_v13 = vmul.f32 %v2079_v42, %v2073_v39  ;;  %v1814_v36 = vperm.slane %v1794_v30, 1  ;;  %v1914_v42 = vsel %vm743_vm2, %v1912_v55, %v4995_v16  ;;  %v1804_v39 = vmul.f32 %v1802_v24, %v4886_v14  ;;  %v5820_v24 = vld [vmem:[#allocation14_spill] sm:$0xff] }
 0x2ab   : > { %v1862_v16 = vmul.f32 %v1860_v52, %v4906_v59  ;;  %v1915_v55 = vmul.f32 %v1914_v42, %v5795_v0  ;;  %v1837_v59 = vmul.f32 %v1835_v48, %v4893_v17 }
 0x2ac   : > { %v5054_v33 = vpop.permute.xlu0 %2262  ;;  %v5056_v3 = vpop.permute.xlu2 %2314  ;;  %v1816_v37 = vmul.f32 %v1814_v36, %v4743_v50  ;;  %v1863_v36 = vadd.f32 %v1861_v21, %v1804_v39 }
 0x2ad   : > { %5816 = vst [vmem:[#allocation25_spill] sm:$0xff] %v5054_v33  ;;  %v1885_v33 = vperm.slane %v1850_v28, 2  ;;  %v1875_v28 = vmul.f32 %v1873_v7, %v4786_v26  ;;  %v1864_v54 = vadd.f32 %v1862_v16, %v1805_v40  ;;  %v1924_v42 = vperm.slane %v1915_v55, 0 }
 0x2ae   : > { %5817 = vst [vmem:[#allocation26_spill] sm:$0xff] %v5056_v3  ;;  %v1836_v3 = vperm.slane %v1794_v30, 3  ;;  %v1815_v30 = vmul.f32 %v1813_v49, %v4743_v50  ;;  %v1900_v49 = vmul.f32 %v1898_v19, %v4916_v60  ;;  %v1901_v50 = vmul.f32 %v1899_v20, %v4916_v60 }
 0x2af   : > { %v1877_v48 = vadd.f32 %v1875_v28, %v1816_v37  ;;  %v1937_v47 = vperm.slane %v1915_v55, 1  ;;  %v1963_v7 = vperm.slane %v1915_v55, 3  ;;  %v1926_v39 = vmul.f32 %v1924_v42, %v4927_v22 }
 0x2b0   : > { %v1838_v52 = vmul.f32 %v1836_v3, %v4893_v17  ;;  %v1876_v56 = vadd.f32 %v1874_v6, %v1815_v30  ;;  %v1950_v3 = vperm.slane %v1915_v55, 2 }
 0x2b1   : > { %v1939_v30 = vmul.f32 %v1937_v47, %v4821_v12 }
 0x2b2   : > { %2774 = vperm.xlu2 %3657, %v3574_v63   ;;  %2688 = vperm.xlu0 %3658, %v3568_v43   ;;  %v1916_v63 = vmul.f32 %v1913_v8, %v5820_v24  ;;  %v1887_v8 = vmul.f32 %v1885_v33, %v4849_v32  ;;  %v1888_v43 = vmul.f32 %v1886_v41, %v4849_v32 }
 0x2b3   : > { %v1902_v24 = vadd.f32 %v1900_v49, %v1837_v59  ;;  %v1903_v60 = vadd.f32 %v1901_v50, %v1838_v52 }
 0x2b4   : > { %v5080_v62 = vpop.permute.xlu0 %2327  ;;  %v5082_v25 = vpop.permute.xlu2 %2353  ;;  %v1925_v26 = vperm.slane %v1916_v63, 0  ;;  %v1938_v17 = vperm.slane %v1916_v63, 1  ;;  %v1951_v33 = vperm.slane %v1916_v63, 2  ;;  %v1964_v41 = vperm.slane %v1916_v63, 3 }
 0x2b5   : > { %v5088_v14 = vpop.permute.xlu1 %2109  ;;  %v1889_v32 = vadd.f32 %v1887_v8, %v1826_v1  ;;  %v1890_v19 = vadd.f32 %v1888_v43, %v1827_v51  ;;  %v1965_v51 = vmul.f32 %v1963_v7, %v4938_v44 }
 0x2b6   : > { %v1927_v40 = vmul.f32 %v1925_v26, %v4927_v22  ;;  %v1940_v37 = vmul.f32 %v1938_v17, %v4821_v12  ;;  %v1952_v22 = vmul.f32 %v1950_v3, %v4859_v9  ;;  %v1953_v1 = vmul.f32 %v1951_v33, %v4859_v9  ;;  %v3575_v26 = vld [vmem:[%s5695_s4 + $0x220] sm:$0xf] }
 0x2b7   : > { %v1966_v59 = vmul.f32 %v1964_v41, %v4938_v44  ;;  %v1967_v3 = vadd.f32 %v1965_v51, %v1902_v24  ;;  %v1941_v41 = vadd.f32 %v1939_v30, %v1876_v56 }
 0x2b8   : > { %v1929_v47 = vadd.f32 %v1927_v40, %v1864_v54  ;;  %v1955_v30 = vadd.f32 %v1953_v1, %v1890_v19 }
 0x2b9   : > { %v1968_v44 = vadd.f32 %v1966_v59, %v1903_v60 }
 0x2ba   : > { %2748 = vperm.xlu0 %3658, %v3572_v34   ;;  %v1928_v34 = vadd.f32 %v1926_v39, %v1863_v36 }
 0x2bc   : > { %v1977_v20 = vpop.permute.xlu0 %1976  ;;  %v5105_v21 = vpop.permute.xlu2 %2413 }
 0x2bd   : > { %v1978_v16 = vsel %vm811_vm3, %v5008_v10, %v1977_v20  ;;  %v1979_v55 = vsel %vm811_vm3, %v1977_v20, %v5008_v10  ;;  %v5115_v63 = vpop.permute.xlu1 %2174  ;;  %v1942_v20 = vadd.f32 %v1940_v37, %v1877_v48  ;;  %v1954_v48 = vadd.f32 %v1952_v22, %v1889_v32 }
 0x2be   : > { %v1980_v6 = vmul.f32 %v1979_v55, %v5797_v5  ;;  %v1981_v28 = vmul.f32 %v1978_v16, %v5798_v58 }
 0x2c0   : > { %v1989_v52 = vperm.slane %v1980_v6, 0  ;;  %v1990_v10 = vperm.slane %v1981_v28, 0  ;;  %v2002_v8 = vperm.slane %v1980_v6, 1  ;;  %v2003_v43 = vperm.slane %v1981_v28, 1 }
 0x2c1   : > { %v2015_v49 = vperm.slane %v1980_v6, 2  ;;  %v2016_v50 = vperm.slane %v1981_v28, 2  ;;  %v2028_v42 = vperm.slane %v1980_v6, 3  ;;  %v2029_v12 = vperm.slane %v1981_v28, 3  ;;  %v5821_v28 = vld [vmem:[#allocation17_spill] sm:$0xff] }
 0x2c2   : > { %v1991_v9 = vmul.f32 %v1989_v52, %v4958_v35  ;;  %v1992_v17 = vmul.f32 %v1990_v10, %v4958_v35  ;;  %v2004_v16 = vmul.f32 %v2002_v8, %v4837_v23  ;;  %v2005_v55 = vmul.f32 %v2003_v43, %v4837_v23  ;;  %2795 = vperm.xlu0 %3658, %v3575_v26  }
 0x2c3   : > { %v2030_v33 = vmul.f32 %v2028_v42, %v4971_v45  ;;  %v2031_v7 = vmul.f32 %v2029_v12, %v4971_v45  ;;  %v2017_v54 = vmul.f32 %v2015_v49, %v4872_v46  ;;  %v2018_v35 = vmul.f32 %v2016_v50, %v4872_v46 }
 0x2c4   : > { %v5134_v6 = vpop.permute.xlu2 %2503  ;;  %v2108_v36 = vpop.permute.xlu0 %2107  ;;  %v1993_v40 = vadd.f32 %v1991_v9, %v1928_v34  ;;  %v1994_v45 = vadd.f32 %v1992_v17, %v1929_v47  ;;  %v2006_v51 = vadd.f32 %v2004_v16, %v1941_v41  ;;  %v2007_v59 = vadd.f32 %v2005_v55, %v1942_v20  ;;  %v5823_v20 = vld [vmem:[#allocation20_spill] sm:$0xff] }
 0x2c5   : > { %v2032_v24 = vadd.f32 %v2030_v33, %v1967_v3  ;;  %v2033_v60 = vadd.f32 %v2031_v7, %v1968_v44  ;;  %v5138_v39 = vpop.permute.xlu1 %2239  ;;  %v2111_v56 = vsel %vm947_vm4, %v2108_v36, %v5088_v14  ;;  %v2112_v23 = vsel %vm947_vm4, %v5088_v14, %v2108_v36  ;;  %v5822_v7 = vld [vmem:[#allocation28_spill] sm:$0xff] }
 0x2c6   : > { %v2113_v37 = vmul.f32 %v2111_v56, %v4297_v27  ;;  %v2114_v46 = vmul.f32 %v2112_v23, %v5821_v28  ;;  %v2019_v42 = vadd.f32 %v2017_v54, %v1954_v48  ;;  %v2020_v12 = vadd.f32 %v2018_v35, %v1955_v30  ;;  %v5824_v55 = vld [vmem:[#allocation12_spill] sm:$0xff]  ;;  %v5825_v48 = vld [vmem:[#allocation13_spill] sm:$0xff] }
 0x2c7   : > { %v2100_v52 = vadd.f32 %v4865_v61, %v2032_v24  ;;  %v2101_v10 = vadd.f32 %v4867_v11, %v2033_v60  ;;  %v2049_v14 = vadd.f32 %v4861_v2, %v1993_v40  ;;  %v2050_v32 = vadd.f32 %v4863_v29, %v1994_v45 }
 0x2c8   : > { %v2122_v8 = vperm.slane %v2113_v37, 0  ;;  %v2123_v43 = vperm.slane %v2114_v46, 0  ;;  %v2135_v49 = vperm.slane %v2113_v37, 1  ;;  %v2136_v50 = vperm.slane %v2114_v46, 1 }
 0x2c9   : > { %v2148_v19 = vperm.slane %v2113_v37, 2  ;;  %v2149_v22 = vperm.slane %v2114_v46, 2  ;;  %v2161_v1 = vperm.slane %v2113_v37, 3  ;;  %v2162_v26 = vperm.slane %v2114_v46, 3  ;;  %v5826_v37 = vld [vmem:[#allocation16_spill] sm:$0xff] }
 0x2ca   : > { %v2124_v34 = vmul.f32 %v2122_v8, %v4919_v15  ;;  %v2125_v61 = vmul.f32 %v2123_v43, %v4919_v15  ;;  %v2066_v9 = vadd.f32 %v4879_v38, %v2006_v51  ;;  %v2067_v17 = vadd.f32 %v4881_v57, %v2007_v59 }
 0x2cb   : > { %v2137_v3 = vmul.f32 %v2135_v49, %v4982_v18  ;;  %v2138_v2 = vmul.f32 %v2136_v50, %v4982_v18  ;;  %v2083_v57 = vadd.f32 %v5065_v13, %v2019_v42  ;;  %v2084_v41 = vadd.f32 %v5822_v7, %v2020_v12  ;;  %v5830_v7 = vld [vmem:[#allocation15_spill] sm:$0xff] }
 0x2cc   : > { %v5154_v47 = vpop.permute.xlu2 %2542  ;;  %v2173_v11 = vpop.permute.xlu0 %2172  ;;  %v2150_v18 = vmul.f32 %v2148_v19, %v5823_v20  ;;  %v2151_v16 = vmul.f32 %v2149_v22, %v5823_v20  ;;  %v2163_v36 = vmul.f32 %v2161_v1, %v5824_v55  ;;  %v2164_v54 = vmul.f32 %v2162_v26, %v5824_v55 }
 0x2cd   : > { %v2176_v29 = vsel %vm1015_vm5, %v2173_v11, %v5115_v63  ;;  %v2177_v44 = vsel %vm1015_vm5, %v5115_v63, %v2173_v11  ;;  %v5166_v15 = vpop.permute.xlu1 %2304  ;;  %v2126_v40 = vadd.f32 %v2124_v34, %v2049_v14  ;;  %v2127_v45 = vadd.f32 %v2125_v61, %v2050_v32  ;;  %v5827_v11 = vld [vmem:[#allocation18_spill] sm:$0xff] }
 0x2ce   : > { %v2178_v33 = vmul.f32 %v2176_v29, %v4332_v4  ;;  %v2179_v38 = vmul.f32 %v2177_v44, %v4335_v53  ;;  %v2139_v56 = vadd.f32 %v2137_v3, %v2066_v9  ;;  %v2140_v23 = vadd.f32 %v2138_v2, %v2067_v17  ;;  %v5828_v17 = vld [vmem:[#allocation19_spill] sm:$0xff]  ;;  %v5829_v44 = vld [vmem:[#allocation21_spill] sm:$0xff] }
 0x2cf   : > { %v2152_v34 = vadd.f32 %v2150_v18, %v2083_v57  ;;  %v2153_v61 = vadd.f32 %v2151_v16, %v2084_v41  ;;  %v2165_v2 = vadd.f32 %v2163_v36, %v2100_v52  ;;  %v2166_v29 = vadd.f32 %v2164_v54, %v2101_v10  ;;  %v5832_v10 = vld [vmem:[#allocation25_spill] sm:$0xff] }
 0x2d0   : > { %v2187_v35 = vperm.slane %v2178_v33, 0  ;;  %v2188_v63 = vperm.slane %v2179_v38, 0  ;;  %v2200_v24 = vperm.slane %v2178_v33, 1  ;;  %v2201_v60 = vperm.slane %v2179_v38, 1 }
 0x2d1   : > { %v2213_v59 = vperm.slane %v2178_v33, 2  ;;  %v2214_v8 = vperm.slane %v2179_v38, 2  ;;  %v2226_v43 = vperm.slane %v2178_v33, 3  ;;  %v2227_v49 = vperm.slane %v2179_v38, 3 }
 0x2d2   : > { %v2189_v13 = vmul.f32 %v2187_v35, %v5825_v48  ;;  %v2190_v30 = vmul.f32 %v2188_v63, %v5825_v48  ;;  %v2202_v46 = vmul.f32 %v2200_v24, %v5826_v37  ;;  %v2203_v51 = vmul.f32 %v2201_v60, %v5826_v37  ;;  %v5831_v60 = vld [vmem:[#allocation22_spill] sm:$0xff]  ;;  %v5834_v48 = vld [vmem:[#allocation24_spill] sm:$0xff] }
 0x2d3   : > { %v2215_v33 = vmul.f32 %v2213_v59, %v5829_v44  ;;  %v2216_v38 = vmul.f32 %v2214_v8, %v5829_v44  ;;  %v2228_v20 = vmul.f32 %v2226_v43, %v5830_v7  ;;  %v2229_v55 = vmul.f32 %v2227_v49, %v5830_v7 }
 0x2d4   : > { %v5180_v50 = vpop.permute.xlu2 %2563  ;;  %v2238_v42 = vpop.permute.xlu0 %2237  ;;  %v2191_v12 = vadd.f32 %v2189_v13, %v2126_v40  ;;  %v2192_v14 = vadd.f32 %v2190_v30, %v2127_v45  ;;  %v2204_v32 = vadd.f32 %v2202_v46, %v2139_v56  ;;  %v2205_v19 = vadd.f32 %v2203_v51, %v2140_v23  ;;  %v5833_v45 = vld [vmem:[#allocation23_spill] sm:$0xff] }
 0x2d5   : > { %v2241_v22 = vsel %vm1083_vm6, %v2238_v42, %v5138_v39  ;;  %v2242_v1 = vsel %vm1083_vm6, %v5138_v39, %v2238_v42  ;;  %v5188_v26 = vpop.permute.xlu1 %2402  ;;  %v2217_v51 = vadd.f32 %v2215_v33, %v2152_v34  ;;  %v2218_v59 = vadd.f32 %v2216_v38, %v2153_v61  ;;  %v3662_v61 = vld [vmem:[%s5693_s2 + $0x18] ss:$0 sm:$0xff] }
 0x2d6   : > { %v2243_v9 = vmul.f32 %v2241_v22, %v5827_v11  ;;  %v2244_v3 = vmul.f32 %v2242_v1, %v5828_v17  ;;  %v2230_v8 = vadd.f32 %v2228_v20, %v2165_v2  ;;  %v2231_v43 = vadd.f32 %v2229_v55, %v2166_v29  ;;  %v5853_v11 = vld [vmem:[#allocation10_spill] sm:$0xff] }
 0x2d8   : > { %v2252_v35 = vperm.slane %v2243_v9, 0  ;;  %v2253_v39 = vperm.slane %v2244_v3, 0  ;;  %v2265_v63 = vperm.slane %v2243_v9, 1  ;;  %v2266_v24 = vperm.slane %v2244_v3, 1 }
 0x2d9   : > { %v2278_v57 = vperm.slane %v2243_v9, 2  ;;  %v2279_v41 = vperm.slane %v2244_v3, 2  ;;  %v2291_v18 = vperm.slane %v2243_v9, 3  ;;  %v2292_v16 = vperm.slane %v2244_v3, 3  ;;  %v3661_v3 = vld [vmem:[%s5693_s2 + $0x10] ss:$0 sm:$0xff] }
 0x2da   : > { %v2254_v40 = vmul.f32 %v2252_v35, %v5831_v60  ;;  %v2255_v52 = vmul.f32 %v2253_v39, %v5831_v60  ;;  %v2267_v36 = vmul.f32 %v2265_v63, %v5832_v10  ;;  %v2268_v54 = vmul.f32 %v2266_v24, %v5832_v10 }
 0x2db   : > { %v2280_v56 = vmul.f32 %v2278_v57, %v5833_v45  ;;  %v2281_v23 = vmul.f32 %v2279_v41, %v5833_v45  ;;  %v2293_v13 = vmul.f32 %v2291_v18, %v5834_v48  ;;  %v2294_v30 = vmul.f32 %v2292_v16, %v5834_v48  ;;  %v5835_v57 = vld [vmem:[#allocation26_spill] sm:$0xff] }
 0x2dc   : > { %v5204_v37 = vpop.permute.xlu2 %2602  ;;  %v2303_v46 = vpop.permute.xlu0 %2302  ;;  %v2256_v1 = vadd.f32 %v2254_v40, %v2191_v12  ;;  %v2257_v9 = vadd.f32 %v2255_v52, %v2192_v14  ;;  %v2269_v29 = vadd.f32 %v2267_v36, %v2204_v32  ;;  %v2270_v44 = vadd.f32 %v2268_v54, %v2205_v19  ;;  %v5836_v19 = vld [vmem:[#allocation27_spill] sm:$0xff] }
 0x2dd   : > { %v5206_v49 = vpop.permute.xlu1 %2456  ;;  %v2306_v42 = vsel %vm1151_vm7, %v2303_v46, %v5166_v15  ;;  %v2307_v22 = vsel %vm1151_vm7, %v5166_v15, %v2303_v46  ;;  %v2282_v33 = vadd.f32 %v2280_v56, %v2217_v51  ;;  %v2283_v38 = vadd.f32 %v2281_v23, %v2218_v59 }
 0x2de   : > { %v2308_v34 = vmul.f32 %v3661_v3, %v2306_v42  ;;  %v2309_v2 = vmul.f32 %v3662_v61, %v2307_v22  ;;  %v2295_v7 = vadd.f32 %v2293_v13, %v2230_v8  ;;  %v2296_v20 = vadd.f32 %v2294_v30, %v2231_v43 }
 0x2e0   : > { %v2317_v55 = vperm.slane %v2308_v34, 0  ;;  %v2318_v15 = vperm.slane %v2309_v2, 0  ;;  %v2330_v12 = vperm.slane %v2308_v34, 1  ;;  %v2331_v14 = vperm.slane %v2309_v2, 1 }
 0x2e1   : > { %v2343_v35 = vperm.slane %v2308_v34, 2  ;;  %v2344_v39 = vperm.slane %v2309_v2, 2  ;;  %v2356_v63 = vperm.slane %v2308_v34, 3  ;;  %v2357_v24 = vperm.slane %v2309_v2, 3 }
 0x2e2   : > { %v2319_v41 = vmul.f32 %v2317_v55, %v5835_v57  ;;  %v2320_v18 = vmul.f32 %v2318_v15, %v5835_v57  ;;  %v2332_v16 = vmul.f32 %v2330_v12, %v5080_v62  ;;  %v2333_v32 = vmul.f32 %v2331_v14, %v5080_v62 }
 0x2e3   : > { %v2345_v60 = vmul.f32 %v2343_v35, %v5836_v19  ;;  %v2346_v40 = vmul.f32 %v2344_v39, %v5836_v19  ;;  %v2358_v52 = vmul.f32 %v2356_v63, %v5082_v25  ;;  %v2359_v10 = vmul.f32 %v2357_v24, %v5082_v25  ;;  %v3578_v35 = vld [vmem:[%s5695_s4 + $0x22c] sm:$0xf]  ;;  %v3579_v19 = vld [vmem:[%s5695_s4 + $0x230] sm:$0xf] }
 0x2e4   : > { %v2321_v36 = vadd.f32 %v2319_v41, %v2256_v1  ;;  %v2322_v54 = vadd.f32 %v2320_v18, %v2257_v9  ;;  %v2334_v45 = vadd.f32 %v2332_v16, %v2269_v29  ;;  %v2335_v56 = vadd.f32 %v2333_v32, %v2270_v44  ;;  %v2373_v23 = vpop.permute.xlu0 %2372  ;;  %v2616_v62 = vpop.permute.xlu2 %2615 }
 0x2e5   : > { %v5228_v48 = vpop.permute.xlu1 %2482  ;;  %v2347_v13 = vadd.f32 %v2345_v60, %v2282_v33  ;;  %v2348_v30 = vadd.f32 %v2346_v40, %v2283_v38  ;;  %v2360_v46 = vadd.f32 %v2358_v52, %v2295_v7  ;;  %v2361_v51 = vadd.f32 %v2359_v10, %v2296_v20  ;;  %v3577_v60 = vld [vmem:[%s5695_s4 + $0x228] sm:$0xf]  ;;  %v3580_v52 = vld [vmem:[%s5695_s4 + $0x234] sm:$0xf] }
 0x2e6   : > { %v2362_v59 = vadd.f32 %v2334_v45, %v2321_v36  ;;  %v2363_v8 = vadd.f32 %v2335_v56, %v2322_v54  ;;  %v3581_v36 = vld [vmem:[%s5695_s4 + $0x238] sm:$0xf]  ;;  %v3583_v54 = vld [vmem:[%s5696_s5 + $0xc] sm:$0xf] }
 0x2e7   : > { %v2364_v43 = vadd.f32 %v2360_v46, %v2347_v13  ;;  %v2365_v42 = vadd.f32 %v2361_v51, %v2348_v30  ;;  %v2926_v46 = vld [vmem:[%s5697_s6] sm:$0xf]  ;;  %v3585_v51 = vld [vmem:[%s5697_s6 + $0x8] sm:$0xf] }
 0x2e9   : > { %v2366_v22 = vadd.f32 %v2364_v43, %v2362_v59  ;;  %v2367_v3 = vadd.f32 %v2365_v42, %v2363_v8  ;;  %v3586_v59 = vld [vmem:[%s5697_s6 + $0xc] sm:$0xf]  ;;  %v3582_v8 = vld [vmem:[%s5695_s4 + $0x23c] sm:$0xf]  ;;  %v3584_v43 = vld [vmem:[%s5697_s6 + $0x4] sm:$0xf] }
 0x2eb   : > { %v2375_v34 = vadd.f32 %v2373_v23, %v2366_v22  ;;  %v2376_v25 = vadd.f32 %v2373_v23, %v2367_v3  ;;  %v2975_v22 = vld [vmem:[%s5698_s7] sm:$0xf] }
 0x2ec   : > { %v5230_v1 = vpop.permute.xlu0 %2391  ;;  %v2655_v33 = vpop.permute.xlu2 %2654 }
 0x2ed   : > { %v2377_v9 = vmax.f32 %v2375_v34, 0.0  ;;  %v2378_v61 = vmax.f32 %v2376_v25, 0.0  ;;  %v5232_v2 = vpop.permute.xlu1 %2529 }
 0x2ef   : > { %v2657_v29 = vperm.slane %v2377_v9, 3  ;;  %v2658_v44 = vperm.slane %v2378_v61, 3  ;;  %2493 = vrot.lane.b32.xlu0 %v2378_v61, %s5786_s21  ;;  %2381 = vrot.lane.b32.xlu2 %v2378_v61, %s5805_s24  ;;  %v2619_v38 = vperm.slane %v2378_v61, 0  ;;  %v2618_v7 = vperm.slane %v2377_v9, 0 }
 0x2f0   : > { %2379 = vrot.lane.b32.xlu1 %v2377_v9, %s5805_s24  ;;  %v2644_v63 = vperm.slane %v2377_v9, 2  ;;  %v2645_v24 = vperm.slane %v2378_v61, 2  ;;  %v2631_v45 = vperm.slane %v2377_v9, 1  ;;  %v2632_v56 = vperm.slane %v2378_v61, 1 }
 0x2f1   : > { %v5237_v20 = vmul.f32 %v2657_v29, %v2655_v33  ;;  %v5239_v55 = vmul.f32 %v2658_v44, %v2655_v33  ;;  %v5241_v15 = vmul.f32 %v2619_v38, %v2616_v62  ;;  %v5243_v12 = vmul.f32 %v2618_v7, %v2616_v62 }
 0x2f3   : > { %5837 = vst [vmem:[#allocation17_spill] sm:$0xff] %v5237_v20 }
 0x2f4   : > { %5838 = vst [vmem:[#allocation28_spill] sm:$0xff] %v5239_v55  ;;  %v5245_v14 = vpop.permute.xlu0 %2424  ;;  %v5302_v62 = vpop.permute.xlu2 %2675 }
 0x2f5   : > { %v5250_v39 = vpop.permute.xlu1 %2589 }
 0x2f7   : > { %2834 = vperm.xlu0 %3658, %v3578_v35   ;;  %2433 = vrot.lane.b32.xlu2 %v2378_v61, %s5806_s26  ;;  %v465_v35 = vld [vmem:[#allocation2 + $0x3c0] sm:$0xff] }
 0x2f8   : > { %2431 = vrot.lane.b32.xlu1 %v2377_v9, %s5806_s26  ;;  %2983 = vmatpush.msra.mxu0 %v465_v35  ;;  %v442_v35 = vld [vmem:[#allocation2 + $0x308] sm:$0xff]  ;;  %s3339_s26 = scalar_lea.hbm %s5699_s8, %s3594_s3 }
 0x2f9   : > { %s3343_s10 = sshll.u32 %s3339_s26, 4  ;;  %s3344_s10 = int_to_ptr.hbm [resolvable:$true] %s3343_s10 }
 0x2fc   : > { %v5254_v57 = vpop.permute.xlu0 %2443  ;;  %v5313_v42 = vpop.permute.xlu2 %2714 }
 0x2fd   : > { %v2642_v41 = vpop.permute.xlu1 %2641  ;;  %5841 = vst [vmem:[#allocation13_spill] sm:$0xff] %v5313_v42  ;;  %v522_v42 = vld [vmem:[#allocation2 + $0x588] sm:$0xff] }
 0x2fe   : > { %v5256_v18 = vmul.f32 %v2644_v63, %v2642_v41  ;;  %v5258_v16 = vmul.f32 %v2645_v24, %v2642_v41  ;;  %v593_v63 = vld [vmem:[#allocation2 + $0x7c0] sm:$0xff]  ;;  %v466_v24 = vld [vmem:[#allocation2 + $0x3c8] sm:$0xff] }
 0x2ff   : > { %2663 = vrot.lane.b32.xlu0 %v2377_v9, %s5788_s13  ;;  %2491 = vrot.lane.b32.xlu2 %v2377_v9, %s5786_s21  ;;  %v594_v41 = vld [vmem:[#allocation2 + $0x7c8] sm:$0xff]  ;;  %s3709_s21 = sshra.s32 %s3344_s10, 4  ;;  %s3710_s21 = int_to_ptr.hbm [resolvable:$true] %s3709_s21 }
 0x300   : > { %5839 = vst [vmem:[#allocation20_spill] sm:$0xff] %v5256_v18  ;;  %2551 = vrot.lane.b32.xlu1 %v2377_v9, %s5787_s12  ;;  %3003 = vmatpush.msra.mxu1 %v593_v63  ;;  %v570_v63 = vld [vmem:[#allocation2 + $0x708] sm:$0xff]  ;;  %p3716_p3 = scmp.lt.s32.totalorder %s3710_s21, %s5699_s8 }
 0x301   : > { %5840 = vst [vmem:[#allocation12_spill] sm:$0xff] %v5258_v16  ;;  %3023 = vmatpush.msra.mxu2 %v466_v24  ;;  %3043 = vmatpush.msra.mxu3 %v594_v41  ;;  %v5849_v41 = vld [vmem:[#allocation8_spill] sm:$0xff] }
 0x304   : > { %v5263_v32 = vpop.permute.xlu0 %2469  ;;  %v5318_v3 = vpop.permute.xlu2 %2735 }
 0x305   : > { %5842 = vst [vmem:[#allocation16_spill] sm:$0xff] %v5318_v3  ;;  %v5322_v25 = vpop.permute.xlu1 %2701 }
 0x306   : > { %5843 = vst [vmem:[#allocation21_spill] sm:$0xff] %v5322_v25  ;;  %v513_v25 = vld [vmem:[#allocation2 + $0x540] sm:$0xff] }
 0x307   : > { %2723 = vrot.lane.b32.xlu0 %v2377_v9, %s5785_s22  ;;  %2553 = vrot.lane.b32.xlu2 %v2378_v61, %s5787_s12 }
 0x308   : > { %2855 = vperm.xlu1 %3656, %v3579_v19   ;;  %v457_v19 = vld [vmem:[#allocation2 + $0x380] sm:$0xff] }
 0x309   : > { %2984 = vmatpush.msra.mxu0 %v457_v19 }
 0x30c   : > { %v5273_v40 = vpop.permute.xlu0 %2516 }
 0x30d   : > { %v5328_v29 = vpop.permute.xlu1 %2761 }
 0x30e   : > { %5846 = vst [vmem:[#allocation25_spill] sm:$0xff] %v5328_v29 }
 0x30f   : > { %2783 = vrot.lane.b32.xlu0 %v2377_v9, %s5790_s20  ;;  %2821 = vperm.xlu2 %3657, %v3577_v60   ;;  %v585_v60 = vld [vmem:[#allocation2 + $0x780] sm:$0xff] }
 0x310   : > { %2665 = vrot.lane.b32.xlu1 %v2378_v61, %s5788_s13  ;;  %3004 = vmatpush.msra.mxu1 %v585_v60  ;;  %v5850_v60 = vld [vmem:[#allocation9_spill] sm:$0xff] }
 0x314   : > { %v5280_v10 = vpop.permute.xlu0 %2576 }
 0x315   : > { %v5332_v38 = vpop.permute.xlu1 %2808 }
 0x316   : > { %5848 = vst [vmem:[#allocation24_spill] sm:$0xff] %v5332_v38 }
 0x317   : > { %2843 = vrot.lane.b32.xlu0 %v2377_v9, %s5789_s23  ;;  %2868 = vperm.xlu2 %3657, %v3580_v52   ;;  %v5324_v9 = vpop.permute.xlu2 %2774 }
 0x318   : > { %2725 = vrot.lane.b32.xlu1 %v2378_v61, %s5785_s22  ;;  %5844 = vst [vmem:[#allocation15_spill] sm:$0xff] %v5324_v9  ;;  %v409_v9 = vld [vmem:[#allocation2 + $0x200] sm:$0xff]  ;;  %s328_s22 = sand.u32 1, %s3753_s28  }
 0x319   : > { %s3433_s13 = sshll.u32 %s328_s22, 5  ;;  %s3328_s9 = scalar_lea.sflag [#allocation4], %s328_s22 }
 0x31a   : > { %s5648_s18 = scalar_lea.vmem [#allocation5], %s3433_s13 }
 0x31c   : > { %v2629_v23 = vpop.permute.xlu0 %2628 }
 0x31d   : > { %v5290_v13 = vmul.f32 %v2631_v45, %v2629_v23  ;;  %v5292_v30 = vmul.f32 %v2632_v56, %v2629_v23  ;;  %v449_v45 = vld [vmem:[#allocation2 + $0x340] sm:$0xff] }
 0x31e   : > { %v577_v23 = vld [vmem:[#allocation2 + $0x740] sm:$0xff]  ;;  %2985 = vmatpush.msra.mxu0 %v449_v45 }
 0x31f   : > { %2881 = vperm.xlu0 %3658, %v3581_v36   ;;  %2913 = vperm.xlu2 %3657, %v3583_v54   ;;  %v458_v36 = vld [vmem:[#allocation2 + $0x388] sm:$0xff] }
 0x320   : > { %2785 = vrot.lane.b32.xlu1 %v2378_v61, %s5790_s20  ;;  %v586_v54 = vld [vmem:[#allocation2 + $0x788] sm:$0xff]  ;;  %3024 = vmatpush.msra.mxu2 %v458_v36  ;;  %s3341_s20 = sshll.u32 %s5648_s18, 4  ;;  %s3342_s20 = int_to_ptr.vmem [resolvable:$true] %s3341_s20 }
 0x321   : > { %3044 = vmatpush.msra.mxu3 %v586_v54  ;;  %3005 = vmatpush.msra.mxu1 %v577_v23  ;;  %v561_v54 = vld [vmem:[#allocation2 + $0x6c0] sm:$0xff]  ;;  %v562_v23 = vld [vmem:[#allocation2 + $0x6c8] sm:$0xff] }
 0x324   : > { %v5320_v34 = vpop.permute.xlu0 %2688 }
 0x327   : > { %2929 = vperm.xlu0 %3658, %v2926_v46   ;;  %2951 = vperm.xlu2 %3657, %v3585_v51   ;;  %v450_v46 = vld [vmem:[#allocation2 + $0x348] sm:$0xff] }
 0x328   : > { %2845 = vrot.lane.b32.xlu1 %v2378_v61, %s5789_s23  ;;  %v578_v51 = vld [vmem:[#allocation2 + $0x748] sm:$0xff]  ;;  %3025 = vmatpush.msra.mxu2 %v450_v46  ;;  %v425_v46 = vld [vmem:[#allocation2 + $0x280] sm:$0xff]  ;;  %s3711_s23 = scalar_lea.hbm %s3710_s21, 32 }
 0x329   : > { %3045 = vmatpush.msra.mxu3 %v578_v51  ;;  %v553_v51 = vld [vmem:[#allocation2 + $0x680] sm:$0xff]  ;;  %p3712_p0 = scmp.ne.s32.totalorder %s3710_s21, %s3711_s23  ;;  %p3717_p4 = scmp.lt.s32.totalorder %s3715_s25, %s3711_s23 }
 0x32a   : > { %3026 = vmatpush.msra.mxu2 %v442_v35 }
 0x32b   : > { %3046 = vmatpush.msra.mxu3 %v570_v63  ;;  %v554_v63 = vld [vmem:[#allocation2 + $0x688] sm:$0xff]  ;;  %p3713_p1 = pnand %p3712_p0, %p3858_p5  ;;  %p3718_p7 = por %p3717_p4, %p3716_p3 }
 0x32c   : > { %v5326_v61 = vpop.permute.xlu0 %2748 }
 0x32d   : > { %5845 = vst [vmem:[#allocation22_spill] sm:$0xff] %v5326_v61  ;;  %3047 = vmatpush.msra.mxu3 %v562_v23  ;;  %v5854_v61 = vld [vmem:[#allocation11_spill] sm:$0xff]  ;;  %p3714_p2 = pneg %p3713_p1 }
 0x32f   : > { %2962 = vperm.xlu0 %3658, %v3586_v59   ;;  %v441_v59 = vld [vmem:[#allocation2 + $0x300] sm:$0xff]  ;;  %3048 = vmatpush.msra.mxu3 %v554_v63  ;;  %p3719_p8 = pnand %p3718_p7, %p3714_p2 }
 0x330   : > { %2894 = vperm.xlu1 %3656, %v3582_v8   ;;  %2986 = vmatpush.msra.mxu0 %v441_v59 }
 0x334   : > { %v5330_v33 = vpop.permute.xlu0 %2795 }
 0x335   : > { %5847 = vst [vmem:[#allocation23_spill] sm:$0xff] %v5330_v33  ;;  %v546_v33 = vld [vmem:[#allocation2 + $0x648] sm:$0xff] }
 0x336   : > { %3049 = vmatpush.msra.mxu3 %v546_v33 }
 0x338   : > { %2940 = vperm.xlu1 %3656, %v3584_v43  }
 0x340   : > { %2978 = vperm.xlu1 %3656, %v2975_v22   ;;  %v569_v22 = vld [vmem:[#allocation2 + $0x700] sm:$0xff] }
 0x341   : > { %3006 = vmatpush.msra.mxu1 %v569_v22  ;;  %v426_v22 = vld [vmem:[#allocation2 + $0x288] sm:$0xff] }
 0x343   : > { %3007 = vmatpush.msra.mxu1 %v561_v54 }
 0x345   : > { %3008 = vmatpush.msra.mxu1 %v553_v51  ;;  %v410_v51 = vld [vmem:[#allocation2 + $0x208] sm:$0xff] }
 0x349   : > { %v2382_v44 = vpop.permute.xlu2 %2381 }
 0x351   : > { %v5334_v7 = vpop.permute.xlu2 %2433 }
 0x359   : > { %v2492_v24 = vpop.permute.xlu2 %2491 }
 0x361   : > { %v2494_v52 = vpop.permute.xlu0 %2493  ;;  %v2554_v18 = vpop.permute.xlu2 %2553 }
 0x362   : > { %v2380_v56 = vpop.permute.xlu1 %2379  ;;  %v2496_v38 = vsel %vm743_vm2, %v2494_v52, %v2492_v24  ;;  %v2495_v45 = vsel %vm743_vm2, %v2492_v24, %v2494_v52  ;;  %v417_v24 = vld [vmem:[#allocation2 + $0x240] sm:$0xff] }
 0x363   : > { %v2383_v8 = vsel %vm616_vm0, %v2380_v56, %v2382_v44  ;;  %v2384_v43 = vsel %vm616_vm0, %v2382_v44, %v2380_v56  ;;  %v433_v44 = vld [vmem:[#allocation2 + $0x2c0] sm:$0xff]  ;;  %v434_v56 = vld [vmem:[#allocation2 + $0x2c8] sm:$0xff]  ;;  %v5351_v59 = vmul.f32 %v2496_v38, %v5795_v0 }
 0x364   : > { %v5341_v19 = vmul.f32 %v2384_v43, %v5849_v41  ;;  %v5344_v36 = vmul.f32 %v2383_v8, %v5850_v60  ;;  %2987 = vmatpush.msra.mxu0 %v433_v44  ;;  %v5852_v60 = vld [vmem:[#allocation14_spill] sm:$0xff]  ;;  %3027 = vmatpush.msra.mxu2 %v434_v56 }
 0x365   : > { %v5358_v52 = vmul.f32 %v2495_v45, %v5852_v60  ;;  %v545_v45 = vld [vmem:[#allocation2 + $0x640] sm:$0xff]  ;;  %v418_v60 = vld [vmem:[#allocation2 + $0x248] sm:$0xff]  ;;  %v2506_v17 = vperm.slane %v5351_v59, 0  ;;  %v2519_v55 = vperm.slane %v5351_v59, 1 }
 0x366   : > { %v2394_v35 = vperm.slane %v5341_v19, 0  ;;  %v2395_v41 = vperm.slane %v5344_v36, 0  ;;  %v2405_v44 = vperm.slane %v5341_v19, 1  ;;  %v2406_v0 = vperm.slane %v5344_v36, 1  ;;  %2988 = vmatpush.msra.mxu0 %v425_v46  ;;  %3028 = vmatpush.msra.mxu2 %v426_v22  ;;  %v537_v46 = vld [vmem:[#allocation2 + $0x600] sm:$0xff] }
 0x367   : > { %v2416_v56 = vperm.slane %v5341_v19, 2  ;;  %v2417_v23 = vperm.slane %v5344_v36, 2  ;;  %v2507_v22 = vperm.slane %v5358_v52, 0  ;;  %3009 = vmatpush.msra.mxu1 %v545_v45  ;;  %v5420_v20 = vmul.f32 %v2519_v55, %v5273_v40  ;;  %v521_v55 = vld [vmem:[#allocation2 + $0x580] sm:$0xff] }
 0x368   : > { %2989 = vmatpush.msra.mxu0 %v417_v24  ;;  %3029 = vmatpush.msra.mxu2 %v418_v60  ;;  %v5391_v63 = vmul.f32 %v2406_v0, %v5188_v26  ;;  %v2533_v3 = vperm.slane %v5358_v52, 2 }
 0x369   : > { %v5353_v43 = vpop.permute.xlu0 %2834  ;;  %v5395_v24 = vmul.f32 %v2416_v56, %v5105_v21  ;;  %3010 = vmatpush.msra.mxu1 %v537_v46  ;;  %v530_v46 = vld [vmem:[#allocation2 + $0x5c8] sm:$0xff] }
 0x36a   : > { %v2432_v8 = vpop.permute.xlu1 %2431  ;;  %5851 = vst [vmem:[#allocation26_spill] sm:$0xff] %v5353_v43  ;;  %v2427_v43 = vperm.slane %v5341_v19, 3  ;;  %v2428_v19 = vperm.slane %v5344_v36, 3  ;;  %2990 = vmatpush.msra.mxu0 %v409_v9  ;;  %v401_v36 = vld [vmem:[#allocation2 + $0x1c0] sm:$0xff]  ;;  %3030 = vmatpush.msra.mxu2 %v410_v51  ;;  %v5417_v51 = vmul.f32 %v2507_v22, %v5134_v6  ;;  %v394_v22 = vld [vmem:[#allocation2 + $0x188] sm:$0xff] }
 0x36b   : > { %v2435_v38 = vsel %vm675_vm1, %v2432_v8, %v5334_v7  ;;  %v2436_v54 = vsel %vm675_vm1, %v5334_v7, %v2432_v8  ;;  %v5379_v8 = vmul.f32 %v2394_v35, %v5230_v1  ;;  %v2520_v35 = vperm.slane %v5358_v52, 1 }
 0x36c   : > { %v5373_v29 = vmul.f32 %v2436_v54, %v5853_v11  ;;  %v5376_v7 = vmul.f32 %v2435_v38, %v5854_v61  ;;  %v538_v11 = vld [vmem:[#allocation2 + $0x608] sm:$0xff]  ;;  %v5385_v54 = vmul.f32 %v2395_v41, %v5230_v1  ;;  %v5388_v61 = vmul.f32 %v2405_v44, %v5188_v26  ;;  %v529_v26 = vld [vmem:[#allocation2 + $0x5c0] sm:$0xff]  ;;  %2991 = vmatpush.msra.mxu0 %v401_v36 }
 0x36d   : > { %v5398_v38 = vmul.f32 %v2417_v23, %v5105_v21  ;;  %v5401_v1 = vmul.f32 %v2427_v43, %v5245_v14  ;;  %v2532_v44 = vperm.slane %v5351_v59, 2  ;;  %3050 = vmatpush.msra.mxu3 %v538_v11  ;;  %v402_v21 = vld [vmem:[#allocation2 + $0x1c8] sm:$0xff]  ;;  %v5409_v60 = vmul.f32 %v2428_v19, %v5245_v14  ;;  %3011 = vmatpush.msra.mxu1 %v529_v26 }
 0x36e   : > { %v2446_v41 = vperm.slane %v5373_v29, 0  ;;  %v2447_v33 = vperm.slane %v5376_v7, 0  ;;  %v2459_v9 = vperm.slane %v5373_v29, 1  ;;  %v2460_v0 = vperm.slane %v5376_v7, 1  ;;  %3031 = vmatpush.msra.mxu2 %v402_v21 }
 0x36f   : > { %v5412_v43 = vmul.f32 %v2506_v17, %v5134_v6  ;;  %v2472_v56 = vperm.slane %v5373_v29, 2  ;;  %v2473_v23 = vperm.slane %v5376_v7, 2  ;;  %v5423_v11 = vmul.f32 %v2520_v35, %v5273_v40  ;;  %v393_v17 = vld [vmem:[#allocation2 + $0x180] sm:$0xff]  ;;  %3051 = vmatpush.msra.mxu3 %v530_v46  ;;  %3012 = vmatpush.msra.mxu1 %v521_v55 }
 0x370   : > { %v2485_v14 = vperm.slane %v5373_v29, 3  ;;  %v2545_v36 = vperm.slane %v5351_v59, 3  ;;  %v2448_v16 = vmul.f32 %v2446_v41, %v5254_v57  ;;  %v2486_v6 = vperm.slane %v5376_v7, 3  ;;  %v385_v59 = vld [vmem:[#allocation2 + $0x140] sm:$0xff]  ;;  %2992 = vmatpush.msra.mxu0 %v393_v17  ;;  %3032 = vmatpush.msra.mxu2 %v394_v22 }
 0x371   : > { %v5426_v19 = vpop.permute.xlu0 %2663  ;;  %v5433_v40 = vmul.f32 %v2532_v44, %v5232_v2  ;;  %v2449_v29 = vmul.f32 %v2447_v33, %v5254_v57  ;;  %v2461_v35 = vmul.f32 %v2459_v9, %v5206_v49  ;;  %v2462_v26 = vmul.f32 %v2460_v0, %v5206_v49  ;;  %v386_v57 = vld [vmem:[#allocation2 + $0x148] sm:$0xff]  ;;  %3052 = vmatpush.msra.mxu3 %v522_v42  ;;  %v369_v22 = vld [vmem:[#allocation2 + $0xc0] sm:$0xff] }
 0x372   : > { %v2552_v45 = vpop.permute.xlu1 %2551  ;;  %v2474_v41 = vmul.f32 %v2472_v56, %v5263_v32  ;;  %v2475_v7 = vmul.f32 %v2473_v23, %v5263_v32  ;;  %v2546_v33 = vperm.slane %v5358_v52, 3  ;;  %v2487_v49 = vmul.f32 %v2485_v14, %v5228_v48  ;;  %v514_v32 = vld [vmem:[#allocation2 + $0x548] sm:$0xff]  ;;  %v377_v56 = vld [vmem:[#allocation2 + $0x100] sm:$0xff]  ;;  %2993 = vmatpush.msra.mxu0 %v385_v59  ;;  %3013 = vmatpush.msra.mxu1 %v513_v25 }
 0x373   : > { %v2555_v21 = vsel %vm811_vm3, %v2552_v45, %v2554_v18  ;;  %v2556_v44 = vsel %vm811_vm3, %v2554_v18, %v2552_v45  ;;  %v2535_v23 = vmul.f32 %v2533_v3, %v5232_v2  ;;  %v2450_v18 = vadd.f32 %v2448_v16, %v5379_v8  ;;  %v505_v52 = vld [vmem:[#allocation2 + $0x500] sm:$0xff]  ;;  %3033 = vmatpush.msra.mxu2 %v386_v57  ;;  %v378_v2 = vld [vmem:[#allocation2 + $0x108] sm:$0xff] }
 0x374   : > { %v5447_v9 = vmul.f32 %v2556_v44, %v5797_v5  ;;  %v5450_v0 = vmul.f32 %v2555_v21, %v5798_v58  ;;  %v2488_v45 = vmul.f32 %v2486_v6, %v5228_v48  ;;  %v2451_v46 = vadd.f32 %v2449_v29, %v5385_v54  ;;  %3053 = vmatpush.msra.mxu3 %v514_v32  ;;  %v506_v8 = vld [vmem:[#allocation2 + $0x508] sm:$0xff]  ;;  %v353_v32 = vld [vmem:[#allocation2 + $0x40] sm:$0xff] }
 0x375   : > { %v2547_v16 = vmul.f32 %v2545_v36, %v5154_v47  ;;  %v2463_v48 = vadd.f32 %v2461_v35, %v5388_v61  ;;  %v2464_v42 = vadd.f32 %v2462_v26, %v5391_v63  ;;  %2994 = vmatpush.msra.mxu0 %v377_v56  ;;  %v2548_v54 = vmul.f32 %v2546_v33, %v5154_v47  ;;  %v497_v36 = vld [vmem:[#allocation2 + $0x4c0] sm:$0xff]  ;;  %v370_v26 = vld [vmem:[#allocation2 + $0xc8] sm:$0xff] }
 0x376   : > { %v2566_v5 = vperm.slane %v5447_v9, 0  ;;  %v2567_v58 = vperm.slane %v5450_v0, 0  ;;  %v2579_v14 = vperm.slane %v5447_v9, 1  ;;  %v2580_v3 = vperm.slane %v5450_v0, 1  ;;  %3014 = vmatpush.msra.mxu1 %v505_v52  ;;  %3034 = vmatpush.msra.mxu2 %v378_v2  ;;  %v362_v44 = vld [vmem:[#allocation2 + $0x88] sm:$0xff] }
 0x377   : > { %v2476_v6 = vadd.f32 %v2474_v41, %v5395_v24  ;;  %v2477_v55 = vadd.f32 %v2475_v7, %v5398_v38  ;;  %v2489_v25 = vadd.f32 %v2487_v49, %v5401_v1  ;;  %v2490_v61 = vadd.f32 %v2488_v45, %v5409_v60  ;;  %3054 = vmatpush.msra.mxu3 %v506_v8  ;;  %v498_v60 = vld [vmem:[#allocation2 + $0x4c8] sm:$0xff]  ;;  %v361_v41 = vld [vmem:[#allocation2 + $0x80] sm:$0xff] }
 0x378   : > { %v2510_v63 = vadd.f32 %v5412_v43, %v2450_v18  ;;  %v2568_v29 = vmul.f32 %v2566_v5, %v5180_v50  ;;  %v2592_v35 = vperm.slane %v5447_v9, 2  ;;  %v2511_v47 = vadd.f32 %v5417_v51, %v2451_v46  ;;  %2995 = vmatpush.msra.mxu0 %v369_v22  ;;  %3015 = vmatpush.msra.mxu1 %v497_v36  ;;  %v489_v51 = vld [vmem:[#allocation2 + $0x480] sm:$0xff]  ;;  %v490_v49 = vld [vmem:[#allocation2 + $0x488] sm:$0xff] }
 0x379   : > { %v2569_v24 = vmul.f32 %v2567_v58, %v5180_v50  ;;  %v2581_v38 = vmul.f32 %v2579_v14, %v5280_v10  ;;  %v2593_v1 = vperm.slane %v5450_v0, 2  ;;  %v5477_v59 = vpop.permute.xlu0 %2723  ;;  %v2523_v43 = vadd.f32 %v5420_v20, %v2463_v48  ;;  %3035 = vmatpush.msra.mxu2 %v370_v26  ;;  %3055 = vmatpush.msra.mxu3 %v498_v60  ;;  %v481_v18 = vld [vmem:[#allocation2 + $0x440] sm:$0xff]  ;;  %v354_v45 = vld [vmem:[#allocation2 + $0x48] sm:$0xff]  ;;  %v587_v60 = vld [vmem:[#allocation2 + $0x790] sm:$0xff] }
 0x37a   : > { %v5459_v17 = vpop.permute.xlu1 %2855  ;;  %v2524_v7 = vadd.f32 %v5423_v11, %v2464_v42  ;;  %v2582_v21 = vmul.f32 %v2580_v3, %v5280_v10  ;;  %v2536_v50 = vadd.f32 %v5433_v40, %v2476_v6  ;;  %v5483_v57 = vadd.f32 %v2535_v23, %v2477_v55  ;;  %2996 = vmatpush.msra.mxu0 %v361_v41  ;;  %v482_v5 = vld [vmem:[#allocation2 + $0x448] sm:$0xff]  ;;  %v345_v58 = vld [vmem:[#allocation2] sm:$0xff] }
 0x37b   : > { %v2605_v33 = vperm.slane %v5447_v9, 3  ;;  %v5486_v56 = vadd.f32 %v2547_v16, %v2489_v25  ;;  %v2570_v20 = vadd.f32 %v2568_v29, %v2510_v63  ;;  %v2594_v11 = vmul.f32 %v2592_v35, %v5250_v39  ;;  %3016 = vmatpush.msra.mxu1 %v489_v51  ;;  %3036 = vmatpush.msra.mxu2 %v362_v44  ;;  %v473_v16 = vld [vmem:[#allocation2 + $0x400] sm:$0xff]  ;;  %v346_v48 = vld [vmem:[#allocation2 + $0x8] sm:$0xff]  ;;  %v595_v25 = vld [vmem:[#allocation2 + $0x7d0] sm:$0xff] }
 0x37c   : > { %v2606_v10 = vperm.slane %v5450_v0, 3  ;;  %v5490_v52 = vadd.f32 %v2548_v54, %v2490_v61  ;;  %v2571_v40 = vadd.f32 %v2569_v24, %v2511_v47  ;;  %v2583_v23 = vadd.f32 %v2581_v38, %v2523_v43  ;;  %3056 = vmatpush.msra.mxu3 %v490_v49  ;;  %2997 = vmatpush.msra.mxu0 %v353_v32  ;;  %v474_v8 = vld [vmem:[#allocation2 + $0x408] sm:$0xff]  ;;  %v467_v54 = vld [vmem:[#allocation2 + $0x3d0] sm:$0xff]  ;;  %v468_v61 = vld [vmem:[#allocation2 + $0x3d8] sm:$0xff] }
 0x37d   : > { %v2595_v9 = vmul.f32 %v2593_v1, %v5250_v39  ;;  %v2584_v14 = vadd.f32 %v2582_v21, %v2524_v7  ;;  %v2607_v39 = vmul.f32 %v2605_v33, %v5204_v37  ;;  %3017 = vmatpush.msra.mxu1 %v481_v18  ;;  %3037 = vmatpush.msra.mxu2 %v354_v45  ;;  %v596_v63 = vld [vmem:[#allocation2 + $0x7d8] sm:$0xff]  ;;  %v459_v35 = vld [vmem:[#allocation2 + $0x390] sm:$0xff] }
 0x37e   : > { %v5506_v6 = vadd.f32 %v2594_v11, %v2536_v50  ;;  %v2622_v55 = vadd.f32 %v5243_v12, %v2570_v20  ;;  %3057 = vmatpush.msra.mxu3 %v482_v5  ;;  %2998 = vmatpush.msra.mxu0 %v345_v58  ;;  %v2623_v29 = vadd.f32 %v5241_v15, %v2571_v40  ;;  %v460_v15 = vld [vmem:[#allocation2 + $0x398] sm:$0xff]  ;;  %v451_v7 = vld [vmem:[#allocation2 + $0x350] sm:$0xff] }
 0x37f   : > { %3018 = vmatpush.msra.mxu1 %v473_v16  ;;  %3038 = vmatpush.msra.mxu2 %v346_v48  ;;  %v2636_v12 = vadd.f32 %v5292_v30, %v2584_v14  ;;  %v452_v33 = vld [vmem:[#allocation2 + $0x358] sm:$0xff]  ;;  %v443_v11 = vld [vmem:[#allocation2 + $0x310] sm:$0xff]  ;;  %v5856_v14 = vld [vmem:[#allocation13_spill] sm:$0xff] }
 0x380   : > { %3058 = vmatpush.msra.mxu3 %v474_v8  ;;  %3063 = vmatpush.msrb.mxu0 %v467_v54  ;;  %v580_v20 = vld [vmem:[#allocation2 + $0x758] sm:$0xff]  ;;  %v563_v48 = vld [vmem:[#allocation2 + $0x6d0] sm:$0xff]  ;;  %v5857_v8 = vld [vmem:[#allocation20_spill] sm:$0xff] }
 0x381   : > { %v5521_v1 = vpop.permute.xlu0 %2783  ;;  %3083 = vmatpush.msrb.mxu1 %v595_v25  ;;  %3103 = vmatpush.msrb.mxu2 %v468_v61  ;;  %v2648_v54 = vadd.f32 %v5857_v8, %v5506_v6  ;;  %v5859_v25 = vld [vmem:[#allocation16_spill] sm:$0xff] }
 0x382   : > { %v2666_v46 = vpop.permute.xlu1 %2665  ;;  %3123 = vmatpush.msrb.mxu3 %v596_v63  ;;  %3064 = vmatpush.msrb.mxu0 %v459_v35  ;;  %v5861_v61 = vld [vmem:[#allocation28_spill] sm:$0xff]  ;;  %v5862_v35 = vld [vmem:[#allocation22_spill] sm:$0xff] }
 0x383   : > { %v2667_v0 = vsel %vm947_vm4, %v5426_v19, %v2666_v46  ;;  %v2668_v2 = vsel %vm947_vm4, %v2666_v46, %v5426_v19  ;;  %v2608_v19 = vmul.f32 %v2606_v10, %v5204_v37  ;;  %v2635_v37 = vadd.f32 %v5290_v13, %v2583_v23  ;;  %3084 = vmatpush.msrb.mxu1 %v587_v60  ;;  %v571_v23 = vld [vmem:[#allocation2 + $0x710] sm:$0xff]  ;;  %v5855_v46 = vld [vmem:[#allocation21_spill] sm:$0xff] }
 0x384   : > { %v5501_v42 = vmul.f32 %v2667_v0, %v4297_v27  ;;  %v5504_v3 = vmul.f32 %v2668_v2, %v5821_v28  ;;  %v2597_v13 = vadd.f32 %v2595_v9, %v5483_v57  ;;  %v579_v57 = vld [vmem:[#allocation2 + $0x750] sm:$0xff]  ;;  %3104 = vmatpush.msrb.mxu2 %v460_v15  ;;  %v2609_v10 = vadd.f32 %v2607_v39, %v5486_v56  ;;  %v444_v9 = vld [vmem:[#allocation2 + $0x318] sm:$0xff] }
 0x385   : > { %3065 = vmatpush.msrb.mxu0 %v451_v7  ;;  %3085 = vmatpush.msrb.mxu1 %v579_v57  ;;  %v572_v56 = vld [vmem:[#allocation2 + $0x718] sm:$0xff]  ;;  %v5863_v7 = vld [vmem:[#allocation25_spill] sm:$0xff] }
 0x386   : > { %v2678_v22 = vperm.slane %v5501_v42, 0  ;;  %v2679_v27 = vperm.slane %v5504_v3, 0  ;;  %v2691_v28 = vperm.slane %v5501_v42, 1  ;;  %v2692_v36 = vperm.slane %v5504_v3, 1  ;;  %3105 = vmatpush.msrb.mxu2 %v452_v33 }
 0x387   : > { %v2704_v30 = vperm.slane %v5501_v42, 2  ;;  %v2705_v41 = vperm.slane %v5504_v3, 2  ;;  %v2717_v43 = vperm.slane %v5501_v42, 3  ;;  %v2718_v18 = vperm.slane %v5504_v3, 3  ;;  %3066 = vmatpush.msrb.mxu0 %v443_v11  ;;  %3086 = vmatpush.msrb.mxu1 %v571_v23  ;;  %v436_v3 = vld [vmem:[#allocation2 + $0x2d8] sm:$0xff] }
 0x388   : > { %v2680_v26 = vmul.f32 %v2678_v22, %v5302_v62  ;;  %v2681_v47 = vmul.f32 %v2679_v27, %v5302_v62  ;;  %v2693_v24 = vmul.f32 %v2691_v28, %v5320_v34  ;;  %v2694_v38 = vmul.f32 %v2692_v36, %v5320_v34  ;;  %v588_v62 = vld [vmem:[#allocation2 + $0x798] sm:$0xff]  ;;  %3106 = vmatpush.msrb.mxu2 %v444_v9  ;;  %v5860_v28 = vld [vmem:[#allocation17_spill] sm:$0xff]  ;;  %v547_v9 = vld [vmem:[#allocation2 + $0x650] sm:$0xff] }
 0x389   : > { %3124 = vmatpush.msrb.mxu3 %v588_v62  ;;  %v2706_v5 = vmul.f32 %v2704_v30, %v5855_v46  ;;  %v2707_v58 = vmul.f32 %v2705_v41, %v5855_v46  ;;  %v2719_v0 = vmul.f32 %v2717_v43, %v5856_v14  ;;  %v564_v27 = vld [vmem:[#allocation2 + $0x6d8] sm:$0xff]  ;;  %v2661_v36 = vadd.f32 %v5860_v28, %v2609_v10  ;;  %v5571_v15 = vpop.permute.xlu0 %2843  ;;  %v555_v43 = vld [vmem:[#allocation2 + $0x690] sm:$0xff] }
 0x38a   : > { %v5527_v21 = vadd.f32 %v2680_v26, %v2622_v55  ;;  %v5529_v34 = vadd.f32 %v2681_v47, %v2623_v29  ;;  %v5531_v51 = vadd.f32 %v2693_v24, %v2635_v37  ;;  %v5533_v44 = vadd.f32 %v2694_v38, %v2636_v12  ;;  %v2726_v50 = vpop.permute.xlu1 %2725  ;;  %v2822_v37 = vpop.permute.xlu2 %2821  ;;  %3087 = vmatpush.msrb.mxu1 %v563_v48  ;;  %v427_v24 = vld [vmem:[#allocation2 + $0x290] sm:$0xff]  ;;  %v428_v62 = vld [vmem:[#allocation2 + $0x298] sm:$0xff] }
 0x38b   : > { %v2727_v49 = vsel %vm1015_vm5, %v5477_v59, %v2726_v50  ;;  %v2728_v32 = vsel %vm1015_vm5, %v2726_v50, %v5477_v59  ;;  %v2610_v59 = vadd.f32 %v2608_v19, %v5490_v52  ;;  %3125 = vmatpush.msrb.mxu3 %v580_v20  ;;  %v435_v52 = vld [vmem:[#allocation2 + $0x2d0] sm:$0xff]  ;;  %v5858_v19 = vld [vmem:[#allocation12_spill] sm:$0xff]  ;;  %v2720_v29 = vmul.f32 %v2718_v18, %v5856_v14  ;;  %v412_v48 = vld [vmem:[#allocation2 + $0x218] sm:$0xff] }
 0x38c   : > { %v5544_v45 = vmul.f32 %v2727_v49, %v4332_v4  ;;  %v5547_v40 = vmul.f32 %v2728_v32, %v4335_v53  ;;  %v2649_v55 = vadd.f32 %v5858_v19, %v2597_v13  ;;  %3067 = vmatpush.msrb.mxu0 %v435_v52  ;;  %v2708_v6 = vadd.f32 %v2706_v5, %v2648_v54  ;;  %v556_v32 = vld [vmem:[#allocation2 + $0x698] sm:$0xff]  ;;  %v419_v20 = vld [vmem:[#allocation2 + $0x250] sm:$0xff] }
 0x38d   : > { %3126 = vmatpush.msrb.mxu3 %v572_v56  ;;  %v2662_v63 = vadd.f32 %v5861_v61, %v2610_v59  ;;  %3107 = vmatpush.msrb.mxu2 %v436_v3  ;;  %v2721_v41 = vadd.f32 %v2719_v0, %v2661_v36  ;;  %v5864_v10 = vld [vmem:[#allocation18_spill] sm:$0xff]  ;;  %v420_v59 = vld [vmem:[#allocation2 + $0x258] sm:$0xff]  ;;  %v5868_v3 = vld [vmem:[#allocation24_spill] sm:$0xff] }
 0x38e   : > { %v2738_v4 = vperm.slane %v5544_v45, 0  ;;  %v2739_v53 = vperm.slane %v5547_v40, 0  ;;  %v2751_v2 = vperm.slane %v5544_v45, 1  ;;  %v2752_v16 = vperm.slane %v5547_v40, 1  ;;  %3068 = vmatpush.msrb.mxu0 %v427_v24  ;;  %3088 = vmatpush.msrb.mxu1 %v555_v43  ;;  %v548_v56 = vld [vmem:[#allocation2 + $0x658] sm:$0xff] }
 0x38f   : > { %v2764_v39 = vperm.slane %v5544_v45, 2  ;;  %v2765_v42 = vperm.slane %v5547_v40, 2  ;;  %v2777_v47 = vperm.slane %v5544_v45, 3  ;;  %v2778_v60 = vperm.slane %v5547_v40, 3  ;;  %3127 = vmatpush.msrb.mxu3 %v564_v27  ;;  %v5865_v45 = vld [vmem:[#allocation19_spill] sm:$0xff]  ;;  %3108 = vmatpush.msrb.mxu2 %v428_v62  ;;  %v403_v27 = vld [vmem:[#allocation2 + $0x1d0] sm:$0xff] }
 0x390   : > { %v2740_v22 = vmul.f32 %v2738_v4, %v5859_v25  ;;  %v2741_v12 = vmul.f32 %v2739_v53, %v5859_v25  ;;  %v2753_v26 = vmul.f32 %v2751_v2, %v5862_v35  ;;  %v2754_v38 = vmul.f32 %v2752_v16, %v5862_v35  ;;  %3069 = vmatpush.msrb.mxu0 %v419_v20  ;;  %v411_v53 = vld [vmem:[#allocation2 + $0x210] sm:$0xff]  ;;  %v404_v35 = vld [vmem:[#allocation2 + $0x1d8] sm:$0xff] }
 0x391   : > { %v2709_v30 = vadd.f32 %v2707_v58, %v2649_v55  ;;  %v2766_v50 = vmul.f32 %v2764_v39, %v5863_v7  ;;  %v2767_v57 = vmul.f32 %v2765_v42, %v5863_v7  ;;  %v2722_v23 = vadd.f32 %v2720_v29, %v2662_v63  ;;  %3128 = vmatpush.msrb.mxu3 %v556_v32  ;;  %v539_v2 = vld [vmem:[#allocation2 + $0x610] sm:$0xff]  ;;  %v5867_v39 = vld [vmem:[#allocation23_spill] sm:$0xff] }
 0x392   : > { %v2786_v13 = vpop.permute.xlu1 %2785  ;;  %v2742_v11 = vadd.f32 %v2740_v22, %v5527_v21  ;;  %v2743_v46 = vadd.f32 %v2741_v12, %v5529_v34  ;;  %v2755_v5 = vadd.f32 %v2753_v26, %v5531_v51  ;;  %v2756_v34 = vadd.f32 %v2754_v38, %v5533_v44  ;;  %3089 = vmatpush.msrb.mxu1 %v547_v9  ;;  %v540_v55 = vld [vmem:[#allocation2 + $0x618] sm:$0xff]  ;;  %v531_v12 = vld [vmem:[#allocation2 + $0x5d0] sm:$0xff] }
 0x393   : > { %v2787_v33 = vsel %vm1083_vm6, %v5521_v1, %v2786_v13  ;;  %v2788_v49 = vsel %vm1083_vm6, %v2786_v13, %v5521_v1  ;;  %v5866_v1 = vld [vmem:[#allocation15_spill] sm:$0xff]  ;;  %v2768_v52 = vadd.f32 %v2766_v50, %v2708_v6  ;;  %3109 = vmatpush.msrb.mxu2 %v420_v59  ;;  %3129 = vmatpush.msrb.mxu3 %v548_v56  ;;  %v395_v38 = vld [vmem:[#allocation2 + $0x190] sm:$0xff]  ;;  %v2882_v13 = vpop.permute.xlu0 %2881 }
 0x394   : > { %v5583_v18 = vmul.f32 %v2787_v33, %v5864_v10  ;;  %v5586_v40 = vmul.f32 %v2788_v49, %v5865_v45  ;;  %v2779_v58 = vmul.f32 %v2777_v47, %v5866_v1  ;;  %v2780_v19 = vmul.f32 %v2778_v60, %v5866_v1  ;;  %3070 = vmatpush.msrb.mxu0 %v411_v53  ;;  %v532_v24 = vld [vmem:[#allocation2 + $0x5d8] sm:$0xff]  ;;  %v2869_v60 = vpop.permute.xlu2 %2868  ;;  %v3664_v43 = vld [vmem:[%s5693_s2 + $0x18] ss:$0 sm:$0xff] }
 0x395   : > { %3090 = vmatpush.msrb.mxu1 %v539_v2  ;;  %v2769_v36 = vadd.f32 %v2767_v57, %v2709_v30  ;;  %3110 = vmatpush.msrb.mxu2 %v412_v48  ;;  %v3663_v30 = vld [vmem:[%s5693_s2 + $0x10] ss:$0 sm:$0xff]  ;;  %v523_v7 = vld [vmem:[#allocation2 + $0x590] sm:$0xff]  ;;  %v396_v50 = vld [vmem:[#allocation2 + $0x198] sm:$0xff] }
 0x396   : > { %v2798_v21 = vperm.slane %v5583_v18, 0  ;;  %v2799_v14 = vperm.slane %v5586_v40, 0  ;;  %v2811_v0 = vperm.slane %v5583_v18, 1  ;;  %v2812_v4 = vperm.slane %v5586_v40, 1  ;;  %3130 = vmatpush.msrb.mxu3 %v540_v55  ;;  %3071 = vmatpush.msrb.mxu0 %v403_v27  ;;  %v524_v32 = vld [vmem:[#allocation2 + $0x598] sm:$0xff]  ;;  %v515_v9 = vld [vmem:[#allocation2 + $0x550] sm:$0xff] }
 0x397   : > { %v2824_v51 = vperm.slane %v5583_v18, 2  ;;  %v2825_v16 = vperm.slane %v5586_v40, 2  ;;  %v5603_v61 = vadd.f32 %v2779_v58, %v2721_v41  ;;  %v2837_v47 = vperm.slane %v5583_v18, 3  ;;  %3091 = vmatpush.msrb.mxu1 %v531_v12  ;;  %3111 = vmatpush.msrb.mxu2 %v404_v35  ;;  %v372_v12 = vld [vmem:[#allocation2 + $0xd8] sm:$0xff] }
 0x398   : > { %v2800_v42 = vmul.f32 %v2798_v21, %v5867_v39  ;;  %v2813_v8 = vmul.f32 %v2811_v0, %v5868_v3  ;;  %v2814_v54 = vmul.f32 %v2812_v4, %v5868_v3  ;;  %v2801_v44 = vmul.f32 %v2799_v14, %v5867_v39  ;;  %3131 = vmatpush.msrb.mxu3 %v532_v24  ;;  %v516_v0 = vld [vmem:[#allocation2 + $0x558] sm:$0xff] }
 0x399   : > { %v2826_v25 = vmul.f32 %v2824_v51, %v2822_v37  ;;  %v2827_v22 = vmul.f32 %v2825_v16, %v2822_v37  ;;  %v2838_v6 = vperm.slane %v5586_v40, 3  ;;  %3072 = vmatpush.msrb.mxu0 %v395_v38  ;;  %v387_v40 = vld [vmem:[#allocation2 + $0x150] sm:$0xff]  ;;  %3092 = vmatpush.msrb.mxu1 %v523_v7  ;;  %v500_v35 = vld [vmem:[#allocation2 + $0x4d8] sm:$0xff] }
 0x39a   : > { %v2846_v28 = vpop.permute.xlu1 %2845  ;;  %v2815_v63 = vadd.f32 %v2813_v8, %v2755_v5  ;;  %v2816_v29 = vadd.f32 %v2814_v54, %v2756_v34  ;;  %v2802_v62 = vadd.f32 %v2800_v42, %v2742_v11  ;;  %v2803_v57 = vadd.f32 %v2801_v44, %v2743_v46  ;;  %v5869_v11 = vld [vmem:[#allocation26_spill] sm:$0xff]  ;;  %3112 = vmatpush.msrb.mxu2 %v396_v50  ;;  %v388_v46 = vld [vmem:[#allocation2 + $0x158] sm:$0xff] }
 0x39b   : > { %v2847_v26 = vsel %vm1151_vm7, %v5571_v15, %v2846_v28  ;;  %v2848_v37 = vsel %vm1151_vm7, %v2846_v28, %v5571_v15  ;;  %v2782_v15 = vadd.f32 %v2780_v19, %v2722_v23  ;;  %v2828_v33 = vadd.f32 %v2826_v25, %v2768_v52  ;;  %3132 = vmatpush.msrb.mxu3 %v524_v32  ;;  %v379_v51 = vld [vmem:[#allocation2 + $0x110] sm:$0xff]  ;;  %v380_v8 = vld [vmem:[#allocation2 + $0x118] sm:$0xff] }
 0x39c   : > { %v2849_v41 = vmul.f32 %v3663_v30, %v2847_v26  ;;  %v2850_v31 = vmul.f32 %v3664_v43, %v2848_v37  ;;  %v2829_v49 = vadd.f32 %v2827_v22, %v2769_v36  ;;  %v2839_v5 = vmul.f32 %v2837_v47, %v5869_v11  ;;  %3073 = vmatpush.msrb.mxu0 %v387_v40  ;;  %v507_v16 = vld [vmem:[#allocation2 + $0x510] sm:$0xff]  ;;  %v2914_v47 = vpop.permute.xlu2 %2913  ;;  %v364_v24 = vld [vmem:[#allocation2 + $0x98] sm:$0xff] }
 0x39d   : > { %v2840_v1 = vmul.f32 %v2838_v6, %v5869_v11  ;;  %3093 = vmatpush.msrb.mxu1 %v515_v9  ;;  %3113 = vmatpush.msrb.mxu2 %v388_v46  ;;  %v371_v25 = vld [vmem:[#allocation2 + $0xd0] sm:$0xff]  ;;  %v2930_v6 = vpop.permute.xlu0 %2929  ;;  %v492_v38 = vld [vmem:[#allocation2 + $0x498] sm:$0xff] }
 0x39e   : > { %v2858_v20 = vperm.slane %v2849_v41, 0  ;;  %v2859_v10 = vperm.slane %v2850_v31, 0  ;;  %v2871_v18 = vperm.slane %v2849_v41, 1  ;;  %v2872_v45 = vperm.slane %v2850_v31, 1  ;;  %3133 = vmatpush.msrb.mxu3 %v516_v0  ;;  %v499_v22 = vld [vmem:[#allocation2 + $0x4d0] sm:$0xff]  ;;  %3074 = vmatpush.msrb.mxu0 %v379_v51  ;;  %v356_v43 = vld [vmem:[#allocation2 + $0x58] sm:$0xff] }
 0x39f   : > { %v2884_v59 = vperm.slane %v2849_v41, 2  ;;  %v2885_v23 = vperm.slane %v2850_v31, 2  ;;  %v2897_v2 = vperm.slane %v2849_v41, 3  ;;  %v2898_v34 = vperm.slane %v2850_v31, 3  ;;  %3094 = vmatpush.msrb.mxu1 %v507_v16  ;;  %3114 = vmatpush.msrb.mxu2 %v380_v8  ;;  %v363_v37 = vld [vmem:[#allocation2 + $0x90] sm:$0xff]  ;;  %v484_v31 = vld [vmem:[#allocation2 + $0x458] sm:$0xff] }
 0x3a0   : > { %v2860_v58 = vmul.f32 %v2858_v20, %v5459_v17  ;;  %v2861_v56 = vmul.f32 %v2859_v10, %v5459_v17  ;;  %v2873_v21 = vmul.f32 %v2871_v18, %v2869_v60  ;;  %v2874_v14 = vmul.f32 %v2872_v45, %v2869_v60  ;;  %v508_v17 = vld [vmem:[#allocation2 + $0x518] sm:$0xff]  ;;  %3075 = vmatpush.msrb.mxu0 %v371_v25  ;;  %v355_v30 = vld [vmem:[#allocation2 + $0x50] sm:$0xff]  ;;  %v2921_v10 = vld.sshfl [vmem:[#allocation1 + $0x8] sm:$0xff pattern:$0x75316420] }
 0x3a1   : > { %v2886_v4 = vmul.f32 %v2884_v59, %v2882_v13  ;;  %v2887_v53 = vmul.f32 %v2885_v23, %v2882_v13  ;;  %v2841_v54 = vadd.f32 %v2839_v5, %v5603_v61  ;;  %v2842_v19 = vadd.f32 %v2840_v1, %v2782_v15  ;;  %3134 = vmatpush.msrb.mxu3 %v508_v17  ;;  %v491_v61 = vld [vmem:[#allocation2 + $0x490] sm:$0xff]  ;;  %v2920_v20 = vld.sshfl [vmem:[#allocation1] sm:$0xff pattern:$0x75316420]  ;;  %v470_v25 = vld [vmem:[#allocation2 + $0x3e8] sm:$0xff] }
 0x3a2   : > { %v2895_v52 = vpop.permute.xlu1 %2894  ;;  %v2862_v48 = vadd.f32 %v2860_v58, %v2802_v62  ;;  %v2863_v39 = vadd.f32 %v2861_v56, %v2803_v57  ;;  %v2875_v42 = vadd.f32 %v2873_v21, %v2815_v63  ;;  %v2876_v3 = vadd.f32 %v2874_v14, %v2816_v29  ;;  %3095 = vmatpush.msrb.mxu1 %v499_v22  ;;  %v483_v41 = vld [vmem:[#allocation2 + $0x450] sm:$0xff]  ;;  %v348_v57 = vld [vmem:[#allocation2 + $0x18] sm:$0xff]  ;;  %v598_v22 = vld [vmem:[#allocation2 + $0x7e8] sm:$0xff] }
 0x3a3   : > { %v2899_v55 = vmul.f32 %v2897_v2, %v2895_v52  ;;  %v2900_v44 = vmul.f32 %v2898_v34, %v2895_v52  ;;  %v2888_v27 = vadd.f32 %v2886_v4, %v2828_v33  ;;  %v2889_v63 = vadd.f32 %v2887_v53, %v2829_v49  ;;  %3115 = vmatpush.msrb.mxu2 %v372_v12  ;;  %v347_v7 = vld [vmem:[#allocation2 + $0x10] sm:$0xff]  ;;  %v476_v33 = vld [vmem:[#allocation2 + $0x418] sm:$0xff]  ;;  %v590_v12 = vld [vmem:[#allocation2 + $0x7a8] sm:$0xff] }
 0x3a4   : > { %v2903_v28 = vadd.f32 %v2875_v42, %v2862_v48  ;;  %v2904_v36 = vadd.f32 %v2876_v3, %v2863_v39  ;;  %3135 = vmatpush.msrb.mxu3 %v500_v35  ;;  %3076 = vmatpush.msrb.mxu0 %v363_v37  ;;  %v475_v50 = vld [vmem:[#allocation2 + $0x410] sm:$0xff]  ;;  %v2952_v5 = vpop.permute.xlu2 %2951  ;;  %v453_v35 = vld [vmem:[#allocation2 + $0x360] sm:$0xff] }
 0x3a5   : > { %v2901_v29 = vadd.f32 %v2899_v55, %v2841_v54  ;;  %v2902_v26 = vadd.f32 %v2900_v44, %v2842_v19  ;;  %3096 = vmatpush.msrb.mxu1 %v491_v61  ;;  %3116 = vmatpush.msrb.mxu2 %v364_v24  ;;  %v2963_v1 = vpop.permute.xlu0 %2962  ;;  %v469_v55 = vld [vmem:[#allocation2 + $0x3e0] sm:$0xff] }
 0x3a6   : > { %3136 = vmatpush.msrb.mxu3 %v492_v38  ;;  %3077 = vmatpush.msrb.mxu0 %v355_v30  ;;  %v597_v44 = vld [vmem:[#allocation2 + $0x7e0] sm:$0xff] }
 0x3a7   : > { %v2905_v60 = vadd.f32 %v2901_v29, %v2888_v27  ;;  %v2906_v13 = vadd.f32 %v2902_v26, %v2889_v63  ;;  %3097 = vmatpush.msrb.mxu1 %v483_v41  ;;  %3117 = vmatpush.msrb.mxu2 %v356_v43  ;;  %v461_v27 = vld [vmem:[#allocation2 + $0x3a0] sm:$0xff]  ;;  %v454_v29 = vld [vmem:[#allocation2 + $0x368] sm:$0xff] }
 0x3a8   : > { %3137 = vmatpush.msrb.mxu3 %v484_v31  ;;  %3078 = vmatpush.msrb.mxu0 %v347_v7  ;;  %v581_v63 = vld [vmem:[#allocation2 + $0x760] sm:$0xff]  ;;  %v582_v26 = vld [vmem:[#allocation2 + $0x768] sm:$0xff] }
 0x3a9   : > { %v2907_v15 = vadd.f32 %v2905_v60, %v2903_v28  ;;  %v2908_v62 = vadd.f32 %v2906_v13, %v2904_v36  ;;  %3098 = vmatpush.msrb.mxu1 %v475_v50  ;;  %3118 = vmatpush.msrb.mxu2 %v348_v57  ;;  %v589_v28 = vld [vmem:[#allocation2 + $0x7a0] sm:$0xff]  ;;  %v462_v36 = vld [vmem:[#allocation2 + $0x3a8] sm:$0xff] }
 0x3aa   : > { %v2941_v40 = vpop.permute.xlu1 %2940  ;;  %3138 = vmatpush.msrb.mxu3 %v476_v33  ;;  %v445_v37 = vld [vmem:[#allocation2 + $0x320] sm:$0xff]  ;;  %v438_v60 = vld [vmem:[#allocation2 + $0x2e8] sm:$0xff] }
 0x3ab   : > { %v2916_v49 = vadd.f32 %v2914_v47, %v2907_v15  ;;  %v2917_v32 = vadd.f32 %v2914_v47, %v2908_v62  ;;  %v573_v61 = vld [vmem:[#allocation2 + $0x720] sm:$0xff]  ;;  %v446_v47 = vld [vmem:[#allocation2 + $0x328] sm:$0xff] }
 0x3ac   : > { %v437_v24 = vld [vmem:[#allocation2 + $0x2e0] sm:$0xff]  ;;  %v566_v13 = vld [vmem:[#allocation2 + $0x6e8] sm:$0xff] }
 0x3ad   : > { %v2924_v18 = vadd.f32 %v2920_v20, %v2916_v49  ;;  %v2925_v45 = vadd.f32 %v2921_v10, %v2917_v32  ;;  %v565_v38 = vld [vmem:[#allocation2 + $0x6e0] sm:$0xff]  ;;  %v430_v43 = vld [vmem:[#allocation2 + $0x2a8] sm:$0xff] }
 0x3ae   : > { %v429_v30 = vld [vmem:[#allocation2 + $0x2a0] sm:$0xff]  ;;  %v558_v31 = vld [vmem:[#allocation2 + $0x6a8] sm:$0xff] }
 0x3af   : > { %v2954_v9 = vperm.slane %v2924_v18, 2  ;;  %v2955_v59 = vperm.slane %v2925_v45, 2  ;;  %v2965_v23 = vperm.slane %v2924_v18, 3  ;;  %v2966_v11 = vperm.slane %v2925_v45, 3  ;;  %v557_v41 = vld [vmem:[#allocation2 + $0x6a0] sm:$0xff]  ;;  %v422_v7 = vld [vmem:[#allocation2 + $0x268] sm:$0xff] }
 0x3b0   : > { %v2932_v46 = vperm.slane %v2924_v18, 0  ;;  %v2933_v58 = vperm.slane %v2925_v45, 0  ;;  %v2943_v56 = vperm.slane %v2924_v18, 1  ;;  %v2944_v21 = vperm.slane %v2925_v45, 1  ;;  %v421_v15 = vld [vmem:[#allocation2 + $0x260] sm:$0xff]  ;;  %v550_v50 = vld [vmem:[#allocation2 + $0x668] sm:$0xff] }
 0x3b1   : > { %v2956_v14 = vmul.f32 %v2954_v9, %v2952_v5  ;;  %v2957_v0 = vmul.f32 %v2955_v59, %v2952_v5  ;;  %v2967_v4 = vmul.f32 %v2965_v23, %v2963_v1  ;;  %v2968_v53 = vmul.f32 %v2966_v11, %v2963_v1  ;;  %v549_v62 = vld [vmem:[#allocation2 + $0x660] sm:$0xff]  ;;  %v414_v49 = vld [vmem:[#allocation2 + $0x228] sm:$0xff] }
 0x3b2   : > { %v2934_v2 = vmul.f32 %v2932_v46, %v2930_v6  ;;  %v2935_v34 = vmul.f32 %v2933_v58, %v2930_v6  ;;  %v2945_v51 = vmul.f32 %v2943_v56, %v2941_v40  ;;  %v2946_v16 = vmul.f32 %v2944_v21, %v2941_v40  ;;  %v2979_v17 = vpop.permute.xlu1 %2978  ;;  %v574_v6 = vld [vmem:[#allocation2 + $0x728] sm:$0xff]  ;;  %v413_v57 = vld [vmem:[#allocation2 + $0x220] sm:$0xff] }
 0x3b3   : > { %v2971_v52 = vadd.f32 %v2967_v4, %v2956_v14  ;;  %v2972_v48 = vadd.f32 %v2968_v53, %v2957_v0  ;;  %v541_v33 = vld [vmem:[#allocation2 + $0x620] sm:$0xff]  ;;  %v542_v32 = vld [vmem:[#allocation2 + $0x628] sm:$0xff] }
 0x3b4   : > { %v2969_v39 = vadd.f32 %v2945_v51, %v2934_v2  ;;  %v2970_v42 = vadd.f32 %v2946_v16, %v2935_v34  ;;  %v405_v20 = vld [vmem:[#allocation2 + $0x1e0] sm:$0xff]  ;;  %v406_v18 = vld [vmem:[#allocation2 + $0x1e8] sm:$0xff] }
 0x3b5   : > { %v533_v10 = vld [vmem:[#allocation2 + $0x5e0] sm:$0xff]  ;;  %v534_v45 = vld [vmem:[#allocation2 + $0x5e8] sm:$0xff] }
 0x3b6   : > { %v2973_v3 = vadd.f32 %v2971_v52, %v2969_v39  ;;  %v2974_v8 = vadd.f32 %v2972_v48, %v2970_v42  ;;  %v397_v40 = vld [vmem:[#allocation2 + $0x1a0] sm:$0xff]  ;;  %v398_v59 = vld [vmem:[#allocation2 + $0x1a8] sm:$0xff] }
 0x3b7   : > { %v525_v9 = vld [vmem:[#allocation2 + $0x5a0] sm:$0xff]  ;;  %v526_v23 = vld [vmem:[#allocation2 + $0x5a8] sm:$0xff] }
 0x3b8   : > { %v5624_v54 = vadd.f32 %v2979_v17, %v2973_v3  ;;  %v5626_v19 = vadd.f32 %v2979_v17, %v2974_v8  ;;  %v389_v11 = vld [vmem:[#allocation2 + $0x160] sm:$0xff]  ;;  %v390_v1 = vld [vmem:[#allocation2 + $0x168] sm:$0xff] }
 0x3b9   : > { %v517_v5 = vld [vmem:[#allocation2 + $0x560] sm:$0xff]  ;;  %v518_v46 = vld [vmem:[#allocation2 + $0x568] sm:$0xff] }
 0x3ba   : > { %2999 = vmatmul.f32.vlgmr.msra.gmra.mxu0 %v5624_v54  ;;  %3019 = vmatmul.f32.vlgmr.msra.gmra.mxu1 %v5626_v19  ;;  %v381_v58 = vld [vmem:[#allocation2 + $0x120] sm:$0xff]  ;;  %v382_v21 = vld [vmem:[#allocation2 + $0x128] sm:$0xff] }
 0x3bb   : > { %3039 = vmatmul.f32.vlgmr.msra.gmra.mxu2 %v5624_v54  ;;  %3059 = vmatmul.f32.vlgmr.msra.gmra.mxu3 %v5626_v19  ;;  %v509_v56 = vld [vmem:[#allocation2 + $0x520] sm:$0xff]  ;;  %v510_v14 = vld [vmem:[#allocation2 + $0x528] sm:$0xff] }
 0x3bc   : > { %3143 = vmatpush.msra.mxu0 %v469_v55  ;;  %3163 = vmatpush.msra.mxu1 %v597_v44  ;;  %v373_v0 = vld [vmem:[#allocation2 + $0xe0] sm:$0xff]  ;;  %v374_v53 = vld [vmem:[#allocation2 + $0xe8] sm:$0xff] }
 0x3bd   : > { %3183 = vmatpush.msra.mxu2 %v470_v25  ;;  %3203 = vmatpush.msra.mxu3 %v598_v22  ;;  %v501_v4 = vld [vmem:[#allocation2 + $0x4e0] sm:$0xff]  ;;  %v502_v2 = vld [vmem:[#allocation2 + $0x4e8] sm:$0xff]  ;;  %v471_v25 = vld [vmem:[#allocation2 + $0x3f0] sm:$0xff] }
 0x3be   : > { %3144 = vmatpush.msra.mxu0 %v461_v27  ;;  %3164 = vmatpush.msra.mxu1 %v589_v28  ;;  %v365_v34 = vld [vmem:[#allocation2 + $0xa0] sm:$0xff]  ;;  %v366_v16 = vld [vmem:[#allocation2 + $0xa8] sm:$0xff]  ;;  %v599_v22 = vld [vmem:[#allocation2 + $0x7f0] sm:$0xff] }
 0x3bf   : > { %3184 = vmatpush.msra.mxu2 %v462_v36  ;;  %3204 = vmatpush.msra.mxu3 %v590_v12  ;;  %v493_v51 = vld [vmem:[#allocation2 + $0x4a0] sm:$0xff]  ;;  %v494_v52 = vld [vmem:[#allocation2 + $0x4a8] sm:$0xff]  ;;  %v472_v27 = vld [vmem:[#allocation2 + $0x3f8] sm:$0xff] }
 0x3c0   : > { %3145 = vmatpush.msra.mxu0 %v453_v35  ;;  %3165 = vmatpush.msra.mxu1 %v581_v63  ;;  %v357_v48 = vld [vmem:[#allocation2 + $0x60] sm:$0xff]  ;;  %v358_v42 = vld [vmem:[#allocation2 + $0x68] sm:$0xff]  ;;  %v600_v28 = vld [vmem:[#allocation2 + $0x7f8] sm:$0xff] }
 0x3c1   : > { %3185 = vmatpush.msra.mxu2 %v454_v29  ;;  %3205 = vmatpush.msra.mxu3 %v582_v26  ;;  %v485_v39 = vld [vmem:[#allocation2 + $0x460] sm:$0xff]  ;;  %v486_v3 = vld [vmem:[#allocation2 + $0x468] sm:$0xff]  ;;  %v463_v36 = vld [vmem:[#allocation2 + $0x3b0] sm:$0xff] }
 0x3c2   : > { %3146 = vmatpush.msra.mxu0 %v445_v37  ;;  %3166 = vmatpush.msra.mxu1 %v573_v61  ;;  %v349_v8 = vld [vmem:[#allocation2 + $0x20] sm:$0xff]  ;;  %v350_v55 = vld [vmem:[#allocation2 + $0x28] sm:$0xff]  ;;  %v591_v12 = vld [vmem:[#allocation2 + $0x7b0] sm:$0xff] }
 0x3c3   : > { %3186 = vmatpush.msra.mxu2 %v446_v47  ;;  %3206 = vmatpush.msra.mxu3 %v574_v6  ;;  %v477_v17 = vld [vmem:[#allocation2 + $0x420] sm:$0xff]  ;;  %v478_v44 = vld [vmem:[#allocation2 + $0x428] sm:$0xff]  ;;  %v464_v35 = vld [vmem:[#allocation2 + $0x3b8] sm:$0xff] }
 0x3c4   : > { %3079 = vmatmul.f32.vlgmr.msrb.gmra.mxu0 %v5624_v54  ;;  %3099 = vmatmul.f32.vlgmr.msrb.gmra.mxu1 %v5626_v19  ;;  %v592_v63 = vld [vmem:[#allocation2 + $0x7b8] sm:$0xff]  ;;  %v455_v29 = vld [vmem:[#allocation2 + $0x370] sm:$0xff] }
 0x3c5   : > { %3119 = vmatmul.f32.vlgmr.msrb.gmra.mxu2 %v5624_v54  ;;  %3139 = vmatmul.f32.vlgmr.msrb.gmra.mxu3 %v5626_v19  ;;  %v583_v26 = vld [vmem:[#allocation2 + $0x770] sm:$0xff]  ;;  %v456_v37 = vld [vmem:[#allocation2 + $0x378] sm:$0xff] }
 0x3c6   : > { %3147 = vmatpush.msra.mxu0 %v437_v24  ;;  %3167 = vmatpush.msra.mxu1 %v565_v38  ;;  %v584_v61 = vld [vmem:[#allocation2 + $0x778] sm:$0xff]  ;;  %v447_v47 = vld [vmem:[#allocation2 + $0x330] sm:$0xff] }
 0x3c7   : > { %3187 = vmatpush.msra.mxu2 %v438_v60  ;;  %3207 = vmatpush.msra.mxu3 %v566_v13  ;;  %v575_v6 = vld [vmem:[#allocation2 + $0x730] sm:$0xff]  ;;  %v448_v24 = vld [vmem:[#allocation2 + $0x338] sm:$0xff] }
 0x3c8   : > { %3148 = vmatpush.msra.mxu0 %v429_v30  ;;  %3168 = vmatpush.msra.mxu1 %v557_v41  ;;  %v576_v38 = vld [vmem:[#allocation2 + $0x738] sm:$0xff]  ;;  %v439_v60 = vld [vmem:[#allocation2 + $0x2f0] sm:$0xff] }
 0x3c9   : > { %3188 = vmatpush.msra.mxu2 %v430_v43  ;;  %3208 = vmatpush.msra.mxu3 %v558_v31  ;;  %v567_v13 = vld [vmem:[#allocation2 + $0x6f0] sm:$0xff]  ;;  %v440_v30 = vld [vmem:[#allocation2 + $0x2f8] sm:$0xff] }
 0x3ca   : > { %3149 = vmatpush.msra.mxu0 %v421_v15  ;;  %3169 = vmatpush.msra.mxu1 %v549_v62  ;;  %v568_v41 = vld [vmem:[#allocation2 + $0x6f8] sm:$0xff]  ;;  %v431_v43 = vld [vmem:[#allocation2 + $0x2b0] sm:$0xff] }
 0x3cb   : > { %3189 = vmatpush.msra.mxu2 %v422_v7  ;;  %3209 = vmatpush.msra.mxu3 %v550_v50  ;;  %v559_v31 = vld [vmem:[#allocation2 + $0x6b0] sm:$0xff]  ;;  %v432_v15 = vld [vmem:[#allocation2 + $0x2b8] sm:$0xff] }
 0x3cc   : > { %3150 = vmatpush.msra.mxu0 %v413_v57  ;;  %3170 = vmatpush.msra.mxu1 %v541_v33  ;;  %v560_v62 = vld [vmem:[#allocation2 + $0x6b8] sm:$0xff]  ;;  %v423_v7 = vld [vmem:[#allocation2 + $0x270] sm:$0xff] }
 0x3cd   : > { %3190 = vmatpush.msra.mxu2 %v414_v49  ;;  %3210 = vmatpush.msra.mxu3 %v542_v32  ;;  %v551_v50 = vld [vmem:[#allocation2 + $0x670] sm:$0xff]  ;;  %v424_v57 = vld [vmem:[#allocation2 + $0x278] sm:$0xff] }
 0x3ce   : > { %3151 = vmatpush.msra.mxu0 %v405_v20  ;;  %3171 = vmatpush.msra.mxu1 %v533_v10  ;;  %v552_v33 = vld [vmem:[#allocation2 + $0x678] sm:$0xff]  ;;  %v415_v49 = vld [vmem:[#allocation2 + $0x230] sm:$0xff] }
 0x3cf   : > { %3191 = vmatpush.msra.mxu2 %v406_v18  ;;  %3211 = vmatpush.msra.mxu3 %v534_v45  ;;  %v543_v32 = vld [vmem:[#allocation2 + $0x630] sm:$0xff]  ;;  %v416_v20 = vld [vmem:[#allocation2 + $0x238] sm:$0xff] }
 0x3d0   : > { %3152 = vmatpush.msra.mxu0 %v397_v40  ;;  %3172 = vmatpush.msra.mxu1 %v525_v9  ;;  %v544_v10 = vld [vmem:[#allocation2 + $0x638] sm:$0xff]  ;;  %v407_v18 = vld [vmem:[#allocation2 + $0x1f0] sm:$0xff] }
 0x3d1   : > { %3192 = vmatpush.msra.mxu2 %v398_v59  ;;  %3212 = vmatpush.msra.mxu3 %v526_v23  ;;  %v535_v45 = vld [vmem:[#allocation2 + $0x5f0] sm:$0xff]  ;;  %v408_v40 = vld [vmem:[#allocation2 + $0x1f8] sm:$0xff] }
 0x3d2   : > { %3153 = vmatpush.msra.mxu0 %v389_v11  ;;  %3173 = vmatpush.msra.mxu1 %v517_v5  ;;  %v536_v9 = vld [vmem:[#allocation2 + $0x5f8] sm:$0xff]  ;;  %v399_v59 = vld [vmem:[#allocation2 + $0x1b0] sm:$0xff] }
 0x3d3   : > { %3193 = vmatpush.msra.mxu2 %v390_v1  ;;  %3213 = vmatpush.msra.mxu3 %v518_v46  ;;  %v527_v23 = vld [vmem:[#allocation2 + $0x5b0] sm:$0xff]  ;;  %v400_v11 = vld [vmem:[#allocation2 + $0x1b8] sm:$0xff] }
 0x3d4   : > { %3154 = vmatpush.msra.mxu0 %v381_v58  ;;  %3174 = vmatpush.msra.mxu1 %v509_v56  ;;  %v528_v5 = vld [vmem:[#allocation2 + $0x5b8] sm:$0xff]  ;;  %v391_v1 = vld [vmem:[#allocation2 + $0x170] sm:$0xff] }
 0x3d5   : > { %3194 = vmatpush.msra.mxu2 %v382_v21  ;;  %3214 = vmatpush.msra.mxu3 %v510_v14  ;;  %v519_v46 = vld [vmem:[#allocation2 + $0x570] sm:$0xff]  ;;  %v392_v58 = vld [vmem:[#allocation2 + $0x178] sm:$0xff] }
 0x3d6   : > { %3155 = vmatpush.msra.mxu0 %v373_v0  ;;  %3175 = vmatpush.msra.mxu1 %v501_v4  ;;  %v520_v56 = vld [vmem:[#allocation2 + $0x578] sm:$0xff]  ;;  %v383_v21 = vld [vmem:[#allocation2 + $0x130] sm:$0xff] }
 0x3d7   : > { %3195 = vmatpush.msra.mxu2 %v374_v53  ;;  %3215 = vmatpush.msra.mxu3 %v502_v2  ;;  %v511_v14 = vld [vmem:[#allocation2 + $0x530] sm:$0xff]  ;;  %v384_v0 = vld [vmem:[#allocation2 + $0x138] sm:$0xff] }
 0x3d8   : > { %3156 = vmatpush.msra.mxu0 %v365_v34  ;;  %3176 = vmatpush.msra.mxu1 %v493_v51  ;;  %v512_v4 = vld [vmem:[#allocation2 + $0x538] sm:$0xff]  ;;  %v375_v53 = vld [vmem:[#allocation2 + $0xf0] sm:$0xff] }
 0x3d9   : > { %3196 = vmatpush.msra.mxu2 %v366_v16  ;;  %3216 = vmatpush.msra.mxu3 %v494_v52  ;;  %v503_v2 = vld [vmem:[#allocation2 + $0x4f0] sm:$0xff]  ;;  %v376_v34 = vld [vmem:[#allocation2 + $0xf8] sm:$0xff] }
 0x3da   : > { %3157 = vmatpush.msra.mxu0 %v357_v48  ;;  %3177 = vmatpush.msra.mxu1 %v485_v39  ;;  %v504_v51 = vld [vmem:[#allocation2 + $0x4f8] sm:$0xff]  ;;  %v367_v16 = vld [vmem:[#allocation2 + $0xb0] sm:$0xff] }
 0x3db   : > { %3197 = vmatpush.msra.mxu2 %v358_v42  ;;  %3217 = vmatpush.msra.mxu3 %v486_v3  ;;  %v495_v52 = vld [vmem:[#allocation2 + $0x4b0] sm:$0xff]  ;;  %v368_v48 = vld [vmem:[#allocation2 + $0xb8] sm:$0xff] }
 0x3dc   : > { %3158 = vmatpush.msra.mxu0 %v349_v8  ;;  %3178 = vmatpush.msra.mxu1 %v477_v17  ;;  %v496_v39 = vld [vmem:[#allocation2 + $0x4b8] sm:$0xff]  ;;  %v359_v42 = vld [vmem:[#allocation2 + $0x70] sm:$0xff] }
 0x3dd   : > { %3198 = vmatpush.msra.mxu2 %v350_v55  ;;  %3218 = vmatpush.msra.mxu3 %v478_v44  ;;  %v487_v3 = vld [vmem:[#allocation2 + $0x470] sm:$0xff]  ;;  %v360_v8 = vld [vmem:[#allocation2 + $0x78] sm:$0xff] }
 0x3de   : > { %3159 = vmatmul.f32.vlgmr.msra.gmra.mxu0 %v5624_v54  ;;  %3179 = vmatmul.f32.vlgmr.msra.gmra.mxu1 %v5626_v19  ;;  %v488_v17 = vld [vmem:[#allocation2 + $0x478] sm:$0xff]  ;;  %v351_v55 = vld [vmem:[#allocation2 + $0x30] sm:$0xff] }
 0x3df   : > { %3199 = vmatmul.f32.vlgmr.msra.gmra.mxu2 %v5624_v54  ;;  %3219 = vmatmul.f32.vlgmr.msra.gmra.mxu3 %v5626_v19  ;;  %v479_v44 = vld [vmem:[#allocation2 + $0x430] sm:$0xff] }
 0x3e0   : > { %3223 = vmatpush.msrb.mxu0 %v471_v25  ;;  %3243 = vmatpush.msrb.mxu1 %v599_v22  ;;  %v352_v25 = vld [vmem:[#allocation2 + $0x38] sm:$0xff] }
 0x3e1   : > { %3263 = vmatpush.msrb.mxu2 %v472_v27  ;;  %3283 = vmatpush.msrb.mxu3 %v600_v28  ;;  %v480_v22 = vld [vmem:[#allocation2 + $0x438] sm:$0xff] }
 0x3e2   : > { %3224 = vmatpush.msrb.mxu0 %v463_v36  ;;  %3244 = vmatpush.msrb.mxu1 %v591_v12 }
 0x3e3   : > { %3264 = vmatpush.msrb.mxu2 %v464_v35  ;;  %3284 = vmatpush.msrb.mxu3 %v592_v63 }
 0x3e4   : > { %3225 = vmatpush.msrb.mxu0 %v455_v29  ;;  %3245 = vmatpush.msrb.mxu1 %v583_v26 }
 0x3e5   : > { %3265 = vmatpush.msrb.mxu2 %v456_v37  ;;  %3285 = vmatpush.msrb.mxu3 %v584_v61 }
 0x3e6   : > { %3226 = vmatpush.msrb.mxu0 %v447_v47  ;;  %3246 = vmatpush.msrb.mxu1 %v575_v6 }
 0x3e7   : > { %3266 = vmatpush.msrb.mxu2 %v448_v24  ;;  %3286 = vmatpush.msrb.mxu3 %v576_v38 }
 0x3e8   : > { %3227 = vmatpush.msrb.mxu0 %v439_v60  ;;  %3247 = vmatpush.msrb.mxu1 %v567_v13 }
 0x3e9   : > { %3267 = vmatpush.msrb.mxu2 %v440_v30  ;;  %3287 = vmatpush.msrb.mxu3 %v568_v41 }
 0x3ea   : > { %3228 = vmatpush.msrb.mxu0 %v431_v43  ;;  %3248 = vmatpush.msrb.mxu1 %v559_v31 }
 0x3eb   : > { %3268 = vmatpush.msrb.mxu2 %v432_v15  ;;  %3288 = vmatpush.msrb.mxu3 %v560_v62 }
 0x3ec   : > { %3229 = vmatpush.msrb.mxu0 %v423_v7  ;;  %3249 = vmatpush.msrb.mxu1 %v551_v50 }
 0x3ed   : > { %3269 = vmatpush.msrb.mxu2 %v424_v57  ;;  %3289 = vmatpush.msrb.mxu3 %v552_v33 }
 0x3ee   : > { %3230 = vmatpush.msrb.mxu0 %v415_v49  ;;  %3250 = vmatpush.msrb.mxu1 %v543_v32 }
 0x3ef   : > { %3270 = vmatpush.msrb.mxu2 %v416_v20  ;;  %3290 = vmatpush.msrb.mxu3 %v544_v10 }
 0x3f0   : > { %3231 = vmatpush.msrb.mxu0 %v407_v18  ;;  %3251 = vmatpush.msrb.mxu1 %v535_v45 }
 0x3f1   : > { %3271 = vmatpush.msrb.mxu2 %v408_v40  ;;  %3291 = vmatpush.msrb.mxu3 %v536_v9 }
 0x3f2   : > { %3232 = vmatpush.msrb.mxu0 %v399_v59  ;;  %3252 = vmatpush.msrb.mxu1 %v527_v23 }
 0x3f3   : > { %3272 = vmatpush.msrb.mxu2 %v400_v11  ;;  %3292 = vmatpush.msrb.mxu3 %v528_v5 }
 0x3f4   : > { %3233 = vmatpush.msrb.mxu0 %v391_v1  ;;  %3253 = vmatpush.msrb.mxu1 %v519_v46 }
 0x3f5   : > { %3273 = vmatpush.msrb.mxu2 %v392_v58  ;;  %3293 = vmatpush.msrb.mxu3 %v520_v56 }
 0x3f6   : > { %3234 = vmatpush.msrb.mxu0 %v383_v21  ;;  %3254 = vmatpush.msrb.mxu1 %v511_v14 }
 0x3f7   : > { %3274 = vmatpush.msrb.mxu2 %v384_v0  ;;  %3294 = vmatpush.msrb.mxu3 %v512_v4 }
 0x3f8   : > { %3235 = vmatpush.msrb.mxu0 %v375_v53  ;;  %3255 = vmatpush.msrb.mxu1 %v503_v2 }
 0x3f9   : > { %3275 = vmatpush.msrb.mxu2 %v376_v34  ;;  %3295 = vmatpush.msrb.mxu3 %v504_v51 }
 0x3fa   : > { %3236 = vmatpush.msrb.mxu0 %v367_v16  ;;  %3256 = vmatpush.msrb.mxu1 %v495_v52 }
 0x3fb   : > { %3276 = vmatpush.msrb.mxu2 %v368_v48  ;;  %3296 = vmatpush.msrb.mxu3 %v496_v39 }
 0x3fc   : > { %3237 = vmatpush.msrb.mxu0 %v359_v42  ;;  %3257 = vmatpush.msrb.mxu1 %v487_v3 }
 0x3fd   : > { %3277 = vmatpush.msrb.mxu2 %v360_v8  ;;  %3297 = vmatpush.msrb.mxu3 %v488_v17 }
 0x3fe   : > { %3238 = vmatpush.msrb.mxu0 %v351_v55  ;;  %3258 = vmatpush.msrb.mxu1 %v479_v44 }
 0x3ff   : > { %3278 = vmatpush.msrb.mxu2 %v352_v25  ;;  %3298 = vmatpush.msrb.mxu3 %v480_v22 }
 0x400   : > { %3239 = vmatmul.f32.vlgmr.msrb.gmra.mxu0 %v5624_v54  ;;  %3259 = vmatmul.f32.vlgmr.msrb.gmra.mxu1 %v5626_v19 }
 0x401   : > { %3279 = vmatmul.f32.vlgmr.msrb.gmra.mxu2 %v5624_v54  ;;  %3299 = vmatmul.f32.vlgmr.msrb.gmra.mxu3 %v5626_v19 }
 0x437   : > { %v3000_v27 = vpop.f32.mrf.mxu0  ;;  %v3020_v28 = vpop.f32.mrf.mxu1 }
 0x438   : > { %v3021_v63 = vadd.f32 %v3020_v28, %v3000_v27 }
 0x43e   : > { %v3040_v36 = vpop.f32.mrf.mxu2  ;;  %v3060_v12 = vpop.f32.mrf.mxu3 }
 0x43f   : > { %v3061_v35 = vadd.f32 %v3060_v12, %v3040_v36 }
 0x441   : > { %v3311_v29 = vrot.slane %v3061_v35, 4  ;;  %v3080_v54 = vpop.f32.mrf.mxu0  ;;  %v3100_v37 = vpop.f32.mrf.mxu1 }
 0x442   : > { %v3101_v6 = vadd.f32 %v3100_v37, %v3080_v54 }
 0x443   : > { %v3315_v26 = vsel %vm1776_vm8, %v3021_v63, %v3311_v29 }
 0x444   : > { %3323 = vst [vmem:[%s5648_s18] sm:$0xff] %v3315_v26 }
 0x448   : > { %v3120_v19 = vpop.f32.mrf.mxu2  ;;  %v3140_v61 = vpop.f32.mrf.mxu3 }
 0x449   : > { %v3141_v47 = vadd.f32 %v3140_v61, %v3120_v19 }
 0x44b   : > { %v3312_v24 = vrot.slane %v3141_v47, 4 }
 0x44d   : > { %v3316_v38 = vsel %vm1776_vm8, %v3101_v6, %v3312_v24 }
 0x44e   : > { %3324 = vst [vmem:[%s5648_s18 + $0x8] sm:$0xff] %v3316_v38 }
 0x45b   : > { %v3160_v60 = vpop.f32.mrf.mxu0  ;;  %v3180_v13 = vpop.f32.mrf.mxu1 }
 0x45c   : > { %v3181_v31 = vadd.f32 %v3180_v13, %v3160_v60 }
 0x462   : > { %v3200_v30 = vpop.f32.mrf.mxu2  ;;  %v3220_v41 = vpop.f32.mrf.mxu3 }
 0x463   : > { %v3221_v43 = vadd.f32 %v3220_v41, %v3200_v30 }
 0x465   : > { %v3313_v15 = vrot.slane %v3221_v43, 4 }
 0x467   : > { %v3317_v62 = vsel %vm1776_vm8, %v3181_v31, %v3313_v15 }
 0x468   : > { %3325 = vst [vmem:[%s5648_s18 + $0x10] sm:$0xff] %v3317_v62 }
 0x47d   : > { %v3240_v7 = vpop.f32.mrf.mxu0  ;;  %v3260_v50 = vpop.f32.mrf.mxu1 }
 0x47e   : > { %v3261_v32 = vadd.f32 %v3260_v50, %v3240_v7 }
 0x484   : > { %v3280_v57 = vpop.f32.mrf.mxu2  ;;  %v3300_v33 = vpop.f32.mrf.mxu3 }
 0x485   : > { %v3301_v49 = vadd.f32 %v3300_v33, %v3280_v57 }
 0x487   : > { %v3314_v20 = vrot.slane %v3301_v49, 4 }
 0x489   : > { %v3318_v10 = vsel %vm1776_vm8, %v3261_v32, %v3314_v20 }
 0x48a   : > { %3326 = vst [vmem:[%s5648_s18 + $0x18] sm:$0xff] %v3318_v10 }
 0x48b   : > { %3722 = shalt.err (!%p3719_p8)
}
 0x48c   : > { %3599 = dma.vmem_to_hbm [thread:$0]  (%p3858_p5), %s3342_s20, 512, %s3344_s10, %s3328_s9  }
 0x48d PF: > { %p3611_p9 = scmp.ge.s32.totalorder %s3761_s30, 2  ;;  %s3355_s22 = sand.u32 1, %s3749_s27  }
 0x48e   : > { %s3356_s13 = scalar_lea.sflag [#allocation4], %s3355_s22 }
 0x48f   : > { %p3606_p10 = pnand %p3611_p9, %p3862_p6 }
 0x491   : > { %p3607_p11 = pneg %p3606_p10 }
 0x493   : > { %3744 = dma.done.wait (%p3607_p11), %s3356_s13, 512  }
 0x494   : > { %3746 = vsyncadd (%p3607_p11), %s3356_s13, 4294966784  ;;  %p19_p12 = scmp.ge.s32.totalorder %s3845_s11, 4   ;;  %s5870_s27 = smov %s3753_s28 }
 0x495   : > { %s5871_s28 = smov %s3757_s29  ;;  %s5872_s29 = smov %s3856_s14 }
 0x496   : > { %s5873_s30 = smov %s3845_s11  ;;  %21 = sbr.rel (!%p19_p12) target bundleno = 8 (0x8), region = 244 }
 0x49b   :  { %3362 = vsyncpa [#allocation3], 1 }
 0x49c   :  { %3364 = vsyncpa [#allocation3 + $0x1], 1 }
 0x49d   :  { %3365 = vsyncpa [#allocation4], 1 }
 0x49e   :  { %3367 = vsyncpa [#allocation4 + $0x1], 1 }

</bundles_post_ra>
